<compile_context>
chip_gen: v5e
topology: v5e:2x2
jax: 0.10.0
libtpu: 0.0.40
codegen_flags: <defaults>
</compile_context>

<pallas_src>
import functools

import jax
import jax.numpy as jnp
from jax.experimental import pallas as pl
from jax.experimental.pallas import tpu as pltpu

_BN_EPS = 1e-4


def _pick_tn(n, row_bytes, budget=8 << 20):
    """Largest row tile from {2048..128} dividing n whose double-buffered
    dominant input tile stays under `budget` bytes (fits v7x VMEM)."""
    for t in (2048, 1024, 512, 256, 128):
        if n % t == 0 and 2 * t * row_bytes <= budget:
            return t
    return n  # small / odd N: single full-width block


# ---------------------------------------------------------------------------
# Pallas kernels
# ---------------------------------------------------------------------------

def _stats_kernel(x_ref, s_ref, q_ref):
    """Per-tile per-channel partial sum and sum-of-squares (lane reduction)."""
    x = x_ref[...]                                       # [C, TN] f32
    s_ref[0] = jnp.sum(x, axis=1, keepdims=True)         # [C, 1]
    q_ref[0] = jnp.sum(x * x, axis=1, keepdims=True)     # [C, 1]


def batch_stats(x):
    """x: [C, N] f32 -> [C, 2] (sum, sumsq). Only needed for the raw UBlock
    input; every other tensor gets its stats from a GEMM epilogue."""
    C, N = x.shape
    TN = _pick_tn(N, C * 4)
    nt = N // TN
    s, q = pl.pallas_call(
        _stats_kernel,
        out_shape=(jax.ShapeDtypeStruct((nt, C, 1), jnp.float32),
                   jax.ShapeDtypeStruct((nt, C, 1), jnp.float32)),
        grid=(nt,),
        in_specs=[pl.BlockSpec((C, TN), lambda i: (0, i))],
        out_specs=(pl.BlockSpec((1, C, 1), lambda i: (i, 0, 0)),
                   pl.BlockSpec((1, C, 1), lambda i: (i, 0, 0))),
        compiler_params=pltpu.CompilerParams(
            dimension_semantics=("parallel",)),
    )(x)
    return jnp.concatenate([s.sum(axis=0), q.sum(axis=0)], axis=1)


def _affine_relu_kernel(x_ref, s_ref, b_ref, o_ref):
    y = x_ref[...] * s_ref[...] + b_ref[...]             # [C,TN]*[C,1]+[C,1], f32
    o_ref[...] = jnp.maximum(y, 0.0).astype(o_ref.dtype)


def affine_relu(x, scale, shift):
    """BatchNorm-as-affine + ReLU fused, cast to bf16 for the following GEMM.
    x: [C, N] f32, scale/shift: [C, 1] f32 -> [C, N] bf16 (lane-dense)."""
    C, N = x.shape
    TN = _pick_tn(N, C * 4)
    return pl.pallas_call(
        _affine_relu_kernel,
        out_shape=jax.ShapeDtypeStruct((C, N), jnp.bfloat16),
        grid=(N // TN,),
        in_specs=[pl.BlockSpec((C, TN), lambda i: (0, i)),
                  pl.BlockSpec((C, 1), lambda i: (0, 0)),
                  pl.BlockSpec((C, 1), lambda i: (0, 0))],
        out_specs=pl.BlockSpec((C, TN), lambda i: (0, i)),
        compiler_params=pltpu.CompilerParams(
            dimension_semantics=("parallel",)),
    )(x, scale, shift)


def _gemm_kernel(*refs, mode):
    """out[R, TN] = W[R, S] @ g[S, TN]  (+ residual identity / + fused 1x1x1
    projection); epilogue emits per-tile per-channel sum & sumsq of the f32
    output so the next BatchNorm needs no extra stats pass."""
    if mode == "plain":
        g_ref, w_ref, o_ref, s_ref, q_ref = refs
        acc = jnp.dot(w_ref[...], g_ref[...],
                      preferred_element_type=jnp.float32)
    elif mode == "add":
        g_ref, w_ref, i_ref, o_ref, s_ref, q_ref = refs
        acc = jnp.dot(w_ref[...], g_ref[...],
                      preferred_element_type=jnp.float32) + i_ref[...]
    else:  # "proj"
        g_ref, w_ref, x_ref, wi_ref, o_ref, s_ref, q_ref = refs
        acc = (jnp.dot(w_ref[...], g_ref[...],
                       preferred_element_type=jnp.float32)
               + jnp.dot(wi_ref[...], x_ref[...],
                         preferred_element_type=jnp.float32))
    o_ref[...] = acc
    s_ref[0] = jnp.sum(acc, axis=1, keepdims=True)
    q_ref[0] = jnp.sum(acc * acc, axis=1, keepdims=True)


def fused_gemm(g, w, identity=None, proj=None):
    """Sparse-conv GEMM with the kernel-offset axis folded into contraction.

    g: [S, N] bf16 (im2col features, S = K*Cin), w: [R, S] bf16.
    identity: optional [R, N] f32 residual added to the output (Cin == Cout).
    proj: optional (x0 [Ci, N] bf16, wi [R, Ci] bf16) fused 1x1x1 identity conv.
    Returns (out [R, N] f32, stats [R, 2] f32 = per-channel sum / sumsq).
    """
    S, N = g.shape
    R = w.shape[0]
    TN = _pick_tn(N, S * 2)
    nt = N // TN
    in_specs = [pl.BlockSpec((S, TN), lambda i: (0, i)),
                pl.BlockSpec((R, S), lambda i: (0, 0))]
    args = [g, w]
    if proj is not None:
        mode = "proj"
        x0, wi = proj
        Ci = x0.shape[0]
        in_specs += [pl.BlockSpec((Ci, TN), lambda i: (0, i)),
                     pl.BlockSpec((R, Ci), lambda i: (0, 0))]
        args += [x0, wi]
    elif identity is not None:
        mode = "add"
        in_specs.append(pl.BlockSpec((R, TN), lambda i: (0, i)))
        args.append(identity)
    else:
        mode = "plain"
    out, s, q = pl.pallas_call(
        functools.partial(_gemm_kernel, mode=mode),
        out_shape=(jax.ShapeDtypeStruct((R, N), jnp.float32),
                   jax.ShapeDtypeStruct((nt, R, 1), jnp.float32),
                   jax.ShapeDtypeStruct((nt, R, 1), jnp.float32)),
        grid=(nt,),
        in_specs=in_specs,
        out_specs=(pl.BlockSpec((R, TN), lambda i: (0, i)),
                   pl.BlockSpec((1, R, 1), lambda i: (i, 0, 0)),
                   pl.BlockSpec((1, R, 1), lambda i: (i, 0, 0))),
        compiler_params=pltpu.CompilerParams(
            dimension_semantics=("parallel",)),
    )(*args)
    stats = jnp.concatenate([s.sum(axis=0), q.sum(axis=0)], axis=1)
    return out, stats


# ---------------------------------------------------------------------------
# BatchNorm affine from batch statistics (tiny XLA math)
# ---------------------------------------------------------------------------

def bn_affine(stats, gamma, beta, n, eps=_BN_EPS):
    """Training-mode BatchNorm1d folded to a per-channel affine.
    stats: [C, 2] = (sum, sumsq) over n voxels (biased variance)."""
    mean = stats[:, 0] / n
    var = jnp.maximum(stats[:, 1] / n - mean * mean, 0.0)
    scale = gamma * jax.lax.rsqrt(var + eps)
    shift = beta - mean * scale
    return scale[:, None], shift[:, None]


# ---------------------------------------------------------------------------
# Rulebook gathers / scatters (index plumbing; plain XLA glue, channels-first)
# ---------------------------------------------------------------------------

def gather_subm3(a, batch, spatial):
    """SubMConv3d 3x3x3 pad=1 im2col (dense occupancy): [C, N] -> [27*C, N].
    Row order: offset-major, channel-minor (matches weight flattening)."""
    D, H, W = spatial
    C = a.shape[0]
    x = a.reshape(C, batch, D, H, W)
    xp = jnp.pad(x, ((0, 0), (0, 0), (1, 1), (1, 1), (1, 1)))
    slabs = []
    for dz in range(3):
        for dy in range(3):
            for dx in range(3):
                slabs.append(
                    xp[:, :, dz:dz + D, dy:dy + H, dx:dx + W].reshape(C, -1))
    return jnp.concatenate(slabs, axis=0)


def gather_down2(a, batch, spatial):
    """SparseConv3d kernel=2 stride=2 gather: [C, N] -> [8*C, N/8]."""
    D, H, W = spatial
    C = a.shape[0]
    x = a.reshape(C, batch, D, H, W)
    slabs = []
    for dz in range(2):
        for dy in range(2):
            for dx in range(2):
                slabs.append(x[:, :, dz::2, dy::2, dx::2].reshape(C, -1))
    return jnp.concatenate(slabs, axis=0)


def scatter_up2(per_offset, batch, spatial_down):
    """Inverse of gather_down2: [8*C, N_down] -> [C, N_full].
    Rows k*C + c (k = dz*4+dy*2+dx) interleave to fine coords (2z+dz, ...)."""
    # TODO(synk): write strided from the deconv kernel instead of this XLA
    # transpose to save one full-tensor HBM pass.
    Dd, Hd, Wd = spatial_down
    C = per_offset.shape[0] // 8
    y = per_offset.reshape(2, 2, 2, C, batch, Dd, Hd, Wd)
    y = jnp.transpose(y, (3, 4, 5, 0, 6, 1, 7, 2))   # (C, b, zd, dz, yd, dy, xd, dx)
    return y.reshape(C, batch * Dd * 2 * Hd * 2 * Wd * 2)


# ---------------------------------------------------------------------------
# Parameters (deterministic init; weights pre-flattened for the folded GEMM)
# ---------------------------------------------------------------------------

class ParamGen:
    def __init__(self, key):
        self.key = key

    def _normal(self, shape, std):
        self.key, sub = jax.random.split(self.key)
        return std * jax.random.normal(sub, shape, jnp.float32)

    def conv(self, K, cin, cout):
        """Rulebook weight [K, cin, cout] -> [cout, K*cin] bf16 (cols k*cin+c)."""
        w = self._normal((K, cin, cout), (2.0 / (K * cin)) ** 0.5)
        return jnp.transpose(w, (2, 0, 1)).reshape(cout, K * cin).astype(jnp.bfloat16)

    def deconv(self, K, cin, cout):
        """Inverse-conv weight [K, cin, cout] -> [K*cout, cin] bf16 (rows k*cout+c)."""
        w = self._normal((K, cin, cout), (2.0 / (K * cin)) ** 0.5)
        return jnp.transpose(w, (0, 2, 1)).reshape(K * cout, cin).astype(jnp.bfloat16)


def init_residual_block(pg, cin, cout):
    p = {
        "bn1_g": jnp.ones((cin,), jnp.float32),
        "bn1_b": jnp.zeros((cin,), jnp.float32),
        "w1": pg.conv(27, cin, cout),
        "bn2_g": jnp.ones((cout,), jnp.float32),
        "bn2_b": jnp.zeros((cout,), jnp.float32),
        "w2": pg.conv(27, cout, cout),
    }
    if cin != cout:
        p["i_w"] = pg.conv(1, cin, cout)   # 1x1x1 SubMConv3d identity branch
    return p


def init_ublock(pg, nPlanes, block_reps):
    p = {"blocks": [init_residual_block(pg, nPlanes[0], nPlanes[0])
                    for _ in range(block_reps)]}
    if len(nPlanes) > 1:
        p["conv_bn_g"] = jnp.ones((nPlanes[0],), jnp.float32)
        p["conv_bn_b"] = jnp.zeros((nPlanes[0],), jnp.float32)
        p["conv_w"] = pg.conv(8, nPlanes[0], nPlanes[1])       # SparseConv3d k2 s2
        p["u"] = init_ublock(pg, nPlanes[1:], block_reps)
        p["deconv_bn_g"] = jnp.ones((nPlanes[1],), jnp.float32)
        p["deconv_bn_b"] = jnp.zeros((nPlanes[1],), jnp.float32)
        p["deconv_w"] = pg.deconv(8, nPlanes[1], nPlanes[0])   # SparseInverseConv3d k2
        p["blocks_tail"] = [
            init_residual_block(pg, nPlanes[0] * (2 - i), nPlanes[0])
            for i in range(block_reps)]
    return p


# ---------------------------------------------------------------------------
# Forward pass (features are channels-first [C, N] f32; stats are [C, 2])
# ---------------------------------------------------------------------------

def residual_block_fwd(p, x, x_stats, batch, spatial):
    Cin, N = x.shape
    s1, b1 = bn_affine(x_stats, p["bn1_g"], p["bn1_b"], N)
    a1 = affine_relu(x, s1, b1)                                  # bf16
    y1, y1_stats = fused_gemm(gather_subm3(a1, batch, spatial), p["w1"])
    s2, b2 = bn_affine(y1_stats, p["bn2_g"], p["bn2_b"], N)
    a2 = affine_relu(y1, s2, b2)                                 # bf16
    g2 = gather_subm3(a2, batch, spatial)
    if "i_w" in p:   # 1x1x1 identity projection fused into the conv GEMM
        return fused_gemm(g2, p["w2"], proj=(x.astype(jnp.bfloat16), p["i_w"]))
    return fused_gemm(g2, p["w2"], identity=x)                   # residual add fused


def ublock_fwd(p, x, x_stats, nPlanes, batch, spatial):
    for bp in p["blocks"]:
        x, x_stats = residual_block_fwd(bp, x, x_stats, batch, spatial)
    if len(nPlanes) > 1:
        identity, id_stats = x, x_stats
        N = x.shape[1]
        # conv: BN -> ReLU -> SparseConv3d(kernel=2, stride=2)
        s, b = bn_affine(x_stats, p["conv_bn_g"], p["conv_bn_b"], N)
        a = affine_relu(x, s, b)
        xd, xd_stats = fused_gemm(gather_down2(a, batch, spatial), p["conv_w"])
        spatial_d = tuple(d // 2 for d in spatial)
        # recursive U on the coarse level
        xd, xd_stats = ublock_fwd(p["u"], xd, xd_stats, nPlanes[1:], batch, spatial_d)
        # deconv: BN -> ReLU -> SparseInverseConv3d(kernel=2)
        s, b = bn_affine(xd_stats, p["deconv_bn_g"], p["deconv_bn_b"], xd.shape[1])
        ad = affine_relu(xd, s, b)
        up, up_st = fused_gemm(ad, p["deconv_w"])     # [8*C0, N_down]
        up = scatter_up2(up, batch, spatial_d)        # [C0, N]
        up_stats = up_st.reshape(8, nPlanes[0], 2).sum(axis=0)
        # channel concat (identity first, like torch.cat((identity, decoder)))
        # TODO(synk): could split the first tail conv's weights to skip this concat.
        x = jnp.concatenate([identity, up], axis=0)
        x_stats = jnp.concatenate([id_stats, up_stats], axis=0)
        for bp in p["blocks_tail"]:
            x, x_stats = residual_block_fwd(bp, x, x_stats, batch, spatial)
    return x, x_stats


# ---------------------------------------------------------------------------

if __name__ == "__main__":
    nPlanes = [8, 16]
    block_reps = 2
    B, D, H, W = 1, 8, 8, 8
    N = B * D * H * W

    key = jax.random.PRNGKey(0)
    kp, kx = jax.random.split(key)
    params = init_ublock(ParamGen(kp), nPlanes, block_reps)
    feats = jax.random.normal(kx, (N, nPlanes[0]), jnp.float32)   # [N, C] like spconv

    @jax.jit
    def run(params, feats_nc):
        x = feats_nc.T                     # channels-first [C, N] internal layout
        stats = batch_stats(x)
        y, _ = ublock_fwd(params, x, stats, nPlanes, B, (D, H, W))
        return y.T                         # back to [N, C] like the PyTorch module

    out = jax.block_until_ready(run(params, feats))
    assert out.shape == (N, nPlanes[0]), out.shape
    assert bool(jnp.all(jnp.isfinite(out)))
    print("KERNEL_OK")
</pallas_src>

<mosaic_0001>
module attributes {stable_mosaic.version = 11 : i64} {
  func.func @_stats_kernel(%arg0: i32, %arg1: memref<8x512xf32, #tpu.memory_space<vmem>>, %arg2: memref<1x8x1xf32, #tpu.memory_space<vmem>>, %arg3: memref<1x8x1xf32, #tpu.memory_space<vmem>>) attributes {dimension_semantics = [#tpu.dimension_semantics<parallel>], iteration_bounds = array<i64: 1>, scalar_prefetch = 0 : i64, scratch_operands = 0 : i64, tpu.core_type = #tpu.core_type<tc>, window_params = [{transform_indices = @transform_0, window_bounds = array<i64: 8, 512>}, {transform_indices = @transform_1, window_bounds = array<i64: 1, 8, 1>}, {transform_indices = @transform_2, window_bounds = array<i64: 1, 8, 1>}]} {
    %c0 = arith.constant 0 : index
    %c0_0 = arith.constant 0 : index
    %0 = vector.load %arg1[%c0, %c0_0] : memref<8x512xf32, #tpu.memory_space<vmem>>, vector<8x512xf32>
    %cst = arith.constant dense<0.000000e+00> : vector<8xf32>
    %1 = vector.multi_reduction <add>, %0, %cst [1] : vector<8x512xf32> to vector<8xf32>
    %2 = vector.shape_cast %1 : vector<8xf32> to vector<8x1xf32>
    %c0_1 = arith.constant 0 : index
    %c0_2 = arith.constant 0 : index
    %c0_3 = arith.constant 0 : index
    %3 = vector.load %arg2[%c0_1, %c0_2, %c0_3] : memref<1x8x1xf32, #tpu.memory_space<vmem>>, vector<1x8x1xf32>
    %4 = vector.shape_cast %3 : vector<1x8x1xf32> to vector<8x1xf32>
    %5 = vector.shape_cast %2 : vector<8x1xf32> to vector<1x8x1xf32>
    tpu.vector_store %arg2[%c0_1, %c0_2, %c0_3], %5 {strides = array<i32>} : memref<1x8x1xf32, #tpu.memory_space<vmem>>, vector<1x8x1xf32>,
    %6 = arith.mulf %0, %0 : vector<8x512xf32>
    %cst_4 = arith.constant dense<0.000000e+00> : vector<8xf32>
    %7 = vector.multi_reduction <add>, %6, %cst_4 [1] : vector<8x512xf32> to vector<8xf32>
    %8 = vector.shape_cast %7 : vector<8xf32> to vector<8x1xf32>
    %c0_5 = arith.constant 0 : index
    %c0_6 = arith.constant 0 : index
    %c0_7 = arith.constant 0 : index
    %9 = vector.load %arg3[%c0_5, %c0_6, %c0_7] : memref<1x8x1xf32, #tpu.memory_space<vmem>>, vector<1x8x1xf32>
    %10 = vector.shape_cast %9 : vector<1x8x1xf32> to vector<8x1xf32>
    %11 = vector.shape_cast %8 : vector<8x1xf32> to vector<1x8x1xf32>
    tpu.vector_store %arg3[%c0_5, %c0_6, %c0_7], %11 {strides = array<i32>} : memref<1x8x1xf32, #tpu.memory_space<vmem>>, vector<1x8x1xf32>,
    return
  }
  func.func @transform_0(%arg0: i32) -> (i32, i32) {
    %c0_i32 = arith.constant 0 : i32
    %c0_i32_0 = arith.constant 0 : i32
    return %c0_i32, %arg0 : i32, i32
  }
  func.func @transform_1(%arg0: i32) -> (i32, i32, i32) {
    %c0_i32 = arith.constant 0 : i32
    %c0_i32_0 = arith.constant 0 : i32
    %c0_i32_1 = arith.constant 0 : i32
    return %arg0, %c0_i32, %c0_i32_0 : i32, i32, i32
  }
  func.func @transform_2(%arg0: i32) -> (i32, i32, i32) {
    %c0_i32 = arith.constant 0 : i32
    %c0_i32_0 = arith.constant 0 : i32
    %c0_i32_1 = arith.constant 0 : i32
    return %arg0, %c0_i32, %c0_i32_0 : i32, i32, i32
  }
}

module attributes {stable_mosaic.version = 11 : i64} {
  func.func @_affine_relu_kernel(%arg0: i32, %arg1: memref<8x512xf32, #tpu.memory_space<vmem>>, %arg2: memref<8x1xf32, #tpu.memory_space<vmem>>, %arg3: memref<8x1xf32, #tpu.memory_space<vmem>>, %arg4: memref<8x512xbf16, #tpu.memory_space<vmem>>) attributes {dimension_semantics = [#tpu.dimension_semantics<parallel>], iteration_bounds = array<i64: 1>, scalar_prefetch = 0 : i64, scratch_operands = 0 : i64, tpu.core_type = #tpu.core_type<tc>, window_params = [{transform_indices = @transform_0, window_bounds = array<i64: 8, 512>}, {pipeline_mode = #tpu.pipeline_mode<synchronous>, transform_indices = @transform_1, window_bounds = array<i64: 8, 1>}, {pipeline_mode = #tpu.pipeline_mode<synchronous>, transform_indices = @transform_2, window_bounds = array<i64: 8, 1>}, {transform_indices = @transform_3, window_bounds = array<i64: 8, 512>}]} {
    %c0 = arith.constant 0 : index
    %c0_0 = arith.constant 0 : index
    %0 = vector.load %arg1[%c0, %c0_0] : memref<8x512xf32, #tpu.memory_space<vmem>>, vector<8x512xf32>
    %c0_1 = arith.constant 0 : index
    %c0_2 = arith.constant 0 : index
    %1 = vector.load %arg2[%c0_1, %c0_2] : memref<8x1xf32, #tpu.memory_space<vmem>>, vector<8x1xf32>
    %2 = vector.broadcast %1 : vector<8x1xf32> to vector<8x512xf32>
    %3 = arith.mulf %0, %2 : vector<8x512xf32>
    %c0_3 = arith.constant 0 : index
    %c0_4 = arith.constant 0 : index
    %4 = vector.load %arg3[%c0_3, %c0_4] : memref<8x1xf32, #tpu.memory_space<vmem>>, vector<8x1xf32>
    %5 = vector.broadcast %4 : vector<8x1xf32> to vector<8x512xf32>
    %6 = arith.addf %3, %5 : vector<8x512xf32>
    %cst = arith.constant 0.000000e+00 : f32
    %7 = vector.broadcast %cst : f32 to vector<8x512xf32>
    %8 = arith.maximumf %6, %7 : vector<8x512xf32>
    %9 = arith.truncf %8 : vector<8x512xf32> to vector<8x512xbf16>
    %c0_5 = arith.constant 0 : index
    %c0_6 = arith.constant 0 : index
    %10 = vector.load %arg4[%c0_5, %c0_6] : memref<8x512xbf16, #tpu.memory_space<vmem>>, vector<8x512xbf16>
    tpu.vector_store %arg4[%c0_5, %c0_6], %9 {strides = array<i32>} : memref<8x512xbf16, #tpu.memory_space<vmem>>, vector<8x512xbf16>,
    return
  }
  func.func @transform_0(%arg0: i32) -> (i32, i32) {
    %c0_i32 = arith.constant 0 : i32
    %c0_i32_0 = arith.constant 0 : i32
    return %c0_i32, %arg0 : i32, i32
  }
  func.func @transform_1(%arg0: i32) -> (i32, i32) {
    %c0_i32 = arith.constant 0 : i32
    %c0_i32_0 = arith.constant 0 : i32
    %c0_i32_1 = arith.constant 0 : i32
    return %c0_i32, %c0_i32_0 : i32, i32
  }
  func.func @transform_2(%arg0: i32) -> (i32, i32) {
    %c0_i32 = arith.constant 0 : i32
    %c0_i32_0 = arith.constant 0 : i32
    %c0_i32_1 = arith.constant 0 : i32
    return %c0_i32, %c0_i32_0 : i32, i32
  }
  func.func @transform_3(%arg0: i32) -> (i32, i32) {
    %c0_i32 = arith.constant 0 : i32
    %c0_i32_0 = arith.constant 0 : i32
    return %c0_i32, %arg0 : i32, i32
  }
}

module attributes {stable_mosaic.version = 11 : i64} {
  func.func @_gemm_kernel(%arg0: i32, %arg1: memref<216x512xbf16, #tpu.memory_space<vmem>>, %arg2: memref<8x216xbf16, #tpu.memory_space<vmem>>, %arg3: memref<8x512xf32, #tpu.memory_space<vmem>>, %arg4: memref<8x512xf32, #tpu.memory_space<vmem>>, %arg5: memref<1x8x1xf32, #tpu.memory_space<vmem>>, %arg6: memref<1x8x1xf32, #tpu.memory_space<vmem>>) attributes {dimension_semantics = [#tpu.dimension_semantics<parallel>], iteration_bounds = array<i64: 1>, scalar_prefetch = 0 : i64, scratch_operands = 0 : i64, tpu.core_type = #tpu.core_type<tc>, window_params = [{transform_indices = @transform_0, window_bounds = array<i64: 216, 512>}, {pipeline_mode = #tpu.pipeline_mode<synchronous>, transform_indices = @transform_1, window_bounds = array<i64: 8, 216>}, {transform_indices = @transform_2, window_bounds = array<i64: 8, 512>}, {transform_indices = @transform_3, window_bounds = array<i64: 8, 512>}, {transform_indices = @transform_4, window_bounds = array<i64: 1, 8, 1>}, {transform_indices = @transform_5, window_bounds = array<i64: 1, 8, 1>}]} {
    %c0 = arith.constant 0 : index
    %c0_0 = arith.constant 0 : index
    %0 = vector.load %arg2[%c0, %c0_0] : memref<8x216xbf16, #tpu.memory_space<vmem>>, vector<8x216xbf16>
    %c0_1 = arith.constant 0 : index
    %c0_2 = arith.constant 0 : index
    %1 = vector.load %arg1[%c0_1, %c0_2] : memref<216x512xbf16, #tpu.memory_space<vmem>>, vector<216x512xbf16>
    %cst = arith.constant dense<0.000000e+00> : vector<8x512xf32>
    %2 = tpu.matmul %0, %1, %cst {dimension_numbers = #tpu.dot_dimension_numbers<[1], [0], [0], [1], [0, 0, 1, 1], [], []>} : vector<8x216xbf16>, vector<216x512xbf16>, vector<8x512xf32> -> vector<8x512xf32>
    %c0_3 = arith.constant 0 : index
    %c0_4 = arith.constant 0 : index
    %3 = vector.load %arg3[%c0_3, %c0_4] : memref<8x512xf32, #tpu.memory_space<vmem>>, vector<8x512xf32>
    %4 = arith.addf %2, %3 : vector<8x512xf32>
    %c0_5 = arith.constant 0 : index
    %c0_6 = arith.constant 0 : index
    %5 = vector.load %arg4[%c0_5, %c0_6] : memref<8x512xf32, #tpu.memory_space<vmem>>, vector<8x512xf32>
    tpu.vector_store %arg4[%c0_5, %c0_6], %4 {strides = array<i32>} : memref<8x512xf32, #tpu.memory_space<vmem>>, vector<8x512xf32>,
    %cst_7 = arith.constant dense<0.000000e+00> : vector<8xf32>
    %6 = vector.multi_reduction <add>, %4, %cst_7 [1] : vector<8x512xf32> to vector<8xf32>
    %7 = vector.shape_cast %6 : vector<8xf32> to vector<8x1xf32>
    %c0_8 = arith.constant 0 : index
    %c0_9 = arith.constant 0 : index
    %c0_10 = arith.constant 0 : index
    %8 = vector.load %arg5[%c0_8, %c0_9, %c0_10] : memref<1x8x1xf32, #tpu.memory_space<vmem>>, vector<1x8x1xf32>
    %9 = vector.shape_cast %8 : vector<1x8x1xf32> to vector<8x1xf32>
    %10 = vector.shape_cast %7 : vector<8x1xf32> to vector<1x8x1xf32>
    tpu.vector_store %arg5[%c0_8, %c0_9, %c0_10], %10 {strides = array<i32>} : memref<1x8x1xf32, #tpu.memory_space<vmem>>, vector<1x8x1xf32>,
    %11 = arith.mulf %4, %4 : vector<8x512xf32>
    %cst_11 = arith.constant dense<0.000000e+00> : vector<8xf32>
    %12 = vector.multi_reduction <add>, %11, %cst_11 [1] : vector<8x512xf32> to vector<8xf32>
    %13 = vector.shape_cast %12 : vector<8xf32> to vector<8x1xf32>
    %c0_12 = arith.constant 0 : index
    %c0_13 = arith.constant 0 : index
    %c0_14 = arith.constant 0 : index
    %14 = vector.load %arg6[%c0_12, %c0_13, %c0_14] : memref<1x8x1xf32, #tpu.memory_space<vmem>>, vector<1x8x1xf32>
    %15 = vector.shape_cast %14 : vector<1x8x1xf32> to vector<8x1xf32>
    %16 = vector.shape_cast %13 : vector<8x1xf32> to vector<1x8x1xf32>
    tpu.vector_store %arg6[%c0_12, %c0_13, %c0_14], %16 {strides = array<i32>} : memref<1x8x1xf32, #tpu.memory_space<vmem>>, vector<1x8x1xf32>,
    return
  }
  func.func @transform_0(%arg0: i32) -> (i32, i32) {
    %c0_i32 = arith.constant 0 : i32
    %c0_i32_0 = arith.constant 0 : i32
    return %c0_i32, %arg0 : i32, i32
  }
  func.func @transform_1(%arg0: i32) -> (i32, i32) {
    %c0_i32 = arith.constant 0 : i32
    %c0_i32_0 = arith.constant 0 : i32
    %c0_i32_1 = arith.constant 0 : i32
    return %c0_i32, %c0_i32_0 : i32, i32
  }
  func.func @transform_2(%arg0: i32) -> (i32, i32) {
    %c0_i32 = arith.constant 0 : i32
    %c0_i32_0 = arith.constant 0 : i32
    return %c0_i32, %arg0 : i32, i32
  }
  func.func @transform_3(%arg0: i32) -> (i32, i32) {
    %c0_i32 = arith.constant 0 : i32
    %c0_i32_0 = arith.constant 0 : i32
    return %c0_i32, %arg0 : i32, i32
  }
  func.func @transform_4(%arg0: i32) -> (i32, i32, i32) {
    %c0_i32 = arith.constant 0 : i32
    %c0_i32_0 = arith.constant 0 : i32
    %c0_i32_1 = arith.constant 0 : i32
    return %arg0, %c0_i32, %c0_i32_0 : i32, i32, i32
  }
  func.func @transform_5(%arg0: i32) -> (i32, i32, i32) {
    %c0_i32 = arith.constant 0 : i32
    %c0_i32_0 = arith.constant 0 : i32
    %c0_i32_1 = arith.constant 0 : i32
    return %arg0, %c0_i32, %c0_i32_0 : i32, i32, i32
  }
}

module attributes {stable_mosaic.version = 11 : i64} {
  func.func @_gemm_kernel(%arg0: i32, %arg1: memref<216x512xbf16, #tpu.memory_space<vmem>>, %arg2: memref<8x216xbf16, #tpu.memory_space<vmem>>, %arg3: memref<8x512xf32, #tpu.memory_space<vmem>>, %arg4: memref<1x8x1xf32, #tpu.memory_space<vmem>>, %arg5: memref<1x8x1xf32, #tpu.memory_space<vmem>>) attributes {dimension_semantics = [#tpu.dimension_semantics<parallel>], iteration_bounds = array<i64: 1>, scalar_prefetch = 0 : i64, scratch_operands = 0 : i64, tpu.core_type = #tpu.core_type<tc>, window_params = [{transform_indices = @transform_0, window_bounds = array<i64: 216, 512>}, {pipeline_mode = #tpu.pipeline_mode<synchronous>, transform_indices = @transform_1, window_bounds = array<i64: 8, 216>}, {transform_indices = @transform_2, window_bounds = array<i64: 8, 512>}, {transform_indices = @transform_3, window_bounds = array<i64: 1, 8, 1>}, {transform_indices = @transform_4, window_bounds = array<i64: 1, 8, 1>}]} {
    %c0 = arith.constant 0 : index
    %c0_0 = arith.constant 0 : index
    %0 = vector.load %arg2[%c0, %c0_0] : memref<8x216xbf16, #tpu.memory_space<vmem>>, vector<8x216xbf16>
    %c0_1 = arith.constant 0 : index
    %c0_2 = arith.constant 0 : index
    %1 = vector.load %arg1[%c0_1, %c0_2] : memref<216x512xbf16, #tpu.memory_space<vmem>>, vector<216x512xbf16>
    %cst = arith.constant dense<0.000000e+00> : vector<8x512xf32>
    %2 = tpu.matmul %0, %1, %cst {dimension_numbers = #tpu.dot_dimension_numbers<[1], [0], [0], [1], [0, 0, 1, 1], [], []>} : vector<8x216xbf16>, vector<216x512xbf16>, vector<8x512xf32> -> vector<8x512xf32>
    %c0_3 = arith.constant 0 : index
    %c0_4 = arith.constant 0 : index
    %3 = vector.load %arg3[%c0_3, %c0_4] : memref<8x512xf32, #tpu.memory_space<vmem>>, vector<8x512xf32>
    tpu.vector_store %arg3[%c0_3, %c0_4], %2 {strides = array<i32>} : memref<8x512xf32, #tpu.memory_space<vmem>>, vector<8x512xf32>,
    %cst_5 = arith.constant dense<0.000000e+00> : vector<8xf32>
    %4 = vector.multi_reduction <add>, %2, %cst_5 [1] : vector<8x512xf32> to vector<8xf32>
    %5 = vector.shape_cast %4 : vector<8xf32> to vector<8x1xf32>
    %c0_6 = arith.constant 0 : index
    %c0_7 = arith.constant 0 : index
    %c0_8 = arith.constant 0 : index
    %6 = vector.load %arg4[%c0_6, %c0_7, %c0_8] : memref<1x8x1xf32, #tpu.memory_space<vmem>>, vector<1x8x1xf32>
    %7 = vector.shape_cast %6 : vector<1x8x1xf32> to vector<8x1xf32>
    %8 = vector.shape_cast %5 : vector<8x1xf32> to vector<1x8x1xf32>
    tpu.vector_store %arg4[%c0_6, %c0_7, %c0_8], %8 {strides = array<i32>} : memref<1x8x1xf32, #tpu.memory_space<vmem>>, vector<1x8x1xf32>,
    %9 = arith.mulf %2, %2 : vector<8x512xf32>
    %cst_9 = arith.constant dense<0.000000e+00> : vector<8xf32>
    %10 = vector.multi_reduction <add>, %9, %cst_9 [1] : vector<8x512xf32> to vector<8xf32>
    %11 = vector.shape_cast %10 : vector<8xf32> to vector<8x1xf32>
    %c0_10 = arith.constant 0 : index
    %c0_11 = arith.constant 0 : index
    %c0_12 = arith.constant 0 : index
    %12 = vector.load %arg5[%c0_10, %c0_11, %c0_12] : memref<1x8x1xf32, #tpu.memory_space<vmem>>, vector<1x8x1xf32>
    %13 = vector.shape_cast %12 : vector<1x8x1xf32> to vector<8x1xf32>
    %14 = vector.shape_cast %11 : vector<8x1xf32> to vector<1x8x1xf32>
    tpu.vector_store %arg5[%c0_10, %c0_11, %c0_12], %14 {strides = array<i32>} : memref<1x8x1xf32, #tpu.memory_space<vmem>>, vector<1x8x1xf32>,
    return
  }
  func.func @transform_0(%arg0: i32) -> (i32, i32) {
    %c0_i32 = arith.constant 0 : i32
    %c0_i32_0 = arith.constant 0 : i32
    return %c0_i32, %arg0 : i32, i32
  }
  func.func @transform_1(%arg0: i32) -> (i32, i32) {
    %c0_i32 = arith.constant 0 : i32
    %c0_i32_0 = arith.constant 0 : i32
    %c0_i32_1 = arith.constant 0 : i32
    return %c0_i32, %c0_i32_0 : i32, i32
  }
  func.func @transform_2(%arg0: i32) -> (i32, i32) {
    %c0_i32 = arith.constant 0 : i32
    %c0_i32_0 = arith.constant 0 : i32
    return %c0_i32, %arg0 : i32, i32
  }
  func.func @transform_3(%arg0: i32) -> (i32, i32, i32) {
    %c0_i32 = arith.constant 0 : i32
    %c0_i32_0 = arith.constant 0 : i32
    %c0_i32_1 = arith.constant 0 : i32
    return %arg0, %c0_i32, %c0_i32_0 : i32, i32, i32
  }
  func.func @transform_4(%arg0: i32) -> (i32, i32, i32) {
    %c0_i32 = arith.constant 0 : i32
    %c0_i32_0 = arith.constant 0 : i32
    %c0_i32_1 = arith.constant 0 : i32
    return %arg0, %c0_i32, %c0_i32_0 : i32, i32, i32
  }
}

module attributes {stable_mosaic.version = 11 : i64} {
  func.func @_gemm_kernel(%arg0: i32, %arg1: memref<64x64xbf16, #tpu.memory_space<vmem>>, %arg2: memref<16x64xbf16, #tpu.memory_space<vmem>>, %arg3: memref<16x64xf32, #tpu.memory_space<vmem>>, %arg4: memref<1x16x1xf32, #tpu.memory_space<vmem>>, %arg5: memref<1x16x1xf32, #tpu.memory_space<vmem>>) attributes {dimension_semantics = [#tpu.dimension_semantics<parallel>], iteration_bounds = array<i64: 1>, scalar_prefetch = 0 : i64, scratch_operands = 0 : i64, tpu.core_type = #tpu.core_type<tc>, window_params = [{transform_indices = @transform_0, window_bounds = array<i64: 64, 64>}, {pipeline_mode = #tpu.pipeline_mode<synchronous>, transform_indices = @transform_1, window_bounds = array<i64: 16, 64>}, {transform_indices = @transform_2, window_bounds = array<i64: 16, 64>}, {transform_indices = @transform_3, window_bounds = array<i64: 1, 16, 1>}, {transform_indices = @transform_4, window_bounds = array<i64: 1, 16, 1>}]} {
    %c0 = arith.constant 0 : index
    %c0_0 = arith.constant 0 : index
    %0 = vector.load %arg2[%c0, %c0_0] : memref<16x64xbf16, #tpu.memory_space<vmem>>, vector<16x64xbf16>
    %c0_1 = arith.constant 0 : index
    %c0_2 = arith.constant 0 : index
    %1 = vector.load %arg1[%c0_1, %c0_2] : memref<64x64xbf16, #tpu.memory_space<vmem>>, vector<64x64xbf16>
    %cst = arith.constant dense<0.000000e+00> : vector<16x64xf32>
    %2 = tpu.matmul %0, %1, %cst {dimension_numbers = #tpu.dot_dimension_numbers<[1], [0], [0], [1], [0, 0, 1, 1], [], []>} : vector<16x64xbf16>, vector<64x64xbf16>, vector<16x64xf32> -> vector<16x64xf32>
    %c0_3 = arith.constant 0 : index
    %c0_4 = arith.constant 0 : index
    %3 = vector.load %arg3[%c0_3, %c0_4] : memref<16x64xf32, #tpu.memory_space<vmem>>, vector<16x64xf32>
    tpu.vector_store %arg3[%c0_3, %c0_4], %2 {strides = array<i32>} : memref<16x64xf32, #tpu.memory_space<vmem>>, vector<16x64xf32>,
    %cst_5 = arith.constant dense<0.000000e+00> : vector<16xf32>
    %4 = vector.multi_reduction <add>, %2, %cst_5 [1] : vector<16x64xf32> to vector<16xf32>
    %5 = vector.shape_cast %4 : vector<16xf32> to vector<16x1xf32>
    %c0_6 = arith.constant 0 : index
    %c0_7 = arith.constant 0 : index
    %c0_8 = arith.constant 0 : index
    %6 = vector.load %arg4[%c0_6, %c0_7, %c0_8] : memref<1x16x1xf32, #tpu.memory_space<vmem>>, vector<1x16x1xf32>
    %7 = vector.shape_cast %6 : vector<1x16x1xf32> to vector<16x1xf32>
    %8 = vector.shape_cast %5 : vector<16x1xf32> to vector<1x16x1xf32>
    tpu.vector_store %arg4[%c0_6, %c0_7, %c0_8], %8 {strides = array<i32>} : memref<1x16x1xf32, #tpu.memory_space<vmem>>, vector<1x16x1xf32>,
    %9 = arith.mulf %2, %2 : vector<16x64xf32>
    %cst_9 = arith.constant dense<0.000000e+00> : vector<16xf32>
    %10 = vector.multi_reduction <add>, %9, %cst_9 [1] : vector<16x64xf32> to vector<16xf32>
    %11 = vector.shape_cast %10 : vector<16xf32> to vector<16x1xf32>
    %c0_10 = arith.constant 0 : index
    %c0_11 = arith.constant 0 : index
    %c0_12 = arith.constant 0 : index
    %12 = vector.load %arg5[%c0_10, %c0_11, %c0_12] : memref<1x16x1xf32, #tpu.memory_space<vmem>>, vector<1x16x1xf32>
    %13 = vector.shape_cast %12 : vector<1x16x1xf32> to vector<16x1xf32>
    %14 = vector.shape_cast %11 : vector<16x1xf32> to vector<1x16x1xf32>
    tpu.vector_store %arg5[%c0_10, %c0_11, %c0_12], %14 {strides = array<i32>} : memref<1x16x1xf32, #tpu.memory_space<vmem>>, vector<1x16x1xf32>,
    return
  }
  func.func @transform_0(%arg0: i32) -> (i32, i32) {
    %c0_i32 = arith.constant 0 : i32
    %c0_i32_0 = arith.constant 0 : i32
    return %c0_i32, %arg0 : i32, i32
  }
  func.func @transform_1(%arg0: i32) -> (i32, i32) {
    %c0_i32 = arith.constant 0 : i32
    %c0_i32_0 = arith.constant 0 : i32
    %c0_i32_1 = arith.constant 0 : i32
    return %c0_i32, %c0_i32_0 : i32, i32
  }
  func.func @transform_2(%arg0: i32) -> (i32, i32) {
    %c0_i32 = arith.constant 0 : i32
    %c0_i32_0 = arith.constant 0 : i32
    return %c0_i32, %arg0 : i32, i32
  }
  func.func @transform_3(%arg0: i32) -> (i32, i32, i32) {
    %c0_i32 = arith.constant 0 : i32
    %c0_i32_0 = arith.constant 0 : i32
    %c0_i32_1 = arith.constant 0 : i32
    return %arg0, %c0_i32, %c0_i32_0 : i32, i32, i32
  }
  func.func @transform_4(%arg0: i32) -> (i32, i32, i32) {
    %c0_i32 = arith.constant 0 : i32
    %c0_i32_0 = arith.constant 0 : i32
    %c0_i32_1 = arith.constant 0 : i32
    return %arg0, %c0_i32, %c0_i32_0 : i32, i32, i32
  }
}

module attributes {stable_mosaic.version = 11 : i64} {
  func.func @_affine_relu_kernel(%arg0: i32, %arg1: memref<16x64xf32, #tpu.memory_space<vmem>>, %arg2: memref<16x1xf32, #tpu.memory_space<vmem>>, %arg3: memref<16x1xf32, #tpu.memory_space<vmem>>, %arg4: memref<16x64xbf16, #tpu.memory_space<vmem>>) attributes {dimension_semantics = [#tpu.dimension_semantics<parallel>], iteration_bounds = array<i64: 1>, scalar_prefetch = 0 : i64, scratch_operands = 0 : i64, tpu.core_type = #tpu.core_type<tc>, window_params = [{transform_indices = @transform_0, window_bounds = array<i64: 16, 64>}, {pipeline_mode = #tpu.pipeline_mode<synchronous>, transform_indices = @transform_1, window_bounds = array<i64: 16, 1>}, {pipeline_mode = #tpu.pipeline_mode<synchronous>, transform_indices = @transform_2, window_bounds = array<i64: 16, 1>}, {transform_indices = @transform_3, window_bounds = array<i64: 16, 64>}]} {
    %c0 = arith.constant 0 : index
    %c0_0 = arith.constant 0 : index
    %0 = vector.load %arg1[%c0, %c0_0] : memref<16x64xf32, #tpu.memory_space<vmem>>, vector<16x64xf32>
    %c0_1 = arith.constant 0 : index
    %c0_2 = arith.constant 0 : index
    %1 = vector.load %arg2[%c0_1, %c0_2] : memref<16x1xf32, #tpu.memory_space<vmem>>, vector<16x1xf32>
    %2 = vector.broadcast %1 : vector<16x1xf32> to vector<16x64xf32>
    %3 = arith.mulf %0, %2 : vector<16x64xf32>
    %c0_3 = arith.constant 0 : index
    %c0_4 = arith.constant 0 : index
    %4 = vector.load %arg3[%c0_3, %c0_4] : memref<16x1xf32, #tpu.memory_space<vmem>>, vector<16x1xf32>
    %5 = vector.broadcast %4 : vector<16x1xf32> to vector<16x64xf32>
    %6 = arith.addf %3, %5 : vector<16x64xf32>
    %cst = arith.constant 0.000000e+00 : f32
    %7 = vector.broadcast %cst : f32 to vector<16x64xf32>
    %8 = arith.maximumf %6, %7 : vector<16x64xf32>
    %9 = arith.truncf %8 : vector<16x64xf32> to vector<16x64xbf16>
    %c0_5 = arith.constant 0 : index
    %c0_6 = arith.constant 0 : index
    %10 = vector.load %arg4[%c0_5, %c0_6] : memref<16x64xbf16, #tpu.memory_space<vmem>>, vector<16x64xbf16>
    tpu.vector_store %arg4[%c0_5, %c0_6], %9 {strides = array<i32>} : memref<16x64xbf16, #tpu.memory_space<vmem>>, vector<16x64xbf16>,
    return
  }
  func.func @transform_0(%arg0: i32) -> (i32, i32) {
    %c0_i32 = arith.constant 0 : i32
    %c0_i32_0 = arith.constant 0 : i32
    return %c0_i32, %arg0 : i32, i32
  }
  func.func @transform_1(%arg0: i32) -> (i32, i32) {
    %c0_i32 = arith.constant 0 : i32
    %c0_i32_0 = arith.constant 0 : i32
    %c0_i32_1 = arith.constant 0 : i32
    return %c0_i32, %c0_i32_0 : i32, i32
  }
  func.func @transform_2(%arg0: i32) -> (i32, i32) {
    %c0_i32 = arith.constant 0 : i32
    %c0_i32_0 = arith.constant 0 : i32
    %c0_i32_1 = arith.constant 0 : i32
    return %c0_i32, %c0_i32_0 : i32, i32
  }
  func.func @transform_3(%arg0: i32) -> (i32, i32) {
    %c0_i32 = arith.constant 0 : i32
    %c0_i32_0 = arith.constant 0 : i32
    return %c0_i32, %arg0 : i32, i32
  }
}

module attributes {stable_mosaic.version = 11 : i64} {
  func.func @_gemm_kernel(%arg0: i32, %arg1: memref<432x64xbf16, #tpu.memory_space<vmem>>, %arg2: memref<16x432xbf16, #tpu.memory_space<vmem>>, %arg3: memref<16x64xf32, #tpu.memory_space<vmem>>, %arg4: memref<16x64xf32, #tpu.memory_space<vmem>>, %arg5: memref<1x16x1xf32, #tpu.memory_space<vmem>>, %arg6: memref<1x16x1xf32, #tpu.memory_space<vmem>>) attributes {dimension_semantics = [#tpu.dimension_semantics<parallel>], iteration_bounds = array<i64: 1>, scalar_prefetch = 0 : i64, scratch_operands = 0 : i64, tpu.core_type = #tpu.core_type<tc>, window_params = [{transform_indices = @transform_0, window_bounds = array<i64: 432, 64>}, {pipeline_mode = #tpu.pipeline_mode<synchronous>, transform_indices = @transform_1, window_bounds = array<i64: 16, 432>}, {transform_indices = @transform_2, window_bounds = array<i64: 16, 64>}, {transform_indices = @transform_3, window_bounds = array<i64: 16, 64>}, {transform_indices = @transform_4, window_bounds = array<i64: 1, 16, 1>}, {transform_indices = @transform_5, window_bounds = array<i64: 1, 16, 1>}]} {
    %c0 = arith.constant 0 : index
    %c0_0 = arith.constant 0 : index
    %0 = vector.load %arg2[%c0, %c0_0] : memref<16x432xbf16, #tpu.memory_space<vmem>>, vector<16x432xbf16>
    %c0_1 = arith.constant 0 : index
    %c0_2 = arith.constant 0 : index
    %1 = vector.load %arg1[%c0_1, %c0_2] : memref<432x64xbf16, #tpu.memory_space<vmem>>, vector<432x64xbf16>
    %cst = arith.constant dense<0.000000e+00> : vector<16x64xf32>
    %2 = tpu.matmul %0, %1, %cst {dimension_numbers = #tpu.dot_dimension_numbers<[1], [0], [0], [1], [0, 0, 1, 1], [], []>} : vector<16x432xbf16>, vector<432x64xbf16>, vector<16x64xf32> -> vector<16x64xf32>
    %c0_3 = arith.constant 0 : index
    %c0_4 = arith.constant 0 : index
    %3 = vector.load %arg3[%c0_3, %c0_4] : memref<16x64xf32, #tpu.memory_space<vmem>>, vector<16x64xf32>
    %4 = arith.addf %2, %3 : vector<16x64xf32>
    %c0_5 = arith.constant 0 : index
    %c0_6 = arith.constant 0 : index
    %5 = vector.load %arg4[%c0_5, %c0_6] : memref<16x64xf32, #tpu.memory_space<vmem>>, vector<16x64xf32>
    tpu.vector_store %arg4[%c0_5, %c0_6], %4 {strides = array<i32>} : memref<16x64xf32, #tpu.memory_space<vmem>>, vector<16x64xf32>,
    %cst_7 = arith.constant dense<0.000000e+00> : vector<16xf32>
    %6 = vector.multi_reduction <add>, %4, %cst_7 [1] : vector<16x64xf32> to vector<16xf32>
    %7 = vector.shape_cast %6 : vector<16xf32> to vector<16x1xf32>
    %c0_8 = arith.constant 0 : index
    %c0_9 = arith.constant 0 : index
    %c0_10 = arith.constant 0 : index
    %8 = vector.load %arg5[%c0_8, %c0_9, %c0_10] : memref<1x16x1xf32, #tpu.memory_space<vmem>>, vector<1x16x1xf32>
    %9 = vector.shape_cast %8 : vector<1x16x1xf32> to vector<16x1xf32>
    %10 = vector.shape_cast %7 : vector<16x1xf32> to vector<1x16x1xf32>
    tpu.vector_store %arg5[%c0_8, %c0_9, %c0_10], %10 {strides = array<i32>} : memref<1x16x1xf32, #tpu.memory_space<vmem>>, vector<1x16x1xf32>,
    %11 = arith.mulf %4, %4 : vector<16x64xf32>
    %cst_11 = arith.constant dense<0.000000e+00> : vector<16xf32>
    %12 = vector.multi_reduction <add>, %11, %cst_11 [1] : vector<16x64xf32> to vector<16xf32>
    %13 = vector.shape_cast %12 : vector<16xf32> to vector<16x1xf32>
    %c0_12 = arith.constant 0 : index
    %c0_13 = arith.constant 0 : index
    %c0_14 = arith.constant 0 : index
    %14 = vector.load %arg6[%c0_12, %c0_13, %c0_14] : memref<1x16x1xf32, #tpu.memory_space<vmem>>, vector<1x16x1xf32>
    %15 = vector.shape_cast %14 : vector<1x16x1xf32> to vector<16x1xf32>
    %16 = vector.shape_cast %13 : vector<16x1xf32> to vector<1x16x1xf32>
    tpu.vector_store %arg6[%c0_12, %c0_13, %c0_14], %16 {strides = array<i32>} : memref<1x16x1xf32, #tpu.memory_space<vmem>>, vector<1x16x1xf32>,
    return
  }
  func.func @transform_0(%arg0: i32) -> (i32, i32) {
    %c0_i32 = arith.constant 0 : i32
    %c0_i32_0 = arith.constant 0 : i32
    return %c0_i32, %arg0 : i32, i32
  }
  func.func @transform_1(%arg0: i32) -> (i32, i32) {
    %c0_i32 = arith.constant 0 : i32
    %c0_i32_0 = arith.constant 0 : i32
    %c0_i32_1 = arith.constant 0 : i32
    return %c0_i32, %c0_i32_0 : i32, i32
  }
  func.func @transform_2(%arg0: i32) -> (i32, i32) {
    %c0_i32 = arith.constant 0 : i32
    %c0_i32_0 = arith.constant 0 : i32
    return %c0_i32, %arg0 : i32, i32
  }
  func.func @transform_3(%arg0: i32) -> (i32, i32) {
    %c0_i32 = arith.constant 0 : i32
    %c0_i32_0 = arith.constant 0 : i32
    return %c0_i32, %arg0 : i32, i32
  }
  func.func @transform_4(%arg0: i32) -> (i32, i32, i32) {
    %c0_i32 = arith.constant 0 : i32
    %c0_i32_0 = arith.constant 0 : i32
    %c0_i32_1 = arith.constant 0 : i32
    return %arg0, %c0_i32, %c0_i32_0 : i32, i32, i32
  }
  func.func @transform_5(%arg0: i32) -> (i32, i32, i32) {
    %c0_i32 = arith.constant 0 : i32
    %c0_i32_0 = arith.constant 0 : i32
    %c0_i32_1 = arith.constant 0 : i32
    return %arg0, %c0_i32, %c0_i32_0 : i32, i32, i32
  }
}

module attributes {stable_mosaic.version = 11 : i64} {
  func.func @_gemm_kernel(%arg0: i32, %arg1: memref<432x64xbf16, #tpu.memory_space<vmem>>, %arg2: memref<16x432xbf16, #tpu.memory_space<vmem>>, %arg3: memref<16x64xf32, #tpu.memory_space<vmem>>, %arg4: memref<1x16x1xf32, #tpu.memory_space<vmem>>, %arg5: memref<1x16x1xf32, #tpu.memory_space<vmem>>) attributes {dimension_semantics = [#tpu.dimension_semantics<parallel>], iteration_bounds = array<i64: 1>, scalar_prefetch = 0 : i64, scratch_operands = 0 : i64, tpu.core_type = #tpu.core_type<tc>, window_params = [{transform_indices = @transform_0, window_bounds = array<i64: 432, 64>}, {pipeline_mode = #tpu.pipeline_mode<synchronous>, transform_indices = @transform_1, window_bounds = array<i64: 16, 432>}, {transform_indices = @transform_2, window_bounds = array<i64: 16, 64>}, {transform_indices = @transform_3, window_bounds = array<i64: 1, 16, 1>}, {transform_indices = @transform_4, window_bounds = array<i64: 1, 16, 1>}]} {
    %c0 = arith.constant 0 : index
    %c0_0 = arith.constant 0 : index
    %0 = vector.load %arg2[%c0, %c0_0] : memref<16x432xbf16, #tpu.memory_space<vmem>>, vector<16x432xbf16>
    %c0_1 = arith.constant 0 : index
    %c0_2 = arith.constant 0 : index
    %1 = vector.load %arg1[%c0_1, %c0_2] : memref<432x64xbf16, #tpu.memory_space<vmem>>, vector<432x64xbf16>
    %cst = arith.constant dense<0.000000e+00> : vector<16x64xf32>
    %2 = tpu.matmul %0, %1, %cst {dimension_numbers = #tpu.dot_dimension_numbers<[1], [0], [0], [1], [0, 0, 1, 1], [], []>} : vector<16x432xbf16>, vector<432x64xbf16>, vector<16x64xf32> -> vector<16x64xf32>
    %c0_3 = arith.constant 0 : index
    %c0_4 = arith.constant 0 : index
    %3 = vector.load %arg3[%c0_3, %c0_4] : memref<16x64xf32, #tpu.memory_space<vmem>>, vector<16x64xf32>
    tpu.vector_store %arg3[%c0_3, %c0_4], %2 {strides = array<i32>} : memref<16x64xf32, #tpu.memory_space<vmem>>, vector<16x64xf32>,
    %cst_5 = arith.constant dense<0.000000e+00> : vector<16xf32>
    %4 = vector.multi_reduction <add>, %2, %cst_5 [1] : vector<16x64xf32> to vector<16xf32>
    %5 = vector.shape_cast %4 : vector<16xf32> to vector<16x1xf32>
    %c0_6 = arith.constant 0 : index
    %c0_7 = arith.constant 0 : index
    %c0_8 = arith.constant 0 : index
    %6 = vector.load %arg4[%c0_6, %c0_7, %c0_8] : memref<1x16x1xf32, #tpu.memory_space<vmem>>, vector<1x16x1xf32>
    %7 = vector.shape_cast %6 : vector<1x16x1xf32> to vector<16x1xf32>
    %8 = vector.shape_cast %5 : vector<16x1xf32> to vector<1x16x1xf32>
    tpu.vector_store %arg4[%c0_6, %c0_7, %c0_8], %8 {strides = array<i32>} : memref<1x16x1xf32, #tpu.memory_space<vmem>>, vector<1x16x1xf32>,
    %9 = arith.mulf %2, %2 : vector<16x64xf32>
    %cst_9 = arith.constant dense<0.000000e+00> : vector<16xf32>
    %10 = vector.multi_reduction <add>, %9, %cst_9 [1] : vector<16x64xf32> to vector<16xf32>
    %11 = vector.shape_cast %10 : vector<16xf32> to vector<16x1xf32>
    %c0_10 = arith.constant 0 : index
    %c0_11 = arith.constant 0 : index
    %c0_12 = arith.constant 0 : index
    %12 = vector.load %arg5[%c0_10, %c0_11, %c0_12] : memref<1x16x1xf32, #tpu.memory_space<vmem>>, vector<1x16x1xf32>
    %13 = vector.shape_cast %12 : vector<1x16x1xf32> to vector<16x1xf32>
    %14 = vector.shape_cast %11 : vector<16x1xf32> to vector<1x16x1xf32>
    tpu.vector_store %arg5[%c0_10, %c0_11, %c0_12], %14 {strides = array<i32>} : memref<1x16x1xf32, #tpu.memory_space<vmem>>, vector<1x16x1xf32>,
    return
  }
  func.func @transform_0(%arg0: i32) -> (i32, i32) {
    %c0_i32 = arith.constant 0 : i32
    %c0_i32_0 = arith.constant 0 : i32
    return %c0_i32, %arg0 : i32, i32
  }
  func.func @transform_1(%arg0: i32) -> (i32, i32) {
    %c0_i32 = arith.constant 0 : i32
    %c0_i32_0 = arith.constant 0 : i32
    %c0_i32_1 = arith.constant 0 : i32
    return %c0_i32, %c0_i32_0 : i32, i32
  }
  func.func @transform_2(%arg0: i32) -> (i32, i32) {
    %c0_i32 = arith.constant 0 : i32
    %c0_i32_0 = arith.constant 0 : i32
    return %c0_i32, %arg0 : i32, i32
  }
  func.func @transform_3(%arg0: i32) -> (i32, i32, i32) {
    %c0_i32 = arith.constant 0 : i32
    %c0_i32_0 = arith.constant 0 : i32
    %c0_i32_1 = arith.constant 0 : i32
    return %arg0, %c0_i32, %c0_i32_0 : i32, i32, i32
  }
  func.func @transform_4(%arg0: i32) -> (i32, i32, i32) {
    %c0_i32 = arith.constant 0 : i32
    %c0_i32_0 = arith.constant 0 : i32
    %c0_i32_1 = arith.constant 0 : i32
    return %arg0, %c0_i32, %c0_i32_0 : i32, i32, i32
  }
}

module attributes {stable_mosaic.version = 11 : i64} {
  func.func @_gemm_kernel(%arg0: i32, %arg1: memref<16x64xbf16, #tpu.memory_space<vmem>>, %arg2: memref<64x16xbf16, #tpu.memory_space<vmem>>, %arg3: memref<64x64xf32, #tpu.memory_space<vmem>>, %arg4: memref<1x64x1xf32, #tpu.memory_space<vmem>>, %arg5: memref<1x64x1xf32, #tpu.memory_space<vmem>>) attributes {dimension_semantics = [#tpu.dimension_semantics<parallel>], iteration_bounds = array<i64: 1>, scalar_prefetch = 0 : i64, scratch_operands = 0 : i64, tpu.core_type = #tpu.core_type<tc>, window_params = [{transform_indices = @transform_0, window_bounds = array<i64: 16, 64>}, {pipeline_mode = #tpu.pipeline_mode<synchronous>, transform_indices = @transform_1, window_bounds = array<i64: 64, 16>}, {transform_indices = @transform_2, window_bounds = array<i64: 64, 64>}, {transform_indices = @transform_3, window_bounds = array<i64: 1, 64, 1>}, {transform_indices = @transform_4, window_bounds = array<i64: 1, 64, 1>}]} {
    %c0 = arith.constant 0 : index
    %c0_0 = arith.constant 0 : index
    %0 = vector.load %arg2[%c0, %c0_0] : memref<64x16xbf16, #tpu.memory_space<vmem>>, vector<64x16xbf16>
    %c0_1 = arith.constant 0 : index
    %c0_2 = arith.constant 0 : index
    %1 = vector.load %arg1[%c0_1, %c0_2] : memref<16x64xbf16, #tpu.memory_space<vmem>>, vector<16x64xbf16>
    %cst = arith.constant dense<0.000000e+00> : vector<64x64xf32>
    %2 = tpu.matmul %0, %1, %cst {dimension_numbers = #tpu.dot_dimension_numbers<[1], [0], [0], [1], [0, 0, 1, 1], [], []>} : vector<64x16xbf16>, vector<16x64xbf16>, vector<64x64xf32> -> vector<64x64xf32>
    %c0_3 = arith.constant 0 : index
    %c0_4 = arith.constant 0 : index
    %3 = vector.load %arg3[%c0_3, %c0_4] : memref<64x64xf32, #tpu.memory_space<vmem>>, vector<64x64xf32>
    tpu.vector_store %arg3[%c0_3, %c0_4], %2 {strides = array<i32>} : memref<64x64xf32, #tpu.memory_space<vmem>>, vector<64x64xf32>,
    %cst_5 = arith.constant dense<0.000000e+00> : vector<64xf32>
    %4 = vector.multi_reduction <add>, %2, %cst_5 [1] : vector<64x64xf32> to vector<64xf32>
    %5 = vector.shape_cast %4 : vector<64xf32> to vector<64x1xf32>
    %c0_6 = arith.constant 0 : index
    %c0_7 = arith.constant 0 : index
    %c0_8 = arith.constant 0 : index
    %6 = vector.load %arg4[%c0_6, %c0_7, %c0_8] : memref<1x64x1xf32, #tpu.memory_space<vmem>>, vector<1x64x1xf32>
    %7 = vector.shape_cast %6 : vector<1x64x1xf32> to vector<64x1xf32>
    %8 = vector.shape_cast %5 : vector<64x1xf32> to vector<1x64x1xf32>
    tpu.vector_store %arg4[%c0_6, %c0_7, %c0_8], %8 {strides = array<i32>} : memref<1x64x1xf32, #tpu.memory_space<vmem>>, vector<1x64x1xf32>,
    %9 = arith.mulf %2, %2 : vector<64x64xf32>
    %cst_9 = arith.constant dense<0.000000e+00> : vector<64xf32>
    %10 = vector.multi_reduction <add>, %9, %cst_9 [1] : vector<64x64xf32> to vector<64xf32>
    %11 = vector.shape_cast %10 : vector<64xf32> to vector<64x1xf32>
    %c0_10 = arith.constant 0 : index
    %c0_11 = arith.constant 0 : index
    %c0_12 = arith.constant 0 : index
    %12 = vector.load %arg5[%c0_10, %c0_11, %c0_12] : memref<1x64x1xf32, #tpu.memory_space<vmem>>, vector<1x64x1xf32>
    %13 = vector.shape_cast %12 : vector<1x64x1xf32> to vector<64x1xf32>
    %14 = vector.shape_cast %11 : vector<64x1xf32> to vector<1x64x1xf32>
    tpu.vector_store %arg5[%c0_10, %c0_11, %c0_12], %14 {strides = array<i32>} : memref<1x64x1xf32, #tpu.memory_space<vmem>>, vector<1x64x1xf32>,
    return
  }
  func.func @transform_0(%arg0: i32) -> (i32, i32) {
    %c0_i32 = arith.constant 0 : i32
    %c0_i32_0 = arith.constant 0 : i32
    return %c0_i32, %arg0 : i32, i32
  }
  func.func @transform_1(%arg0: i32) -> (i32, i32) {
    %c0_i32 = arith.constant 0 : i32
    %c0_i32_0 = arith.constant 0 : i32
    %c0_i32_1 = arith.constant 0 : i32
    return %c0_i32, %c0_i32_0 : i32, i32
  }
  func.func @transform_2(%arg0: i32) -> (i32, i32) {
    %c0_i32 = arith.constant 0 : i32
    %c0_i32_0 = arith.constant 0 : i32
    return %c0_i32, %arg0 : i32, i32
  }
  func.func @transform_3(%arg0: i32) -> (i32, i32, i32) {
    %c0_i32 = arith.constant 0 : i32
    %c0_i32_0 = arith.constant 0 : i32
    %c0_i32_1 = arith.constant 0 : i32
    return %arg0, %c0_i32, %c0_i32_0 : i32, i32, i32
  }
  func.func @transform_4(%arg0: i32) -> (i32, i32, i32) {
    %c0_i32 = arith.constant 0 : i32
    %c0_i32_0 = arith.constant 0 : i32
    %c0_i32_1 = arith.constant 0 : i32
    return %arg0, %c0_i32, %c0_i32_0 : i32, i32, i32
  }
}

module attributes {stable_mosaic.version = 11 : i64} {
  func.func @_affine_relu_kernel(%arg0: i32, %arg1: memref<16x512xf32, #tpu.memory_space<vmem>>, %arg2: memref<16x1xf32, #tpu.memory_space<vmem>>, %arg3: memref<16x1xf32, #tpu.memory_space<vmem>>, %arg4: memref<16x512xbf16, #tpu.memory_space<vmem>>) attributes {dimension_semantics = [#tpu.dimension_semantics<parallel>], iteration_bounds = array<i64: 1>, scalar_prefetch = 0 : i64, scratch_operands = 0 : i64, tpu.core_type = #tpu.core_type<tc>, window_params = [{transform_indices = @transform_0, window_bounds = array<i64: 16, 512>}, {pipeline_mode = #tpu.pipeline_mode<synchronous>, transform_indices = @transform_1, window_bounds = array<i64: 16, 1>}, {pipeline_mode = #tpu.pipeline_mode<synchronous>, transform_indices = @transform_2, window_bounds = array<i64: 16, 1>}, {transform_indices = @transform_3, window_bounds = array<i64: 16, 512>}]} {
    %c0 = arith.constant 0 : index
    %c0_0 = arith.constant 0 : index
    %0 = vector.load %arg1[%c0, %c0_0] : memref<16x512xf32, #tpu.memory_space<vmem>>, vector<16x512xf32>
    %c0_1 = arith.constant 0 : index
    %c0_2 = arith.constant 0 : index
    %1 = vector.load %arg2[%c0_1, %c0_2] : memref<16x1xf32, #tpu.memory_space<vmem>>, vector<16x1xf32>
    %2 = vector.broadcast %1 : vector<16x1xf32> to vector<16x512xf32>
    %3 = arith.mulf %0, %2 : vector<16x512xf32>
    %c0_3 = arith.constant 0 : index
    %c0_4 = arith.constant 0 : index
    %4 = vector.load %arg3[%c0_3, %c0_4] : memref<16x1xf32, #tpu.memory_space<vmem>>, vector<16x1xf32>
    %5 = vector.broadcast %4 : vector<16x1xf32> to vector<16x512xf32>
    %6 = arith.addf %3, %5 : vector<16x512xf32>
    %cst = arith.constant 0.000000e+00 : f32
    %7 = vector.broadcast %cst : f32 to vector<16x512xf32>
    %8 = arith.maximumf %6, %7 : vector<16x512xf32>
    %9 = arith.truncf %8 : vector<16x512xf32> to vector<16x512xbf16>
    %c0_5 = arith.constant 0 : index
    %c0_6 = arith.constant 0 : index
    %10 = vector.load %arg4[%c0_5, %c0_6] : memref<16x512xbf16, #tpu.memory_space<vmem>>, vector<16x512xbf16>
    tpu.vector_store %arg4[%c0_5, %c0_6], %9 {strides = array<i32>} : memref<16x512xbf16, #tpu.memory_space<vmem>>, vector<16x512xbf16>,
    return
  }
  func.func @transform_0(%arg0: i32) -> (i32, i32) {
    %c0_i32 = arith.constant 0 : i32
    %c0_i32_0 = arith.constant 0 : i32
    return %c0_i32, %arg0 : i32, i32
  }
  func.func @transform_1(%arg0: i32) -> (i32, i32) {
    %c0_i32 = arith.constant 0 : i32
    %c0_i32_0 = arith.constant 0 : i32
    %c0_i32_1 = arith.constant 0 : i32
    return %c0_i32, %c0_i32_0 : i32, i32
  }
  func.func @transform_2(%arg0: i32) -> (i32, i32) {
    %c0_i32 = arith.constant 0 : i32
    %c0_i32_0 = arith.constant 0 : i32
    %c0_i32_1 = arith.constant 0 : i32
    return %c0_i32, %c0_i32_0 : i32, i32
  }
  func.func @transform_3(%arg0: i32) -> (i32, i32) {
    %c0_i32 = arith.constant 0 : i32
    %c0_i32_0 = arith.constant 0 : i32
    return %c0_i32, %arg0 : i32, i32
  }
}

module attributes {stable_mosaic.version = 11 : i64} {
  func.func @_gemm_kernel(%arg0: i32, %arg1: memref<432x512xbf16, #tpu.memory_space<vmem>>, %arg2: memref<8x432xbf16, #tpu.memory_space<vmem>>, %arg3: memref<8x512xf32, #tpu.memory_space<vmem>>, %arg4: memref<1x8x1xf32, #tpu.memory_space<vmem>>, %arg5: memref<1x8x1xf32, #tpu.memory_space<vmem>>) attributes {dimension_semantics = [#tpu.dimension_semantics<parallel>], iteration_bounds = array<i64: 1>, scalar_prefetch = 0 : i64, scratch_operands = 0 : i64, tpu.core_type = #tpu.core_type<tc>, window_params = [{transform_indices = @transform_0, window_bounds = array<i64: 432, 512>}, {pipeline_mode = #tpu.pipeline_mode<synchronous>, transform_indices = @transform_1, window_bounds = array<i64: 8, 432>}, {transform_indices = @transform_2, window_bounds = array<i64: 8, 512>}, {transform_indices = @transform_3, window_bounds = array<i64: 1, 8, 1>}, {transform_indices = @transform_4, window_bounds = array<i64: 1, 8, 1>}]} {
    %c0 = arith.constant 0 : index
    %c0_0 = arith.constant 0 : index
    %0 = vector.load %arg2[%c0, %c0_0] : memref<8x432xbf16, #tpu.memory_space<vmem>>, vector<8x432xbf16>
    %c0_1 = arith.constant 0 : index
    %c0_2 = arith.constant 0 : index
    %1 = vector.load %arg1[%c0_1, %c0_2] : memref<432x512xbf16, #tpu.memory_space<vmem>>, vector<432x512xbf16>
    %cst = arith.constant dense<0.000000e+00> : vector<8x512xf32>
    %2 = tpu.matmul %0, %1, %cst {dimension_numbers = #tpu.dot_dimension_numbers<[1], [0], [0], [1], [0, 0, 1, 1], [], []>} : vector<8x432xbf16>, vector<432x512xbf16>, vector<8x512xf32> -> vector<8x512xf32>
    %c0_3 = arith.constant 0 : index
    %c0_4 = arith.constant 0 : index
    %3 = vector.load %arg3[%c0_3, %c0_4] : memref<8x512xf32, #tpu.memory_space<vmem>>, vector<8x512xf32>
    tpu.vector_store %arg3[%c0_3, %c0_4], %2 {strides = array<i32>} : memref<8x512xf32, #tpu.memory_space<vmem>>, vector<8x512xf32>,
    %cst_5 = arith.constant dense<0.000000e+00> : vector<8xf32>
    %4 = vector.multi_reduction <add>, %2, %cst_5 [1] : vector<8x512xf32> to vector<8xf32>
    %5 = vector.shape_cast %4 : vector<8xf32> to vector<8x1xf32>
    %c0_6 = arith.constant 0 : index
    %c0_7 = arith.constant 0 : index
    %c0_8 = arith.constant 0 : index
    %6 = vector.load %arg4[%c0_6, %c0_7, %c0_8] : memref<1x8x1xf32, #tpu.memory_space<vmem>>, vector<1x8x1xf32>
    %7 = vector.shape_cast %6 : vector<1x8x1xf32> to vector<8x1xf32>
    %8 = vector.shape_cast %5 : vector<8x1xf32> to vector<1x8x1xf32>
    tpu.vector_store %arg4[%c0_6, %c0_7, %c0_8], %8 {strides = array<i32>} : memref<1x8x1xf32, #tpu.memory_space<vmem>>, vector<1x8x1xf32>,
    %9 = arith.mulf %2, %2 : vector<8x512xf32>
    %cst_9 = arith.constant dense<0.000000e+00> : vector<8xf32>
    %10 = vector.multi_reduction <add>, %9, %cst_9 [1] : vector<8x512xf32> to vector<8xf32>
    %11 = vector.shape_cast %10 : vector<8xf32> to vector<8x1xf32>
    %c0_10 = arith.constant 0 : index
    %c0_11 = arith.constant 0 : index
    %c0_12 = arith.constant 0 : index
    %12 = vector.load %arg5[%c0_10, %c0_11, %c0_12] : memref<1x8x1xf32, #tpu.memory_space<vmem>>, vector<1x8x1xf32>
    %13 = vector.shape_cast %12 : vector<1x8x1xf32> to vector<8x1xf32>
    %14 = vector.shape_cast %11 : vector<8x1xf32> to vector<1x8x1xf32>
    tpu.vector_store %arg5[%c0_10, %c0_11, %c0_12], %14 {strides = array<i32>} : memref<1x8x1xf32, #tpu.memory_space<vmem>>, vector<1x8x1xf32>,
    return
  }
  func.func @transform_0(%arg0: i32) -> (i32, i32) {
    %c0_i32 = arith.constant 0 : i32
    %c0_i32_0 = arith.constant 0 : i32
    return %c0_i32, %arg0 : i32, i32
  }
  func.func @transform_1(%arg0: i32) -> (i32, i32) {
    %c0_i32 = arith.constant 0 : i32
    %c0_i32_0 = arith.constant 0 : i32
    %c0_i32_1 = arith.constant 0 : i32
    return %c0_i32, %c0_i32_0 : i32, i32
  }
  func.func @transform_2(%arg0: i32) -> (i32, i32) {
    %c0_i32 = arith.constant 0 : i32
    %c0_i32_0 = arith.constant 0 : i32
    return %c0_i32, %arg0 : i32, i32
  }
  func.func @transform_3(%arg0: i32) -> (i32, i32, i32) {
    %c0_i32 = arith.constant 0 : i32
    %c0_i32_0 = arith.constant 0 : i32
    %c0_i32_1 = arith.constant 0 : i32
    return %arg0, %c0_i32, %c0_i32_0 : i32, i32, i32
  }
  func.func @transform_4(%arg0: i32) -> (i32, i32, i32) {
    %c0_i32 = arith.constant 0 : i32
    %c0_i32_0 = arith.constant 0 : i32
    %c0_i32_1 = arith.constant 0 : i32
    return %arg0, %c0_i32, %c0_i32_0 : i32, i32, i32
  }
}

module attributes {stable_mosaic.version = 11 : i64} {
  func.func @_gemm_kernel(%arg0: i32, %arg1: memref<216x512xbf16, #tpu.memory_space<vmem>>, %arg2: memref<8x216xbf16, #tpu.memory_space<vmem>>, %arg3: memref<16x512xbf16, #tpu.memory_space<vmem>>, %arg4: memref<8x16xbf16, #tpu.memory_space<vmem>>, %arg5: memref<8x512xf32, #tpu.memory_space<vmem>>, %arg6: memref<1x8x1xf32, #tpu.memory_space<vmem>>, %arg7: memref<1x8x1xf32, #tpu.memory_space<vmem>>) attributes {dimension_semantics = [#tpu.dimension_semantics<parallel>], iteration_bounds = array<i64: 1>, scalar_prefetch = 0 : i64, scratch_operands = 0 : i64, tpu.core_type = #tpu.core_type<tc>, window_params = [{transform_indices = @transform_0, window_bounds = array<i64: 216, 512>}, {pipeline_mode = #tpu.pipeline_mode<synchronous>, transform_indices = @transform_1, window_bounds = array<i64: 8, 216>}, {transform_indices = @transform_2, window_bounds = array<i64: 16, 512>}, {pipeline_mode = #tpu.pipeline_mode<synchronous>, transform_indices = @transform_3, window_bounds = array<i64: 8, 16>}, {transform_indices = @transform_4, window_bounds = array<i64: 8, 512>}, {transform_indices = @transform_5, window_bounds = array<i64: 1, 8, 1>}, {transform_indices = @transform_6, window_bounds = array<i64: 1, 8, 1>}]} {
    %c0 = arith.constant 0 : index
    %c0_0 = arith.constant 0 : index
    %0 = vector.load %arg2[%c0, %c0_0] : memref<8x216xbf16, #tpu.memory_space<vmem>>, vector<8x216xbf16>
    %c0_1 = arith.constant 0 : index
    %c0_2 = arith.constant 0 : index
    %1 = vector.load %arg1[%c0_1, %c0_2] : memref<216x512xbf16, #tpu.memory_space<vmem>>, vector<216x512xbf16>
    %cst = arith.constant dense<0.000000e+00> : vector<8x512xf32>
    %2 = tpu.matmul %0, %1, %cst {dimension_numbers = #tpu.dot_dimension_numbers<[1], [0], [0], [1], [0, 0, 1, 1], [], []>} : vector<8x216xbf16>, vector<216x512xbf16>, vector<8x512xf32> -> vector<8x512xf32>
    %c0_3 = arith.constant 0 : index
    %c0_4 = arith.constant 0 : index
    %3 = vector.load %arg4[%c0_3, %c0_4] : memref<8x16xbf16, #tpu.memory_space<vmem>>, vector<8x16xbf16>
    %c0_5 = arith.constant 0 : index
    %c0_6 = arith.constant 0 : index
    %4 = vector.load %arg3[%c0_5, %c0_6] : memref<16x512xbf16, #tpu.memory_space<vmem>>, vector<16x512xbf16>
    %cst_7 = arith.constant dense<0.000000e+00> : vector<8x512xf32>
    %5 = tpu.matmul %3, %4, %cst_7 {dimension_numbers = #tpu.dot_dimension_numbers<[1], [0], [0], [1], [0, 0, 1, 1], [], []>} : vector<8x16xbf16>, vector<16x512xbf16>, vector<8x512xf32> -> vector<8x512xf32>
    %6 = arith.addf %2, %5 : vector<8x512xf32>
    %c0_8 = arith.constant 0 : index
    %c0_9 = arith.constant 0 : index
    %7 = vector.load %arg5[%c0_8, %c0_9] : memref<8x512xf32, #tpu.memory_space<vmem>>, vector<8x512xf32>
    tpu.vector_store %arg5[%c0_8, %c0_9], %6 {strides = array<i32>} : memref<8x512xf32, #tpu.memory_space<vmem>>, vector<8x512xf32>,
    %cst_10 = arith.constant dense<0.000000e+00> : vector<8xf32>
    %8 = vector.multi_reduction <add>, %6, %cst_10 [1] : vector<8x512xf32> to vector<8xf32>
    %9 = vector.shape_cast %8 : vector<8xf32> to vector<8x1xf32>
    %c0_11 = arith.constant 0 : index
    %c0_12 = arith.constant 0 : index
    %c0_13 = arith.constant 0 : index
    %10 = vector.load %arg6[%c0_11, %c0_12, %c0_13] : memref<1x8x1xf32, #tpu.memory_space<vmem>>, vector<1x8x1xf32>
    %11 = vector.shape_cast %10 : vector<1x8x1xf32> to vector<8x1xf32>
    %12 = vector.shape_cast %9 : vector<8x1xf32> to vector<1x8x1xf32>
    tpu.vector_store %arg6[%c0_11, %c0_12, %c0_13], %12 {strides = array<i32>} : memref<1x8x1xf32, #tpu.memory_space<vmem>>, vector<1x8x1xf32>,
    %13 = arith.mulf %6, %6 : vector<8x512xf32>
    %cst_14 = arith.constant dense<0.000000e+00> : vector<8xf32>
    %14 = vector.multi_reduction <add>, %13, %cst_14 [1] : vector<8x512xf32> to vector<8xf32>
    %15 = vector.shape_cast %14 : vector<8xf32> to vector<8x1xf32>
    %c0_15 = arith.constant 0 : index
    %c0_16 = arith.constant 0 : index
    %c0_17 = arith.constant 0 : index
    %16 = vector.load %arg7[%c0_15, %c0_16, %c0_17] : memref<1x8x1xf32, #tpu.memory_space<vmem>>, vector<1x8x1xf32>
    %17 = vector.shape_cast %16 : vector<1x8x1xf32> to vector<8x1xf32>
    %18 = vector.shape_cast %15 : vector<8x1xf32> to vector<1x8x1xf32>
    tpu.vector_store %arg7[%c0_15, %c0_16, %c0_17], %18 {strides = array<i32>} : memref<1x8x1xf32, #tpu.memory_space<vmem>>, vector<1x8x1xf32>,
    return
  }
  func.func @transform_0(%arg0: i32) -> (i32, i32) {
    %c0_i32 = arith.constant 0 : i32
    %c0_i32_0 = arith.constant 0 : i32
    return %c0_i32, %arg0 : i32, i32
  }
  func.func @transform_1(%arg0: i32) -> (i32, i32) {
    %c0_i32 = arith.constant 0 : i32
    %c0_i32_0 = arith.constant 0 : i32
    %c0_i32_1 = arith.constant 0 : i32
    return %c0_i32, %c0_i32_0 : i32, i32
  }
  func.func @transform_2(%arg0: i32) -> (i32, i32) {
    %c0_i32 = arith.constant 0 : i32
    %c0_i32_0 = arith.constant 0 : i32
    return %c0_i32, %arg0 : i32, i32
  }
  func.func @transform_3(%arg0: i32) -> (i32, i32) {
    %c0_i32 = arith.constant 0 : i32
    %c0_i32_0 = arith.constant 0 : i32
    %c0_i32_1 = arith.constant 0 : i32
    return %c0_i32, %c0_i32_0 : i32, i32
  }
  func.func @transform_4(%arg0: i32) -> (i32, i32) {
    %c0_i32 = arith.constant 0 : i32
    %c0_i32_0 = arith.constant 0 : i32
    return %c0_i32, %arg0 : i32, i32
  }
  func.func @transform_5(%arg0: i32) -> (i32, i32, i32) {
    %c0_i32 = arith.constant 0 : i32
    %c0_i32_0 = arith.constant 0 : i32
    %c0_i32_1 = arith.constant 0 : i32
    return %arg0, %c0_i32, %c0_i32_0 : i32, i32, i32
  }
  func.func @transform_6(%arg0: i32) -> (i32, i32, i32) {
    %c0_i32 = arith.constant 0 : i32
    %c0_i32_0 = arith.constant 0 : i32
    %c0_i32_1 = arith.constant 0 : i32
    return %arg0, %c0_i32, %c0_i32_0 : i32, i32, i32
  }
}

module attributes {stable_mosaic.version = 11 : i64} {
  func.func @_gemm_kernel(%arg0: i32, %arg1: memref<216x512xbf16, #tpu.memory_space<vmem>>, %arg2: memref<8x216xbf16, #tpu.memory_space<vmem>>, %arg3: memref<8x512xf32, #tpu.memory_space<vmem>>, %arg4: memref<8x512xf32, #tpu.memory_space<vmem>>, %arg5: memref<1x8x1xf32, #tpu.memory_space<vmem>>, %arg6: memref<1x8x1xf32, #tpu.memory_space<vmem>>) attributes {dimension_semantics = [#tpu.dimension_semantics<parallel>], iteration_bounds = array<i64: 1>, scalar_prefetch = 0 : i64, scratch_operands = 0 : i64, tpu.core_type = #tpu.core_type<tc>, window_params = [{transform_indices = @transform_0, window_bounds = array<i64: 216, 512>}, {pipeline_mode = #tpu.pipeline_mode<synchronous>, transform_indices = @transform_1, window_bounds = array<i64: 8, 216>}, {transform_indices = @transform_2, window_bounds = array<i64: 8, 512>}, {transform_indices = @transform_3, window_bounds = array<i64: 8, 512>}, {transform_indices = @transform_4, window_bounds = array<i64: 1, 8, 1>}, {transform_indices = @transform_5, window_bounds = array<i64: 1, 8, 1>}]} {
    %c0 = arith.constant 0 : index
    %c0_0 = arith.constant 0 : index
    %0 = vector.load %arg2[%c0, %c0_0] : memref<8x216xbf16, #tpu.memory_space<vmem>>, vector<8x216xbf16>
    %c0_1 = arith.constant 0 : index
    %c0_2 = arith.constant 0 : index
    %1 = vector.load %arg1[%c0_1, %c0_2] : memref<216x512xbf16, #tpu.memory_space<vmem>>, vector<216x512xbf16>
    %cst = arith.constant dense<0.000000e+00> : vector<8x512xf32>
    %2 = tpu.matmul %0, %1, %cst {dimension_numbers = #tpu.dot_dimension_numbers<[1], [0], [0], [1], [0, 0, 1, 1], [], []>} : vector<8x216xbf16>, vector<216x512xbf16>, vector<8x512xf32> -> vector<8x512xf32>
    %c0_3 = arith.constant 0 : index
    %c0_4 = arith.constant 0 : index
    %3 = vector.load %arg3[%c0_3, %c0_4] : memref<8x512xf32, #tpu.memory_space<vmem>>, vector<8x512xf32>
    %4 = arith.addf %2, %3 : vector<8x512xf32>
    %c0_5 = arith.constant 0 : index
    %c0_6 = arith.constant 0 : index
    %5 = vector.load %arg4[%c0_5, %c0_6] : memref<8x512xf32, #tpu.memory_space<vmem>>, vector<8x512xf32>
    tpu.vector_store %arg4[%c0_5, %c0_6], %4 {strides = array<i32>} : memref<8x512xf32, #tpu.memory_space<vmem>>, vector<8x512xf32>,
    %cst_7 = arith.constant dense<0.000000e+00> : vector<8xf32>
    %6 = vector.multi_reduction <add>, %4, %cst_7 [1] : vector<8x512xf32> to vector<8xf32>
    %7 = vector.shape_cast %6 : vector<8xf32> to vector<8x1xf32>
    %c0_8 = arith.constant 0 : index
    %c0_9 = arith.constant 0 : index
    %c0_10 = arith.constant 0 : index
    %8 = vector.load %arg5[%c0_8, %c0_9, %c0_10] : memref<1x8x1xf32, #tpu.memory_space<vmem>>, vector<1x8x1xf32>
    %9 = vector.shape_cast %8 : vector<1x8x1xf32> to vector<8x1xf32>
    %10 = vector.shape_cast %7 : vector<8x1xf32> to vector<1x8x1xf32>
    tpu.vector_store %arg5[%c0_8, %c0_9, %c0_10], %10 {strides = array<i32>} : memref<1x8x1xf32, #tpu.memory_space<vmem>>, vector<1x8x1xf32>,
    %11 = arith.mulf %4, %4 : vector<8x512xf32>
    %cst_11 = arith.constant dense<0.000000e+00> : vector<8xf32>
    %12 = vector.multi_reduction <add>, %11, %cst_11 [1] : vector<8x512xf32> to vector<8xf32>
    %13 = vector.shape_cast %12 : vector<8xf32> to vector<8x1xf32>
    %c0_12 = arith.constant 0 : index
    %c0_13 = arith.constant 0 : index
    %c0_14 = arith.constant 0 : index
    %14 = vector.load %arg6[%c0_12, %c0_13, %c0_14] : memref<1x8x1xf32, #tpu.memory_space<vmem>>, vector<1x8x1xf32>
    %15 = vector.shape_cast %14 : vector<1x8x1xf32> to vector<8x1xf32>
    %16 = vector.shape_cast %13 : vector<8x1xf32> to vector<1x8x1xf32>
    tpu.vector_store %arg6[%c0_12, %c0_13, %c0_14], %16 {strides = array<i32>} : memref<1x8x1xf32, #tpu.memory_space<vmem>>, vector<1x8x1xf32>,
    return
  }
  func.func @transform_0(%arg0: i32) -> (i32, i32) {
    %c0_i32 = arith.constant 0 : i32
    %c0_i32_0 = arith.constant 0 : i32
    return %c0_i32, %arg0 : i32, i32
  }
  func.func @transform_1(%arg0: i32) -> (i32, i32) {
    %c0_i32 = arith.constant 0 : i32
    %c0_i32_0 = arith.constant 0 : i32
    %c0_i32_1 = arith.constant 0 : i32
    return %c0_i32, %c0_i32_0 : i32, i32
  }
  func.func @transform_2(%arg0: i32) -> (i32, i32) {
    %c0_i32 = arith.constant 0 : i32
    %c0_i32_0 = arith.constant 0 : i32
    return %c0_i32, %arg0 : i32, i32
  }
  func.func @transform_3(%arg0: i32) -> (i32, i32) {
    %c0_i32 = arith.constant 0 : i32
    %c0_i32_0 = arith.constant 0 : i32
    return %c0_i32, %arg0 : i32, i32
  }
  func.func @transform_4(%arg0: i32) -> (i32, i32, i32) {
    %c0_i32 = arith.constant 0 : i32
    %c0_i32_0 = arith.constant 0 : i32
    %c0_i32_1 = arith.constant 0 : i32
    return %arg0, %c0_i32, %c0_i32_0 : i32, i32, i32
  }
  func.func @transform_5(%arg0: i32) -> (i32, i32, i32) {
    %c0_i32 = arith.constant 0 : i32
    %c0_i32_0 = arith.constant 0 : i32
    %c0_i32_1 = arith.constant 0 : i32
    return %arg0, %c0_i32, %c0_i32_0 : i32, i32, i32
  }
}

</mosaic_0001>

<bundles_post_ra>
// kernel: run.30
= control target key start
LH: loop header
LB: loop body
LE: loop exit
PB: predicated region body
PF: predicated region fallthrough
CT: control target
= control target key end

     0   :  { %v52_v0 = vmov 0   ;;  %s97_s1 = inlined_call_operand.vmem [shape: f32[8,1], index: 1, kind: input, shape index: {}]   ;;  %s98_s2 = inlined_call_operand.vmem [shape: f32[8,1], index: 2, kind: input, shape index: {}]   ;;  %s99_s0 = inlined_call_operand.vmem [shape: f32[8,512], index: 0, kind: input, shape index: {}]   ;;  %s100_s3 = inlined_call_operand.vmem [shape: bf16[8,512], index: 3, kind: output, shape index: {}]  }
   0x1   :  { %51 = vset.pattern.permute.xlu0 %v52_v0  ;;  %v18_v1 = vld [vmem:[%s97_s1] sm:$0xff]  ;;  %v15_v5 = vld [vmem:[%s99_s0 + $0x8] sm:$0xff]  ;;  %v16_v6 = vld [vmem:[%s99_s0 + $0x10] sm:$0xff] }
   0x2   :  { %21 = vperm.xlu0 %51, %v18_v1   ;;  %v28_v2 = vld [vmem:[%s98_s2] sm:$0xff]  ;;  %v17_v7 = vld [vmem:[%s99_s0 + $0x18] sm:$0xff] }
   0x3   :  { %v14_v4 = vld [vmem:[%s99_s0] sm:$0xff] }
   0xa   :  { %31 = vperm.xlu0 %51, %v28_v2  }
  0x74   :  { %v22_v3 = vpop.permute.xlu0 %21 }
  0x75   :  { %v24_v8 = vmul.f32 %v22_v3, %v14_v4  ;;  %v25_v9 = vmul.f32 %v22_v3, %v15_v5  ;;  %v26_v10 = vmul.f32 %v22_v3, %v16_v6  ;;  %v27_v11 = vmul.f32 %v22_v3, %v17_v7 }
  0x7c   :  { %v32_v12 = vpop.permute.xlu0 %31 }
  0x7d   :  { %v34_v13 = vadd.f32 %v32_v12, %v24_v8  ;;  %v35_v14 = vadd.f32 %v32_v12, %v25_v9  ;;  %v36_v15 = vadd.f32 %v32_v12, %v26_v10  ;;  %v37_v16 = vadd.f32 %v32_v12, %v27_v11 }
  0x7f   :  { %v38_v17 = vmax.f32 %v34_v13, 0.0  ;;  %v39_v18 = vmax.f32 %v35_v14, 0.0  ;;  %v40_v19 = vmax.f32 %v36_v15, 0.0  ;;  %v41_v20 = vmax.f32 %v37_v16, 0.0 }
  0x81   :  { %v42_v21 = vpack.c.bf16 %v39_v18, %v38_v17  ;;  %v43_v22 = vpack.c.bf16 %v41_v20, %v40_v19 }
  0x83   :  { %44 = vst [vmem:[%s100_s3] sm:$0xff] %v42_v21 }
  0x84   :  { %45 = vst [vmem:[%s100_s3 + $0x8] sm:$0xff] %v43_v22 }

// kernel: run.29
= control target key start
LH: loop header
LB: loop body
LE: loop exit
PB: predicated region body
PF: predicated region fallthrough
CT: control target
= control target key end

     0   :  { %vm19_vm0 = vcmask 7168   ;;  %s72_s0 = inlined_call_operand.vmem [shape: f32[8,512], index: 0, kind: input, shape index: {}]   ;;  %s73_s1 = inlined_call_operand.vmem [shape: f32[1,8,1], index: 1, kind: output, shape index: {0}]   ;;  %s74_s2 = inlined_call_operand.vmem [shape: f32[1,8,1], index: 2, kind: output, shape index: {1}]  }
   0x1   :  { %v10_v0 = vld [vmem:[%s72_s0] sm:$0xff]  ;;  %v11_v1 = vld [vmem:[%s72_s0 + $0x8] sm:$0xff]  ;;  %v12_v2 = vld [vmem:[%s72_s0 + $0x10] sm:$0xff] }
   0x2   :  { %v14_v3 = vadd.f32 %v11_v1, %v10_v0  ;;  %v21_v4 = vmul.f32 %v10_v0, %v10_v0  ;;  %v22_v5 = vmul.f32 %v11_v1, %v11_v1  ;;  %v13_v6 = vld [vmem:[%s72_s0 + $0x18] sm:$0xff]  ;;  %v23_v8 = vmul.f32 %v12_v2, %v12_v2 }
   0x3   :  { %v24_v11 = vmul.f32 %v13_v6, %v13_v6 }
   0x4   :  { %v15_v7 = vadd.f32 %v14_v3, %v12_v2  ;;  %v25_v9 = vadd.f32 %v22_v5, %v21_v4 }
   0x6   :  { %v16_v10 = vadd.f32 %v15_v7, %v13_v6  ;;  %v26_v12 = vadd.f32 %v25_v9, %v23_v8 }
   0x8   :  { %17 = vadd.xlane.f32.xlu0 %v16_v10  ;;  %v27_v13 = vadd.f32 %v26_v12, %v24_v11 }
  0x10   :  { %28 = vadd.xlane.f32.xlu0 %v27_v13 }
  0x7b   :  { %v18_v14 = vpop.xlane.xlu0 %17 }
  0x7c   :  { %20 = vst.msk [vmem:[%s73_s1] sm:$0xff] %vm19_vm0, %v18_v14 }
  0x83   :  { %v29_v15 = vpop.xlane.xlu0 %28 }
  0x84   :  { %30 = vst.msk [vmem:[%s74_s2] sm:$0xff] %vm19_vm0, %v29_v15 }

// kernel: run.33
= control target key start
LH: loop header
LB: loop body
LE: loop exit
PB: predicated region body
PF: predicated region fallthrough
CT: control target
= control target key end

     0   :  { %vm357_vm0 = vcmask 1043456   ;;  %vm353_vm1 = vcmask 719872   ;;  %vm483_vm2 = vcmask 7168   ;;  %s1172_s0 = inlined_call_operand.vmem [shape: bf16[216,512], index: 0, kind: input, shape index: {}]   ;;  %s1173_s1 = inlined_call_operand.vmem [shape: bf16[8,216], index: 1, kind: input, shape index: {}]   ;;  %s1174_s2 = inlined_call_operand.vmem [shape: f32[8,512], index: 2, kind: input, shape index: {}]   ;;  %s1175_s3 = inlined_call_operand.vmem [shape: f32[8,512], index: 3, kind: output, shape index: {0}]   ;;  %s1176_s4 = inlined_call_operand.vmem [shape: f32[1,8,1], index: 4, kind: output, shape index: {1}]   ;;  %s1177_s5 = inlined_call_operand.vmem [shape: f32[1,8,1], index: 5, kind: output, shape index: {2}]  }
   0x1   :  { %v621_v0 = vld [vmem:[%s1172_s0 + $0xe0] sm:$0xf]  ;;  %v749_v1 = vld [vmem:[%s1172_s0 + $0xec] sm:$0xf0]  ;;  %v747_v2 = vld [vmem:[%s1172_s0 + $0xe4] sm:$0xf] }
   0x2   :  { %v622_v3 = vor.u32 %v749_v1, %v621_v0  ;;  %v623_v4 = vld [vmem:[%s1172_s0 + $0xf0] sm:$0xf0]  ;;  %v71_v5 = vld [vmem:[%s1172_s0 + $0x1a0] sm:$0xff]  ;;  %v745_v10 = vld [vmem:[%s1172_s0 + $0xcc] sm:$0xf0] }
   0x3   :  { %v605_v6 = vld [vmem:[%s1172_s0 + $0xc0] sm:$0xf]  ;;  %v626_v7 = vor.u32 %v747_v2, %v623_v4  ;;  %v241_v8 = vunpack.c.l.b16 %v71_v5  ;;  %v242_v9 = vunpack.c.h.b16 %v71_v5  ;;  %v743_v11 = vld [vmem:[%s1172_s0 + $0xc4] sm:$0xf]  ;;  %v607_v12 = vld [vmem:[%s1172_s0 + $0xd0] sm:$0xf0] }
   0x4   :  { %370 = vmatpush.bf16.msra.mxu0 %v622_v3  ;;  %v701_v13 = vld [vmem:[%s1172_s0 + $0x180] sm:$0xf]  ;;  %v769_v14 = vld [vmem:[%s1172_s0 + $0x18c] sm:$0xf0]  ;;  %v606_v17 = vor.u32 %v745_v10, %v605_v6  ;;  %v610_v18 = vor.u32 %v743_v11, %v607_v12  ;;  %v767_v19 = vld [vmem:[%s1172_s0 + $0x184] sm:$0xf] }
   0x5   :  { %396 = vmatpush.bf16.msra.mxu2 %v626_v7  ;;  %v297_v15 = vpack.c.b16 %v241_v8, %v241_v8  ;;  %v298_v16 = vpack.c.b16 %v242_v9, %v242_v9  ;;  %v703_v20 = vld [vmem:[%s1172_s0 + $0x190] sm:$0xf0]  ;;  %v589_v21 = vld [vmem:[%s1172_s0 + $0xa0] sm:$0xf]  ;;  %v741_v22 = vld [vmem:[%s1172_s0 + $0xac] sm:$0xf0]  ;;  %v702_v27 = vor.u32 %v769_v14, %v701_v13 }
   0x6   :  { %v739_v23 = vld [vmem:[%s1172_s0 + $0xa4] sm:$0xf]  ;;  %v591_v24 = vld [vmem:[%s1172_s0 + $0xb0] sm:$0xf0]  ;;  %v706_v28 = vor.u32 %v767_v19, %v703_v20  ;;  %v685_v29 = vld [vmem:[%s1172_s0 + $0x160] sm:$0xf]  ;;  %v590_v31 = vor.u32 %v741_v22, %v589_v21 }
   0x7   :  { %v359_v25 = vsel %vm357_vm0, %v297_v15, 0  ;;  %v362_v26 = vsel %vm357_vm0, %v298_v16, 0  ;;  %v765_v30 = vld [vmem:[%s1172_s0 + $0x16c] sm:$0xf0]  ;;  %v594_v32 = vor.u32 %v739_v23, %v591_v24  ;;  %v763_v33 = vld [vmem:[%s1172_s0 + $0x164] sm:$0xf] }
   0x8   :  { %385 = vmatpush.bf16.msra.mxu1 %v359_v25  ;;  %411 = vmatpush.bf16.msra.mxu3 %v362_v26  ;;  %v687_v34 = vld [vmem:[%s1172_s0 + $0x170] sm:$0xf0]  ;;  %v573_v35 = vld [vmem:[%s1172_s0 + $0x80] sm:$0xf]  ;;  %v737_v36 = vld [vmem:[%s1172_s0 + $0x8c] sm:$0xf0]  ;;  %v686_v39 = vor.u32 %v765_v30, %v685_v29 }
   0x9   :  { %371 = vmatpush.bf16.msra.mxu0 %v606_v17  ;;  %397 = vmatpush.bf16.msra.mxu2 %v610_v18  ;;  %v735_v37 = vld [vmem:[%s1172_s0 + $0x84] sm:$0xf]  ;;  %v575_v38 = vld [vmem:[%s1172_s0 + $0x90] sm:$0xf0]  ;;  %v690_v40 = vor.u32 %v763_v33, %v687_v34  ;;  %v669_v41 = vld [vmem:[%s1172_s0 + $0x140] sm:$0xf]  ;;  %v574_v43 = vor.u32 %v737_v36, %v573_v35 }
   0xa   :  { %v761_v42 = vld [vmem:[%s1172_s0 + $0x14c] sm:$0xf0]  ;;  %v578_v44 = vor.u32 %v735_v37, %v575_v38  ;;  %v759_v45 = vld [vmem:[%s1172_s0 + $0x144] sm:$0xf]  ;;  %v671_v46 = vld [vmem:[%s1172_s0 + $0x150] sm:$0xf0] }
   0xb   :  { %v557_v47 = vld [vmem:[%s1172_s0 + $0x60] sm:$0xf]  ;;  %v733_v48 = vld [vmem:[%s1172_s0 + $0x6c] sm:$0xf0]  ;;  %v731_v49 = vld [vmem:[%s1172_s0 + $0x64] sm:$0xf]  ;;  %v670_v51 = vor.u32 %v761_v42, %v669_v41  ;;  %v674_v52 = vor.u32 %v759_v45, %v671_v46 }
   0xc   :  { %386 = vmatpush.bf16.msra.mxu1 %v702_v27  ;;  %412 = vmatpush.bf16.msra.mxu3 %v706_v28  ;;  %v559_v50 = vld [vmem:[%s1172_s0 + $0x70] sm:$0xf0]  ;;  %v653_v53 = vld [vmem:[%s1172_s0 + $0x120] sm:$0xf]  ;;  %v757_v54 = vld [vmem:[%s1172_s0 + $0x12c] sm:$0xf0]  ;;  %v558_v56 = vor.u32 %v733_v48, %v557_v47 }
   0xd   :  { %372 = vmatpush.bf16.msra.mxu0 %v590_v31  ;;  %398 = vmatpush.bf16.msra.mxu2 %v594_v32  ;;  %v755_v55 = vld [vmem:[%s1172_s0 + $0x124] sm:$0xf]  ;;  %v562_v57 = vor.u32 %v731_v49, %v559_v50  ;;  %v655_v58 = vld [vmem:[%s1172_s0 + $0x130] sm:$0xf0]  ;;  %v541_v59 = vld [vmem:[%s1172_s0 + $0x40] sm:$0xf]  ;;  %v654_v1 = vor.u32 %v757_v54, %v653_v53 }
   0xe   :  { %v729_v60 = vld [vmem:[%s1172_s0 + $0x4c] sm:$0xf0]  ;;  %v727_v61 = vld [vmem:[%s1172_s0 + $0x44] sm:$0xf]  ;;  %v543_v62 = vld [vmem:[%s1172_s0 + $0x50] sm:$0xf0]  ;;  %v658_v2 = vor.u32 %v755_v55, %v655_v58 }
   0xf   :  { %v72_v63 = vld [vmem:[%s1172_s0 + $0x1a8] sm:$0xff]  ;;  %v637_v3 = vld [vmem:[%s1172_s0 + $0x100] sm:$0xf]  ;;  %v753_v4 = vld [vmem:[%s1172_s0 + $0x10c] sm:$0xf0]  ;;  %v542_v6 = vor.u32 %v729_v60, %v541_v59  ;;  %v546_v7 = vor.u32 %v727_v61, %v543_v62 }
  0x10   :  { %387 = vmatpush.bf16.msra.mxu1 %v686_v39  ;;  %413 = vmatpush.bf16.msra.mxu3 %v690_v40  ;;  %v243_v0 = vunpack.c.l.b16 %v72_v63  ;;  %v751_v5 = vld [vmem:[%s1172_s0 + $0x104] sm:$0xf]  ;;  %v639_v8 = vld [vmem:[%s1172_s0 + $0x110] sm:$0xf0]  ;;  %v525_v9 = vld [vmem:[%s1172_s0 + $0x20] sm:$0xf]  ;;  %v244_v13 = vunpack.c.h.b16 %v72_v63  ;;  %v638_v19 = vor.u32 %v753_v4, %v637_v3 }
  0x11   :  { %373 = vmatpush.bf16.msra.mxu0 %v574_v43  ;;  %399 = vmatpush.bf16.msra.mxu2 %v578_v44  ;;  %v725_v10 = vld [vmem:[%s1172_s0 + $0x2c] sm:$0xf0]  ;;  %v723_v11 = vld [vmem:[%s1172_s0 + $0x24] sm:$0xf]  ;;  %v527_v12 = vld [vmem:[%s1172_s0 + $0x30] sm:$0xf0]  ;;  %v642_v20 = vor.u32 %v751_v5, %v639_v8 }
  0x12   :  { %v18_v14 = vld [vmem:[%s1173_s1] sm:$0xff]  ;;  %v629_v15 = vld [vmem:[%s1172_s0 + $0xe8] sm:$0xf]  ;;  %v750_v16 = vld [vmem:[%s1172_s0 + $0xf4] sm:$0xf0]  ;;  %v299_v17 = vpack.c.b16 %v243_v0, %v243_v0  ;;  %v526_v21 = vor.u32 %v725_v10, %v525_v9  ;;  %v530_v22 = vor.u32 %v723_v11, %v527_v12  ;;  %v300_v30 = vpack.c.b16 %v244_v13, %v244_v13 }
  0x13   :  { %v79_v18 = vunpack.c.h.b16 %v18_v14  ;;  %v509_v23 = vld [vmem:[%s1172_s0] sm:$0xf]  ;;  %v721_v24 = vld [vmem:[%s1172_s0 + $0xc] sm:$0xf0]  ;;  %v719_v25 = vld [vmem:[%s1172_s0 + $0x4] sm:$0xf]  ;;  %v630_v26 = vor.u32 %v750_v16, %v629_v15  ;;  %v78_v37 = vunpack.c.l.b16 %v18_v14 }
  0x14   :  { %388 = vmatpush.bf16.msra.mxu1 %v670_v51  ;;  %414 = vmatpush.bf16.msra.mxu3 %v674_v52  ;;  %v511_v27 = vld [vmem:[%s1172_s0 + $0x10] sm:$0xf0]  ;;  %v613_v28 = vld [vmem:[%s1172_s0 + $0xc8] sm:$0xf]  ;;  %v746_v29 = vld [vmem:[%s1172_s0 + $0xd4] sm:$0xf0]  ;;  %v510_v38 = vor.u32 %v721_v24, %v509_v23 }
  0x15   :  { %374 = vmatpush.bf16.msra.mxu0 %v558_v56  ;;  %400 = vmatpush.bf16.msra.mxu2 %v562_v57  ;;  %v365_v31 = vsel %vm357_vm0, %v299_v17, 0  ;;  %v709_v32 = vld [vmem:[%s1172_s0 + $0x188] sm:$0xf]  ;;  %v770_v33 = vld [vmem:[%s1172_s0 + $0x194] sm:$0xf0]  ;;  %v987_v34 = vpack.c.b16 %v79_v18, %v79_v18  ;;  %v514_v39 = vor.u32 %v719_v25, %v511_v27  ;;  %v614_v40 = vor.u32 %v746_v29, %v613_v28 }
  0x16   :  { %v748_v35 = vld [vmem:[%s1172_s0 + $0xec] sm:$0xf]  ;;  %v631_v36 = vld [vmem:[%s1172_s0 + $0xf8] sm:$0xf0]  ;;  %v710_v41 = vor.u32 %v770_v33, %v709_v32  ;;  %v368_v42 = vsel %vm357_vm0, %v300_v30, 0  ;;  %v1015_v49 = vpack.c.b16 %v78_v37, %v78_v37 }
  0x17   :  { %v597_v43 = vld [vmem:[%s1172_s0 + $0xa8] sm:$0xf]  ;;  %v742_v44 = vld [vmem:[%s1172_s0 + $0xb4] sm:$0xf0]  ;;  %v634_v45 = vor.u32 %v748_v35, %v631_v36  ;;  %v744_v48 = vld [vmem:[%s1172_s0 + $0xcc] sm:$0xf] }
  0x18   :  { %389 = vmatpush.bf16.msra.mxu1 %v654_v1  ;;  %415 = vmatpush.bf16.msra.mxu3 %v658_v2  ;;  %v693_v46 = vld [vmem:[%s1172_s0 + $0x168] sm:$0xf]  ;;  %v766_v47 = vld [vmem:[%s1172_s0 + $0x174] sm:$0xf0]  ;;  %v615_v50 = vld [vmem:[%s1172_s0 + $0xd8] sm:$0xf0]  ;;  %v598_v53 = vor.u32 %v742_v44, %v597_v43 }
  0x19   :  { %375 = vmatpush.bf16.msra.mxu0 %v542_v6  ;;  %401 = vmatpush.bf16.msra.mxu2 %v546_v7  ;;  %v768_v51 = vld [vmem:[%s1172_s0 + $0x18c] sm:$0xf]  ;;  %v711_v52 = vld [vmem:[%s1172_s0 + $0x198] sm:$0xf0]  ;;  %v694_v54 = vor.u32 %v766_v47, %v693_v46  ;;  %v581_v55 = vld [vmem:[%s1172_s0 + $0x88] sm:$0xf]  ;;  %v618_v57 = vor.u32 %v744_v48, %v615_v50 }
  0x1a   :  { %v738_v56 = vld [vmem:[%s1172_s0 + $0x94] sm:$0xf0]  ;;  %v714_v58 = vor.u32 %v768_v51, %v711_v52  ;;  %v677_v59 = vld [vmem:[%s1172_s0 + $0x148] sm:$0xf]  ;;  %v740_v61 = vld [vmem:[%s1172_s0 + $0xac] sm:$0xf] }
  0x1b   :  { %v762_v60 = vld [vmem:[%s1172_s0 + $0x154] sm:$0xf0]  ;;  %v599_v62 = vld [vmem:[%s1172_s0 + $0xb8] sm:$0xf0]  ;;  %v764_v63 = vld [vmem:[%s1172_s0 + $0x16c] sm:$0xf]  ;;  %v582_v1 = vor.u32 %v738_v56, %v581_v55 }
  0x1c   :  { %390 = vmatpush.bf16.msra.mxu1 %v638_v19  ;;  %416 = vmatpush.bf16.msra.mxu3 %v642_v20  ;;  %v695_v0 = vld [vmem:[%s1172_s0 + $0x178] sm:$0xf0]  ;;  %v678_v2 = vor.u32 %v762_v60, %v677_v59  ;;  %v565_v3 = vld [vmem:[%s1172_s0 + $0x68] sm:$0xf]  ;;  %v734_v4 = vld [vmem:[%s1172_s0 + $0x74] sm:$0xf0]  ;;  %v602_v5 = vor.u32 %v740_v61, %v599_v62 }
  0x1d   :  { %376 = vmatpush.bf16.msra.mxu0 %v526_v21  ;;  %402 = vmatpush.bf16.msra.mxu2 %v530_v22  ;;  %v698_v6 = vor.u32 %v764_v63, %v695_v0  ;;  %v661_v7 = vld [vmem:[%s1172_s0 + $0x128] sm:$0xf]  ;;  %v758_v8 = vld [vmem:[%s1172_s0 + $0x134] sm:$0xf0]  ;;  %v736_v9 = vld [vmem:[%s1172_s0 + $0x8c] sm:$0xf]  ;;  %v566_v13 = vor.u32 %v734_v4, %v565_v3 }
  0x1e   :  { %v583_v10 = vld [vmem:[%s1172_s0 + $0x98] sm:$0xf0]  ;;  %v760_v11 = vld [vmem:[%s1172_s0 + $0x14c] sm:$0xf]  ;;  %v662_v14 = vor.u32 %v758_v8, %v661_v7  ;;  %v549_v15 = vld [vmem:[%s1172_s0 + $0x48] sm:$0xf] }
  0x1f   :  { %716 = vmatmul.msk.bf16.vlgmr.msra.gmra.mxu3 %vm353_vm1, %v987_v34  ;;  %715 = vmatmul.msk.bf16.vlgmr.msra.gmra.mxu1 %vm353_vm1, %v987_v34  ;;  %v679_v12 = vld [vmem:[%s1172_s0 + $0x158] sm:$0xf0]  ;;  %v730_v16 = vld [vmem:[%s1172_s0 + $0x54] sm:$0xf0]  ;;  %v586_v17 = vor.u32 %v736_v9, %v583_v10  ;;  %v645_v19 = vld [vmem:[%s1172_s0 + $0x108] sm:$0xf] }
  0x20   :  { %422 = vmatpush.bf16.msrb.mxu1 %v630_v26  ;;  %437 = vmatpush.bf16.msrb.mxu3 %v365_v31  ;;  %v682_v18 = vor.u32 %v760_v11, %v679_v12  ;;  %v754_v20 = vld [vmem:[%s1172_s0 + $0x114] sm:$0xf0]  ;;  %v732_v21 = vld [vmem:[%s1172_s0 + $0x6c] sm:$0xf]  ;;  %v567_v22 = vld [vmem:[%s1172_s0 + $0x78] sm:$0xf0]  ;;  %v550_v25 = vor.u32 %v730_v16, %v549_v15 }
  0x21   :  { %377 = vmatpush.bf16.msra.mxu0 %v510_v38  ;;  %403 = vmatpush.bf16.msra.mxu2 %v514_v39  ;;  %v756_v23 = vld [vmem:[%s1172_s0 + $0x12c] sm:$0xf]  ;;  %v663_v24 = vld [vmem:[%s1172_s0 + $0x138] sm:$0xf0]  ;;  %v646_v26 = vor.u32 %v754_v20, %v645_v19  ;;  %v570_v27 = vor.u32 %v732_v21, %v567_v22  ;;  %v533_v29 = vld [vmem:[%s1172_s0 + $0x28] sm:$0xf] }
  0x22   :  { %v666_v28 = vor.u32 %v756_v23, %v663_v24  ;;  %v726_v30 = vld [vmem:[%s1172_s0 + $0x34] sm:$0xf0]  ;;  %v728_v31 = vld [vmem:[%s1172_s0 + $0x4c] sm:$0xf]  ;;  %v551_v32 = vld [vmem:[%s1172_s0 + $0x58] sm:$0xf0] }
  0x23   :  { %v752_v33 = vld [vmem:[%s1172_s0 + $0x10c] sm:$0xf]  ;;  %v647_v35 = vld [vmem:[%s1172_s0 + $0x118] sm:$0xf0]  ;;  %v534_v36 = vor.u32 %v726_v30, %v533_v29  ;;  %v554_v37 = vor.u32 %v728_v31, %v551_v32  ;;  %v517_v39 = vld [vmem:[%s1172_s0 + $0x8] sm:$0xf] }
  0x24   :  { %423 = vmatpush.bf16.msrb.mxu1 %v614_v40  ;;  %438 = vmatpush.bf16.msrb.mxu3 %v710_v41  ;;  %v650_v38 = vor.u32 %v752_v33, %v647_v35  ;;  %v722_v40 = vld [vmem:[%s1172_s0 + $0x14] sm:$0xf0]  ;;  %v724_v41 = vld [vmem:[%s1172_s0 + $0x2c] sm:$0xf]  ;;  %v519_v46 = vld [vmem:[%s1172_s0 + $0x18] sm:$0xf0] }
  0x25   :  { %448 = vmatpush.bf16.msrb.mxu0 %v634_v45  ;;  %463 = vmatpush.bf16.msrb.mxu2 %v368_v42  ;;  %v535_v42 = vld [vmem:[%s1172_s0 + $0x38] sm:$0xf0]  ;;  %v518_v43 = vor.u32 %v722_v40, %v517_v39  ;;  %v720_v45 = vld [vmem:[%s1172_s0 + $0xc] sm:$0xf]  ;;  %v73_v50 = vld [vmem:[%s1174_s2] sm:$0xff] }
  0x26   :  { %404 = vmatmul.bf16.vlgmr.msra.gmra.mxu2 %v1015_v49  ;;  %378 = vmatmul.bf16.vlgmr.msra.gmra.mxu0 %v1015_v49  ;;  %v538_v44 = vor.u32 %v724_v41, %v535_v42  ;;  %v522_v47 = vor.u32 %v720_v45, %v519_v46  ;;  %v75_v62 = vld [vmem:[%s1174_s2 + $0x10] sm:$0xff]  ;;  %v76_v3 = vld [vmem:[%s1174_s2 + $0x18] sm:$0xff] }
  0x28   :  { %424 = vmatpush.bf16.msrb.mxu1 %v598_v53  ;;  %439 = vmatpush.bf16.msrb.mxu3 %v694_v54 }
  0x29   :  { %449 = vmatpush.bf16.msrb.mxu0 %v618_v57  ;;  %464 = vmatpush.bf16.msrb.mxu2 %v714_v58 }
  0x2c   :  { %425 = vmatpush.bf16.msrb.mxu1 %v582_v1  ;;  %440 = vmatpush.bf16.msrb.mxu3 %v678_v2 }
  0x2d   :  { %450 = vmatpush.bf16.msrb.mxu0 %v602_v5  ;;  %465 = vmatpush.bf16.msrb.mxu2 %v698_v6 }
  0x30   :  { %426 = vmatpush.bf16.msrb.mxu1 %v566_v13  ;;  %441 = vmatpush.bf16.msrb.mxu3 %v662_v14 }
  0x31   :  { %451 = vmatpush.bf16.msrb.mxu0 %v586_v17  ;;  %466 = vmatpush.bf16.msrb.mxu2 %v682_v18 }
  0x34   :  { %427 = vmatpush.bf16.msrb.mxu1 %v550_v25  ;;  %442 = vmatpush.bf16.msrb.mxu3 %v646_v26 }
  0x35   :  { %452 = vmatpush.bf16.msrb.mxu0 %v570_v27  ;;  %467 = vmatpush.bf16.msrb.mxu2 %v666_v28 }
  0x37   :  { %717 = vmatmul.msk.bf16.vlgmr.msrb.gmra.mxu3 %vm353_vm1, %v987_v34 }
  0x38   :  { %428 = vmatpush.bf16.msrb.mxu1 %v534_v36 }
  0x39   :  { %453 = vmatpush.bf16.msrb.mxu0 %v554_v37  ;;  %468 = vmatpush.bf16.msrb.mxu2 %v650_v38 }
  0x3c   :  { %429 = vmatpush.bf16.msrb.mxu1 %v518_v43  ;;  %718 = vmatmul.msk.bf16.vlgmr.msrb.gmra.mxu2 %vm353_vm1, %v987_v34  ;;  %v74_v34 = vld [vmem:[%s1174_s2 + $0x8] sm:$0xff] }
  0x3d   :  { %454 = vmatpush.bf16.msrb.mxu0 %v538_v44 }
  0x3f   :  { %430 = vmatmul.bf16.vlgmr.msrb.gmra.mxu1 %v1015_v49 }
  0x41   :  { %455 = vmatpush.bf16.msrb.mxu0 %v522_v47 }
  0x44   :  { %456 = vmatmul.bf16.vlgmr.msrb.gmra.mxu0 %v1015_v49 }
  0x9c   :  { %v392_v48 = vpop.f32.mrf.mxu1 }
  0xa2   :  { %v418_v53 = vpop.f32.mrf.mxu3 }
  0xa3   :  { %v379_v51 = vpop.f32.mrf.mxu0 }
  0xa4   :  { %v380_v52 = vadd.f32 %v379_v51, %v73_v50  ;;  %v394_v55 = vpop.f32.mrf.mxu1 }
  0xa6   :  { %v393_v54 = vadd.f32 %v392_v48, %v380_v52 }
  0xa8   :  { %474 = vst [vmem:[%s1175_s3] sm:$0xff] %v393_v54  ;;  %v485_v11 = vmul.f32 %v393_v54, %v393_v54 }
  0xa9   :  { %v405_v56 = vpop.f32.mrf.mxu2 }
  0xaa   :  { %v406_v49 = vadd.f32 %v405_v56, %v74_v34  ;;  %v420_v59 = vpop.f32.mrf.mxu3 }
  0xab   :  { %v381_v57 = vpop.f32.mrf.mxu0 }
  0xac   :  { %v419_v58 = vadd.f32 %v418_v53, %v406_v49 }
  0xae   :  { %475 = vst [vmem:[%s1175_s3 + $0x8] sm:$0xff] %v419_v58  ;;  %v478_v7 = vadd.f32 %v419_v58, %v393_v54  ;;  %v486_v12 = vmul.f32 %v419_v58, %v419_v58 }
  0xb0   :  { %v489_v18 = vadd.f32 %v486_v12, %v485_v11 }
  0xb1   :  { %v407_v60 = vpop.f32.mrf.mxu2 }
  0xba   :  { %v444_v61 = vpop.f32.mrf.mxu3 }
  0xbc   :  { %v431_v63 = vpop.f32.mrf.mxu1 }
  0xbd   :  { %v432_v0 = vadd.f32 %v431_v63, %v75_v62 }
  0xbf   :  { %v445_v1 = vadd.f32 %v444_v61, %v432_v0  ;;  %v470_v2 = vpop.f32.mrf.mxu2 }
  0xc1   :  { %476 = vst [vmem:[%s1175_s3 + $0x10] sm:$0xff] %v445_v1  ;;  %v457_v4 = vpop.f32.mrf.mxu0  ;;  %v479_v10 = vadd.f32 %v478_v7, %v445_v1  ;;  %v487_v15 = vmul.f32 %v445_v1, %v445_v1 }
  0xc2   :  { %v458_v5 = vadd.f32 %v457_v4, %v76_v3  ;;  %v446_v6 = vpop.f32.mrf.mxu3 }
  0xc3   :  { %v490_v19 = vadd.f32 %v489_v18, %v487_v15 }
  0xc4   :  { %v471_v8 = vadd.f32 %v470_v2, %v458_v5  ;;  %v433_v9 = vpop.f32.mrf.mxu1 }
  0xc6   :  { %477 = vst [vmem:[%s1175_s3 + $0x18] sm:$0xff] %v471_v8  ;;  %v480_v13 = vadd.f32 %v479_v10, %v471_v8  ;;  %v488_v17 = vmul.f32 %v471_v8, %v471_v8 }
  0xc7   :  { %v472_v14 = vpop.f32.mrf.mxu2 }
  0xc8   :  { %481 = vadd.xlane.f32.xlu0 %v480_v13  ;;  %v491_v20 = vadd.f32 %v490_v19, %v488_v17 }
  0xc9   :  { %v459_v16 = vpop.f32.mrf.mxu0 }
  0xd0   :  { %492 = vadd.xlane.f32.xlu0 %v491_v20 }
 0x13b   :  { %v482_v21 = vpop.xlane.xlu0 %481 }
 0x13c   :  { %484 = vst.msk [vmem:[%s1176_s4] sm:$0xff] %vm483_vm2, %v482_v21 }
 0x143   :  { %v493_v22 = vpop.xlane.xlu0 %492 }
 0x144   :  { %494 = vst.msk [vmem:[%s1177_s5] sm:$0xff] %vm483_vm2, %v493_v22 }

// kernel: run.31
= control target key start
LH: loop header
LB: loop body
LE: loop exit
PB: predicated region body
PF: predicated region fallthrough
CT: control target
= control target key end

     0   :  { %vm350_vm0 = vcmask 1043456   ;;  %vm346_vm1 = vcmask 719872   ;;  %vm476_vm2 = vcmask 7168   ;;  %s1148_s0 = inlined_call_operand.vmem [shape: bf16[216,512], index: 0, kind: input, shape index: {}]   ;;  %s1149_s1 = inlined_call_operand.vmem [shape: bf16[8,216], index: 1, kind: input, shape index: {}]   ;;  %s1150_s2 = inlined_call_operand.vmem [shape: f32[8,512], index: 2, kind: output, shape index: {0}]   ;;  %s1151_s3 = inlined_call_operand.vmem [shape: f32[1,8,1], index: 3, kind: output, shape index: {1}]   ;;  %s1152_s4 = inlined_call_operand.vmem [shape: f32[1,8,1], index: 4, kind: output, shape index: {2}]  }
   0x1   :  { %v614_v0 = vld [vmem:[%s1148_s0 + $0xe0] sm:$0xf]  ;;  %v742_v1 = vld [vmem:[%s1148_s0 + $0xec] sm:$0xf0]  ;;  %v740_v2 = vld [vmem:[%s1148_s0 + $0xe4] sm:$0xf] }
   0x2   :  { %v615_v3 = vor.u32 %v742_v1, %v614_v0  ;;  %v616_v4 = vld [vmem:[%s1148_s0 + $0xf0] sm:$0xf0]  ;;  %v68_v5 = vld [vmem:[%s1148_s0 + $0x1a0] sm:$0xff]  ;;  %v738_v10 = vld [vmem:[%s1148_s0 + $0xcc] sm:$0xf0] }
   0x3   :  { %v598_v6 = vld [vmem:[%s1148_s0 + $0xc0] sm:$0xf]  ;;  %v619_v7 = vor.u32 %v740_v2, %v616_v4  ;;  %v234_v8 = vunpack.c.l.b16 %v68_v5  ;;  %v235_v9 = vunpack.c.h.b16 %v68_v5  ;;  %v736_v11 = vld [vmem:[%s1148_s0 + $0xc4] sm:$0xf]  ;;  %v600_v12 = vld [vmem:[%s1148_s0 + $0xd0] sm:$0xf0] }
   0x4   :  { %363 = vmatpush.bf16.msra.mxu0 %v615_v3  ;;  %v694_v13 = vld [vmem:[%s1148_s0 + $0x180] sm:$0xf]  ;;  %v762_v14 = vld [vmem:[%s1148_s0 + $0x18c] sm:$0xf0]  ;;  %v599_v17 = vor.u32 %v738_v10, %v598_v6  ;;  %v603_v18 = vor.u32 %v736_v11, %v600_v12  ;;  %v760_v19 = vld [vmem:[%s1148_s0 + $0x184] sm:$0xf] }
   0x5   :  { %389 = vmatpush.bf16.msra.mxu2 %v619_v7  ;;  %v290_v15 = vpack.c.b16 %v234_v8, %v234_v8  ;;  %v291_v16 = vpack.c.b16 %v235_v9, %v235_v9  ;;  %v696_v20 = vld [vmem:[%s1148_s0 + $0x190] sm:$0xf0]  ;;  %v582_v21 = vld [vmem:[%s1148_s0 + $0xa0] sm:$0xf]  ;;  %v734_v22 = vld [vmem:[%s1148_s0 + $0xac] sm:$0xf0]  ;;  %v695_v27 = vor.u32 %v762_v14, %v694_v13 }
   0x6   :  { %v732_v23 = vld [vmem:[%s1148_s0 + $0xa4] sm:$0xf]  ;;  %v584_v24 = vld [vmem:[%s1148_s0 + $0xb0] sm:$0xf0]  ;;  %v699_v28 = vor.u32 %v760_v19, %v696_v20  ;;  %v678_v29 = vld [vmem:[%s1148_s0 + $0x160] sm:$0xf]  ;;  %v583_v31 = vor.u32 %v734_v22, %v582_v21 }
   0x7   :  { %v352_v25 = vsel %vm350_vm0, %v290_v15, 0  ;;  %v355_v26 = vsel %vm350_vm0, %v291_v16, 0  ;;  %v758_v30 = vld [vmem:[%s1148_s0 + $0x16c] sm:$0xf0]  ;;  %v587_v32 = vor.u32 %v732_v23, %v584_v24  ;;  %v756_v33 = vld [vmem:[%s1148_s0 + $0x164] sm:$0xf] }
   0x8   :  { %378 = vmatpush.bf16.msra.mxu1 %v352_v25  ;;  %404 = vmatpush.bf16.msra.mxu3 %v355_v26  ;;  %v680_v34 = vld [vmem:[%s1148_s0 + $0x170] sm:$0xf0]  ;;  %v566_v35 = vld [vmem:[%s1148_s0 + $0x80] sm:$0xf]  ;;  %v730_v36 = vld [vmem:[%s1148_s0 + $0x8c] sm:$0xf0]  ;;  %v679_v39 = vor.u32 %v758_v30, %v678_v29 }
   0x9   :  { %364 = vmatpush.bf16.msra.mxu0 %v599_v17  ;;  %390 = vmatpush.bf16.msra.mxu2 %v603_v18  ;;  %v728_v37 = vld [vmem:[%s1148_s0 + $0x84] sm:$0xf]  ;;  %v568_v38 = vld [vmem:[%s1148_s0 + $0x90] sm:$0xf0]  ;;  %v683_v40 = vor.u32 %v756_v33, %v680_v34  ;;  %v662_v41 = vld [vmem:[%s1148_s0 + $0x140] sm:$0xf]  ;;  %v567_v43 = vor.u32 %v730_v36, %v566_v35 }
   0xa   :  { %v754_v42 = vld [vmem:[%s1148_s0 + $0x14c] sm:$0xf0]  ;;  %v571_v44 = vor.u32 %v728_v37, %v568_v38  ;;  %v752_v45 = vld [vmem:[%s1148_s0 + $0x144] sm:$0xf]  ;;  %v664_v46 = vld [vmem:[%s1148_s0 + $0x150] sm:$0xf0] }
   0xb   :  { %v550_v47 = vld [vmem:[%s1148_s0 + $0x60] sm:$0xf]  ;;  %v726_v48 = vld [vmem:[%s1148_s0 + $0x6c] sm:$0xf0]  ;;  %v724_v49 = vld [vmem:[%s1148_s0 + $0x64] sm:$0xf]  ;;  %v663_v51 = vor.u32 %v754_v42, %v662_v41  ;;  %v667_v52 = vor.u32 %v752_v45, %v664_v46 }
   0xc   :  { %379 = vmatpush.bf16.msra.mxu1 %v695_v27  ;;  %405 = vmatpush.bf16.msra.mxu3 %v699_v28  ;;  %v552_v50 = vld [vmem:[%s1148_s0 + $0x70] sm:$0xf0]  ;;  %v646_v53 = vld [vmem:[%s1148_s0 + $0x120] sm:$0xf]  ;;  %v750_v54 = vld [vmem:[%s1148_s0 + $0x12c] sm:$0xf0]  ;;  %v551_v56 = vor.u32 %v726_v48, %v550_v47 }
   0xd   :  { %365 = vmatpush.bf16.msra.mxu0 %v583_v31  ;;  %391 = vmatpush.bf16.msra.mxu2 %v587_v32  ;;  %v748_v55 = vld [vmem:[%s1148_s0 + $0x124] sm:$0xf]  ;;  %v555_v57 = vor.u32 %v724_v49, %v552_v50  ;;  %v648_v58 = vld [vmem:[%s1148_s0 + $0x130] sm:$0xf0]  ;;  %v534_v59 = vld [vmem:[%s1148_s0 + $0x40] sm:$0xf]  ;;  %v647_v1 = vor.u32 %v750_v54, %v646_v53 }
   0xe   :  { %v722_v60 = vld [vmem:[%s1148_s0 + $0x4c] sm:$0xf0]  ;;  %v720_v61 = vld [vmem:[%s1148_s0 + $0x44] sm:$0xf]  ;;  %v536_v62 = vld [vmem:[%s1148_s0 + $0x50] sm:$0xf0]  ;;  %v651_v2 = vor.u32 %v748_v55, %v648_v58 }
   0xf   :  { %v69_v63 = vld [vmem:[%s1148_s0 + $0x1a8] sm:$0xff]  ;;  %v630_v3 = vld [vmem:[%s1148_s0 + $0x100] sm:$0xf]  ;;  %v746_v4 = vld [vmem:[%s1148_s0 + $0x10c] sm:$0xf0]  ;;  %v535_v6 = vor.u32 %v722_v60, %v534_v59  ;;  %v539_v7 = vor.u32 %v720_v61, %v536_v62 }
  0x10   :  { %380 = vmatpush.bf16.msra.mxu1 %v679_v39  ;;  %406 = vmatpush.bf16.msra.mxu3 %v683_v40  ;;  %v236_v0 = vunpack.c.l.b16 %v69_v63  ;;  %v15_v5 = vld [vmem:[%s1149_s1] sm:$0xff]  ;;  %v632_v9 = vld [vmem:[%s1148_s0 + $0x110] sm:$0xf0]  ;;  %v718_v11 = vld [vmem:[%s1148_s0 + $0x2c] sm:$0xf0]  ;;  %v237_v14 = vunpack.c.h.b16 %v69_v63  ;;  %v631_v19 = vor.u32 %v746_v4, %v630_v3 }
  0x11   :  { %366 = vmatpush.bf16.msra.mxu0 %v567_v43  ;;  %392 = vmatpush.bf16.msra.mxu2 %v571_v44  ;;  %v744_v8 = vld [vmem:[%s1148_s0 + $0x104] sm:$0xf]  ;;  %v518_v10 = vld [vmem:[%s1148_s0 + $0x20] sm:$0xf]  ;;  %v520_v13 = vld [vmem:[%s1148_s0 + $0x30] sm:$0xf0]  ;;  %v72_v18 = vunpack.c.h.b16 %v15_v5  ;;  %v71_v37 = vunpack.c.l.b16 %v15_v5 }
  0x12   :  { %v716_v12 = vld [vmem:[%s1148_s0 + $0x24] sm:$0xf]  ;;  %v622_v15 = vld [vmem:[%s1148_s0 + $0xe8] sm:$0xf]  ;;  %v743_v16 = vld [vmem:[%s1148_s0 + $0xf4] sm:$0xf0]  ;;  %v292_v17 = vpack.c.b16 %v236_v0, %v236_v0  ;;  %v635_v20 = vor.u32 %v744_v8, %v632_v9  ;;  %v519_v21 = vor.u32 %v718_v11, %v518_v10  ;;  %v293_v30 = vpack.c.b16 %v237_v14, %v237_v14 }
  0x13   :  { %v523_v22 = vor.u32 %v716_v12, %v520_v13  ;;  %v502_v23 = vld [vmem:[%s1148_s0] sm:$0xf]  ;;  %v714_v24 = vld [vmem:[%s1148_s0 + $0xc] sm:$0xf0]  ;;  %v712_v25 = vld [vmem:[%s1148_s0 + $0x4] sm:$0xf]  ;;  %v623_v26 = vor.u32 %v743_v16, %v622_v15  ;;  %v969_v32 = vpack.c.b16 %v72_v18, %v72_v18  ;;  %v1003_v49 = vpack.c.b16 %v71_v37, %v71_v37 }
  0x14   :  { %381 = vmatpush.bf16.msra.mxu1 %v663_v51  ;;  %407 = vmatpush.bf16.msra.mxu3 %v667_v52  ;;  %v504_v27 = vld [vmem:[%s1148_s0 + $0x10] sm:$0xf0]  ;;  %v606_v28 = vld [vmem:[%s1148_s0 + $0xc8] sm:$0xf]  ;;  %v739_v29 = vld [vmem:[%s1148_s0 + $0xd4] sm:$0xf0]  ;;  %v503_v38 = vor.u32 %v714_v24, %v502_v23 }
  0x15   :  { %367 = vmatpush.bf16.msra.mxu0 %v551_v56  ;;  %393 = vmatpush.bf16.msra.mxu2 %v555_v57  ;;  %v358_v31 = vsel %vm350_vm0, %v292_v17, 0  ;;  %v702_v33 = vld [vmem:[%s1148_s0 + $0x188] sm:$0xf]  ;;  %v763_v34 = vld [vmem:[%s1148_s0 + $0x194] sm:$0xf0]  ;;  %v507_v39 = vor.u32 %v712_v25, %v504_v27  ;;  %v607_v40 = vor.u32 %v739_v29, %v606_v28  ;;  %v361_v42 = vsel %vm350_vm0, %v293_v30, 0 }
  0x16   :  { %v741_v35 = vld [vmem:[%s1148_s0 + $0xec] sm:$0xf]  ;;  %v624_v36 = vld [vmem:[%s1148_s0 + $0xf8] sm:$0xf0]  ;;  %v703_v41 = vor.u32 %v763_v34, %v702_v33  ;;  %v590_v43 = vld [vmem:[%s1148_s0 + $0xa8] sm:$0xf] }
  0x17   :  { %v735_v44 = vld [vmem:[%s1148_s0 + $0xb4] sm:$0xf0]  ;;  %v627_v45 = vor.u32 %v741_v35, %v624_v36  ;;  %v686_v46 = vld [vmem:[%s1148_s0 + $0x168] sm:$0xf]  ;;  %v737_v48 = vld [vmem:[%s1148_s0 + $0xcc] sm:$0xf] }
  0x18   :  { %382 = vmatpush.bf16.msra.mxu1 %v647_v1  ;;  %408 = vmatpush.bf16.msra.mxu3 %v651_v2  ;;  %v759_v47 = vld [vmem:[%s1148_s0 + $0x174] sm:$0xf0]  ;;  %v608_v50 = vld [vmem:[%s1148_s0 + $0xd8] sm:$0xf0]  ;;  %v761_v51 = vld [vmem:[%s1148_s0 + $0x18c] sm:$0xf]  ;;  %v591_v53 = vor.u32 %v735_v44, %v590_v43 }
  0x19   :  { %368 = vmatpush.bf16.msra.mxu0 %v535_v6  ;;  %394 = vmatpush.bf16.msra.mxu2 %v539_v7  ;;  %v704_v52 = vld [vmem:[%s1148_s0 + $0x198] sm:$0xf0]  ;;  %v687_v54 = vor.u32 %v759_v47, %v686_v46  ;;  %v574_v55 = vld [vmem:[%s1148_s0 + $0x88] sm:$0xf]  ;;  %v731_v56 = vld [vmem:[%s1148_s0 + $0x94] sm:$0xf0]  ;;  %v611_v57 = vor.u32 %v737_v48, %v608_v50 }
  0x1a   :  { %v707_v58 = vor.u32 %v761_v51, %v704_v52  ;;  %v670_v59 = vld [vmem:[%s1148_s0 + $0x148] sm:$0xf]  ;;  %v755_v60 = vld [vmem:[%s1148_s0 + $0x154] sm:$0xf0]  ;;  %v733_v61 = vld [vmem:[%s1148_s0 + $0xac] sm:$0xf]  ;;  %v575_v1 = vor.u32 %v731_v56, %v574_v55 }
  0x1b   :  { %v592_v62 = vld [vmem:[%s1148_s0 + $0xb8] sm:$0xf0]  ;;  %v757_v63 = vld [vmem:[%s1148_s0 + $0x16c] sm:$0xf]  ;;  %v671_v2 = vor.u32 %v755_v60, %v670_v59  ;;  %v558_v3 = vld [vmem:[%s1148_s0 + $0x68] sm:$0xf] }
  0x1c   :  { %383 = vmatpush.bf16.msra.mxu1 %v631_v19  ;;  %409 = vmatpush.bf16.msra.mxu3 %v635_v20  ;;  %v688_v0 = vld [vmem:[%s1148_s0 + $0x178] sm:$0xf0]  ;;  %v727_v4 = vld [vmem:[%s1148_s0 + $0x74] sm:$0xf0]  ;;  %v595_v5 = vor.u32 %v733_v61, %v592_v62  ;;  %v654_v7 = vld [vmem:[%s1148_s0 + $0x128] sm:$0xf] }
  0x1d   :  { %369 = vmatpush.bf16.msra.mxu0 %v519_v21  ;;  %395 = vmatpush.bf16.msra.mxu2 %v523_v22  ;;  %v691_v6 = vor.u32 %v757_v63, %v688_v0  ;;  %v751_v8 = vld [vmem:[%s1148_s0 + $0x134] sm:$0xf0]  ;;  %v729_v9 = vld [vmem:[%s1148_s0 + $0x8c] sm:$0xf]  ;;  %v576_v10 = vld [vmem:[%s1148_s0 + $0x98] sm:$0xf0]  ;;  %v559_v13 = vor.u32 %v727_v4, %v558_v3 }
  0x1e   :  { %v753_v11 = vld [vmem:[%s1148_s0 + $0x14c] sm:$0xf]  ;;  %v672_v12 = vld [vmem:[%s1148_s0 + $0x158] sm:$0xf0]  ;;  %v655_v14 = vor.u32 %v751_v8, %v654_v7  ;;  %v542_v15 = vld [vmem:[%s1148_s0 + $0x48] sm:$0xf]  ;;  %v579_v17 = vor.u32 %v729_v9, %v576_v10 }
  0x1f   :  { %709 = vmatmul.msk.bf16.vlgmr.msra.gmra.mxu3 %vm346_vm1, %v969_v32  ;;  %708 = vmatmul.msk.bf16.vlgmr.msra.gmra.mxu1 %vm346_vm1, %v969_v32  ;;  %v723_v16 = vld [vmem:[%s1148_s0 + $0x54] sm:$0xf0]  ;;  %v675_v18 = vor.u32 %v753_v11, %v672_v12  ;;  %v638_v19 = vld [vmem:[%s1148_s0 + $0x108] sm:$0xf]  ;;  %v725_v21 = vld [vmem:[%s1148_s0 + $0x6c] sm:$0xf] }
  0x20   :  { %415 = vmatpush.bf16.msrb.mxu1 %v623_v26  ;;  %430 = vmatpush.bf16.msrb.mxu3 %v358_v31  ;;  %v747_v20 = vld [vmem:[%s1148_s0 + $0x114] sm:$0xf0]  ;;  %v560_v22 = vld [vmem:[%s1148_s0 + $0x78] sm:$0xf0]  ;;  %v749_v23 = vld [vmem:[%s1148_s0 + $0x12c] sm:$0xf]  ;;  %v543_v25 = vor.u32 %v723_v16, %v542_v15 }
  0x21   :  { %370 = vmatpush.bf16.msra.mxu0 %v503_v38  ;;  %396 = vmatpush.bf16.msra.mxu2 %v507_v39  ;;  %v656_v24 = vld [vmem:[%s1148_s0 + $0x138] sm:$0xf0]  ;;  %v639_v26 = vor.u32 %v747_v20, %v638_v19  ;;  %v563_v27 = vor.u32 %v725_v21, %v560_v22  ;;  %v526_v29 = vld [vmem:[%s1148_s0 + $0x28] sm:$0xf]  ;;  %v719_v30 = vld [vmem:[%s1148_s0 + $0x34] sm:$0xf0] }
  0x22   :  { %v659_v28 = vor.u32 %v749_v23, %v656_v24  ;;  %v721_v31 = vld [vmem:[%s1148_s0 + $0x4c] sm:$0xf]  ;;  %v544_v33 = vld [vmem:[%s1148_s0 + $0x58] sm:$0xf0]  ;;  %v527_v36 = vor.u32 %v719_v30, %v526_v29  ;;  %v510_v39 = vld [vmem:[%s1148_s0 + $0x8] sm:$0xf] }
  0x23   :  { %v745_v34 = vld [vmem:[%s1148_s0 + $0x10c] sm:$0xf]  ;;  %v640_v35 = vld [vmem:[%s1148_s0 + $0x118] sm:$0xf0]  ;;  %v547_v37 = vor.u32 %v721_v31, %v544_v33 }
  0x24   :  { %416 = vmatpush.bf16.msrb.mxu1 %v607_v40  ;;  %431 = vmatpush.bf16.msrb.mxu3 %v703_v41  ;;  %v643_v38 = vor.u32 %v745_v34, %v640_v35  ;;  %v715_v40 = vld [vmem:[%s1148_s0 + $0x14] sm:$0xf0]  ;;  %v717_v41 = vld [vmem:[%s1148_s0 + $0x2c] sm:$0xf]  ;;  %v512_v46 = vld [vmem:[%s1148_s0 + $0x18] sm:$0xf0] }
  0x25   :  { %441 = vmatpush.bf16.msrb.mxu0 %v627_v45  ;;  %456 = vmatpush.bf16.msrb.mxu2 %v361_v42  ;;  %v528_v42 = vld [vmem:[%s1148_s0 + $0x38] sm:$0xf0]  ;;  %v511_v43 = vor.u32 %v715_v40, %v510_v39  ;;  %v713_v45 = vld [vmem:[%s1148_s0 + $0xc] sm:$0xf] }
  0x26   :  { %397 = vmatmul.bf16.vlgmr.msra.gmra.mxu2 %v1003_v49  ;;  %371 = vmatmul.bf16.vlgmr.msra.gmra.mxu0 %v1003_v49  ;;  %v531_v44 = vor.u32 %v717_v41, %v528_v42  ;;  %v515_v47 = vor.u32 %v713_v45, %v512_v46 }
  0x28   :  { %417 = vmatpush.bf16.msrb.mxu1 %v591_v53  ;;  %432 = vmatpush.bf16.msrb.mxu3 %v687_v54 }
  0x29   :  { %442 = vmatpush.bf16.msrb.mxu0 %v611_v57  ;;  %457 = vmatpush.bf16.msrb.mxu2 %v707_v58 }
  0x2c   :  { %418 = vmatpush.bf16.msrb.mxu1 %v575_v1  ;;  %433 = vmatpush.bf16.msrb.mxu3 %v671_v2 }
  0x2d   :  { %443 = vmatpush.bf16.msrb.mxu0 %v595_v5  ;;  %458 = vmatpush.bf16.msrb.mxu2 %v691_v6 }
  0x30   :  { %419 = vmatpush.bf16.msrb.mxu1 %v559_v13  ;;  %434 = vmatpush.bf16.msrb.mxu3 %v655_v14 }
  0x31   :  { %444 = vmatpush.bf16.msrb.mxu0 %v579_v17  ;;  %459 = vmatpush.bf16.msrb.mxu2 %v675_v18 }
  0x34   :  { %420 = vmatpush.bf16.msrb.mxu1 %v543_v25  ;;  %435 = vmatpush.bf16.msrb.mxu3 %v639_v26 }
  0x35   :  { %445 = vmatpush.bf16.msrb.mxu0 %v563_v27  ;;  %460 = vmatpush.bf16.msrb.mxu2 %v659_v28 }
  0x37   :  { %710 = vmatmul.msk.bf16.vlgmr.msrb.gmra.mxu3 %vm346_vm1, %v969_v32 }
  0x38   :  { %421 = vmatpush.bf16.msrb.mxu1 %v527_v36 }
  0x39   :  { %446 = vmatpush.bf16.msrb.mxu0 %v547_v37  ;;  %461 = vmatpush.bf16.msrb.mxu2 %v643_v38 }
  0x3c   :  { %422 = vmatpush.bf16.msrb.mxu1 %v511_v43  ;;  %711 = vmatmul.msk.bf16.vlgmr.msrb.gmra.mxu2 %vm346_vm1, %v969_v32 }
  0x3d   :  { %447 = vmatpush.bf16.msrb.mxu0 %v531_v44 }
  0x3f   :  { %423 = vmatmul.bf16.vlgmr.msrb.gmra.mxu1 %v1003_v49 }
  0x41   :  { %448 = vmatpush.bf16.msrb.mxu0 %v515_v47 }
  0x44   :  { %449 = vmatmul.bf16.vlgmr.msrb.gmra.mxu0 %v1003_v49 }
  0x9c   :  { %v385_v48 = vpop.f32.mrf.mxu1 }
  0xa2   :  { %v411_v51 = vpop.f32.mrf.mxu3 }
  0xa3   :  { %v372_v50 = vpop.f32.mrf.mxu0 }
  0xa4   :  { %v386_v52 = vadd.f32 %v385_v48, %v372_v50  ;;  %v387_v53 = vpop.f32.mrf.mxu1 }
  0xa6   :  { %467 = vst [vmem:[%s1150_s2] sm:$0xff] %v386_v52  ;;  %v478_v2 = vmul.f32 %v386_v52, %v386_v52 }
  0xa9   :  { %v398_v54 = vpop.f32.mrf.mxu2 }
  0xaa   :  { %v412_v55 = vadd.f32 %v411_v51, %v398_v54  ;;  %v413_v32 = vpop.f32.mrf.mxu3 }
  0xab   :  { %v374_v56 = vpop.f32.mrf.mxu0 }
  0xac   :  { %468 = vst [vmem:[%s1150_s2 + $0x8] sm:$0xff] %v412_v55  ;;  %v471_v61 = vadd.f32 %v412_v55, %v386_v52  ;;  %v479_v3 = vmul.f32 %v412_v55, %v412_v55 }
  0xae   :  { %v482_v9 = vadd.f32 %v479_v3, %v478_v2 }
  0xb1   :  { %v400_v57 = vpop.f32.mrf.mxu2 }
  0xba   :  { %v437_v58 = vpop.f32.mrf.mxu3 }
  0xbc   :  { %v424_v49 = vpop.f32.mrf.mxu1 }
  0xbd   :  { %v438_v59 = vadd.f32 %v437_v58, %v424_v49 }
  0xbf   :  { %469 = vst [vmem:[%s1150_s2 + $0x10] sm:$0xff] %v438_v59  ;;  %v463_v60 = vpop.f32.mrf.mxu2  ;;  %v472_v1 = vadd.f32 %v471_v61, %v438_v59  ;;  %v480_v6 = vmul.f32 %v438_v59, %v438_v59 }
  0xc1   :  { %v450_v62 = vpop.f32.mrf.mxu0  ;;  %v483_v11 = vadd.f32 %v482_v9, %v480_v6 }
  0xc2   :  { %v464_v63 = vadd.f32 %v463_v60, %v450_v62  ;;  %v439_v0 = vpop.f32.mrf.mxu3 }
  0xc4   :  { %470 = vst [vmem:[%s1150_s2 + $0x18] sm:$0xff] %v464_v63  ;;  %v426_v4 = vpop.f32.mrf.mxu1  ;;  %v473_v5 = vadd.f32 %v472_v1, %v464_v63  ;;  %v481_v8 = vmul.f32 %v464_v63, %v464_v63 }
  0xc6   :  { %474 = vadd.xlane.f32.xlu0 %v473_v5  ;;  %v484_v12 = vadd.f32 %v483_v11, %v481_v8 }
  0xc7   :  { %v465_v7 = vpop.f32.mrf.mxu2 }
  0xc9   :  { %v452_v10 = vpop.f32.mrf.mxu0 }
  0xce   :  { %485 = vadd.xlane.f32.xlu0 %v484_v12 }
 0x139   :  { %v475_v13 = vpop.xlane.xlu0 %474 }
 0x13a   :  { %477 = vst.msk [vmem:[%s1151_s3] sm:$0xff] %vm476_vm2, %v475_v13 }
 0x141   :  { %v486_v14 = vpop.xlane.xlu0 %485 }
 0x142   :  { %487 = vst.msk [vmem:[%s1152_s4] sm:$0xff] %vm476_vm2, %v486_v14 }

// kernel: run.39
= control target key start
LH: loop header
LB: loop body
LE: loop exit
PB: predicated region body
PF: predicated region fallthrough
CT: control target
= control target key end

     0   :  { %vm54_vm0 = vcmask 523264   ;;  %vm80_vm1 = vcmask 7168   ;;  %s189_s0 = inlined_call_operand.vmem [shape: bf16[64,64], index: 0, kind: input, shape index: {}]   ;;  %s190_s1 = inlined_call_operand.vmem [shape: bf16[16,64], index: 1, kind: input, shape index: {}]   ;;  %s191_s2 = inlined_call_operand.vmem [shape: f32[16,64], index: 2, kind: output, shape index: {0}]   ;;  %s192_s3 = inlined_call_operand.vmem [shape: f32[1,16,1], index: 3, kind: output, shape index: {1}]   ;;  %s193_s4 = inlined_call_operand.vmem [shape: f32[1,16,1], index: 4, kind: output, shape index: {2}]  }
   0x1   :  { %v130_v0 = vld [vmem:[%s189_s0 + $0x18] sm:$0xff]  ;;  %v129_v1 = vld [vmem:[%s189_s0 + $0x10] sm:$0xff]  ;;  %v128_v2 = vld [vmem:[%s189_s0 + $0x8] sm:$0xff] }
   0x2   :  { %62 = vmatpush.bf16.msra.mxu0 %v130_v0  ;;  %v127_v3 = vld [vmem:[%s189_s0] sm:$0xff] }
   0x3   :  { %v126_v4 = vld [vmem:[%s190_s1] sm:$0xff] }
   0x6   :  { %63 = vmatpush.bf16.msra.mxu0 %v129_v1 }
   0xa   :  { %64 = vmatpush.bf16.msra.mxu0 %v128_v2 }
   0xe   :  { %65 = vmatpush.bf16.msra.mxu0 %v127_v3 }
  0x11   :  { %125 = vmatmul.msk.bf16.vlgmr.msra.gmra.mxu0 %vm54_vm0, %v126_v4 }
  0x8e   :  { %v67_v5 = vpop.f32.mrf.mxu0 }
  0x8f   :  { %72 = vst.msk [vmem:[%s191_s2] sm:$0xff] %vm54_vm0, %v67_v5  ;;  %v74_v6 = vsel %vm54_vm0, %v67_v5, 0.0  ;;  %v83_v7 = vmul.f32 %v67_v5, %v67_v5 }
  0x90   :  { %75 = vadd.xlane.f32.xlu0 %v74_v6 }
  0x91   :  { %v85_v8 = vsel %vm54_vm0, %v83_v7, 0.0 }
  0x92   :  { %86 = vadd.xlane.f32.xlu1 %v85_v8 }
  0x96   :  { %v69_v9 = vpop.f32.mrf.mxu0 }
  0x97   :  { %73 = vst.msk [vmem:[%s191_s2 + $0x8] sm:$0xff] %vm54_vm0, %v69_v9  ;;  %v84_v10 = vmul.f32 %v69_v9, %v69_v9  ;;  %v77_v11 = vsel %vm54_vm0, %v69_v9, 0.0 }
  0x98   :  { %78 = vadd.xlane.f32.xlu0 %v77_v11 }
  0x99   :  { %v88_v12 = vsel %vm54_vm0, %v84_v10, 0.0 }
  0x9a   :  { %89 = vadd.xlane.f32.xlu1 %v88_v12 }
 0x103   :  { %v76_v13 = vpop.xlane.xlu0 %75 }
 0x104   :  { %81 = vst.msk [vmem:[%s192_s3] sm:$0xff] %vm80_vm1, %v76_v13 }
 0x105   :  { %v87_v14 = vpop.xlane.xlu1 %86 }
 0x106   :  { %91 = vst.msk [vmem:[%s193_s4] sm:$0xff] %vm80_vm1, %v87_v14 }
 0x10b   :  { %v79_v15 = vpop.xlane.xlu0 %78 }
 0x10c   :  { %82 = vst.msk [vmem:[%s192_s3 + $0x8] sm:$0xff] %vm80_vm1, %v79_v15 }
 0x10d   :  { %v90_v16 = vpop.xlane.xlu1 %89 }
 0x10e   :  { %92 = vst.msk [vmem:[%s193_s4 + $0x8] sm:$0xff] %vm80_vm1, %v90_v16 }

// kernel: run.40
= control target key start
LH: loop header
LB: loop body
LE: loop exit
PB: predicated region body
PF: predicated region fallthrough
CT: control target
= control target key end

     0   :  { %v58_v0 = vmov 0   ;;  %vm48_vm0 = vcmask 519168   ;;  %s103_s2 = inlined_call_operand.vmem [shape: f32[16,1], index: 2, kind: input, shape index: {}]   ;;  %s104_s1 = inlined_call_operand.vmem [shape: f32[16,1], index: 1, kind: input, shape index: {}]   ;;  %s105_s0 = inlined_call_operand.vmem [shape: f32[16,64], index: 0, kind: input, shape index: {}]   ;;  %s106_s3 = inlined_call_operand.vmem [shape: bf16[16,64], index: 3, kind: output, shape index: {}]  }
   0x1   :  { %57 = vset.pattern.permute.xlu1 %v58_v0  ;;  %56 = vset.pattern.permute.xlu0 %v58_v0  ;;  %v30_v1 = vld [vmem:[%s103_s2] sm:$0xff]  ;;  %v31_v3 = vld [vmem:[%s103_s2 + $0x8] sm:$0xff] }
   0x2   :  { %v16_v2 = vld [vmem:[%s104_s1] sm:$0xff]  ;;  %34 = vperm.xlu1 %57, %v30_v1   ;;  %v17_v4 = vld [vmem:[%s104_s1 + $0x8] sm:$0xff] }
   0x3   :  { %20 = vperm.xlu0 %56, %v16_v2   ;;  %v14_v5 = vld [vmem:[%s105_s0] sm:$0xff]  ;;  %v15_v11 = vld [vmem:[%s105_s0 + $0x8] sm:$0xff] }
   0xa   :  { %39 = vperm.xlu1 %57, %v31_v3  }
   0xb   :  { %25 = vperm.xlu0 %56, %v17_v4  }
  0x74   :  { %v35_v6 = vpop.permute.xlu1 %34 }
  0x75   :  { %v21_v7 = vpop.permute.xlu0 %20 }
  0x76   :  { %v28_v8 = vmul.f32 %v21_v7, %v14_v5 }
  0x78   :  { %v42_v9 = vadd.f32 %v35_v6, %v28_v8 }
  0x7a   :  { %v44_v10 = vmax.f32 %v42_v9, 0.0 }
  0x7c   :  { %v46_v12 = vpack.c.bf16 %v44_v10, %v44_v10  ;;  %v40_v15 = vpop.permute.xlu1 %39 }
  0x7d   :  { %v26_v13 = vpop.permute.xlu0 %25 }
  0x7e   :  { %49 = vst.msk [vmem:[%s106_s3] sm:$0xf] %vm48_vm0, %v46_v12  ;;  %v29_v14 = vmul.f32 %v26_v13, %v15_v11 }
  0x80   :  { %v43_v16 = vadd.f32 %v40_v15, %v29_v14 }
  0x82   :  { %v45_v17 = vmax.f32 %v43_v16, 0.0 }
  0x84   :  { %v47_v18 = vpack.c.bf16 %v45_v17, %v45_v17 }
  0x86   :  { %50 = vst.msk [vmem:[%s106_s3 + $0x4] sm:$0xf] %vm48_vm0, %v47_v18 }

// kernel: run.41
= control target key start
LH: loop header
LB: loop body
LE: loop exit
PB: predicated region body
PF: predicated region fallthrough
CT: control target
= control target key end

     0   :  { %vm254_vm0 = vcmask 392192   ;;  %vm314_vm1 = vcmask 523264   ;;  %vm323_vm2 = vcmask 7168   ;;  %s658_s0 = inlined_call_operand.vmem [shape: bf16[432,64], index: 0, kind: input, shape index: {}]   ;;  %s659_s1 = inlined_call_operand.vmem [shape: bf16[16,432], index: 1, kind: input, shape index: {}]   ;;  %s660_s2 = inlined_call_operand.vmem [shape: f32[16,64], index: 2, kind: output, shape index: {0}]   ;;  %s661_s3 = inlined_call_operand.vmem [shape: f32[1,16,1], index: 3, kind: output, shape index: {1}]   ;;  %s662_s4 = inlined_call_operand.vmem [shape: f32[1,16,1], index: 4, kind: output, shape index: {2}]  }
   0x1   :  { %v484_v0 = vld [vmem:[%s658_s0 + $0x38] sm:$0xff]  ;;  %v483_v3 = vld [vmem:[%s658_s0 + $0x30] sm:$0xff]  ;;  %v482_v7 = vld [vmem:[%s658_s0 + $0x28] sm:$0xff] }
   0x2   :  { %v492_v1 = vld [vmem:[%s658_s0 + $0x78] sm:$0xff]  ;;  %258 = vmatpush.bf16.msra.mxu0 %v484_v0  ;;  %v491_v4 = vld [vmem:[%s658_s0 + $0x70] sm:$0xff]  ;;  %v490_v8 = vld [vmem:[%s658_s0 + $0x68] sm:$0xff] }
   0x3   :  { %v500_v2 = vld [vmem:[%s658_s0 + $0xb8] sm:$0xff]  ;;  %272 = vmatpush.bf16.msra.mxu1 %v492_v1  ;;  %v499_v5 = vld [vmem:[%s658_s0 + $0xb0] sm:$0xff]  ;;  %v498_v9 = vld [vmem:[%s658_s0 + $0xa8] sm:$0xff] }
   0x4   :  { %286 = vmatpush.bf16.msra.mxu2 %v500_v2  ;;  %v503_v6 = vld [vmem:[%s658_s0 + $0xd0] sm:$0xff]  ;;  %v502_v10 = vld [vmem:[%s658_s0 + $0xc8] sm:$0xff]  ;;  %v481_v11 = vld [vmem:[%s658_s0 + $0x20] sm:$0xff] }
   0x5   :  { %305 = vmatpush.bf16.msra.mxu3 %v503_v6  ;;  %v489_v12 = vld [vmem:[%s658_s0 + $0x60] sm:$0xff]  ;;  %v474_v15 = vld [vmem:[%s659_s1 + $0xc] sm:$0xf]  ;;  %v360_v16 = vld [vmem:[%s659_s1 + $0x18] sm:$0xf0] }
   0x6   :  { %259 = vmatpush.bf16.msra.mxu0 %v483_v3  ;;  %v497_v13 = vld [vmem:[%s658_s0 + $0xa0] sm:$0xff]  ;;  %v480_v17 = vld [vmem:[%s658_s0 + $0x18] sm:$0xff]  ;;  %v363_v20 = vor.u32 %v474_v15, %v360_v16  ;;  %v479_v21 = vld [vmem:[%s658_s0 + $0x10] sm:$0xff] }
   0x7   :  { %273 = vmatpush.bf16.msra.mxu1 %v491_v4  ;;  %v501_v14 = vld [vmem:[%s658_s0 + $0xc0] sm:$0xff]  ;;  %v488_v18 = vld [vmem:[%s658_s0 + $0x58] sm:$0xff]  ;;  %v487_v22 = vld [vmem:[%s658_s0 + $0x50] sm:$0xff] }
   0x8   :  { %287 = vmatpush.bf16.msra.mxu2 %v499_v5  ;;  %v496_v19 = vld [vmem:[%s658_s0 + $0x98] sm:$0xff]  ;;  %v495_v23 = vld [vmem:[%s658_s0 + $0x90] sm:$0xff]  ;;  %v478_v24 = vld [vmem:[%s658_s0 + $0x8] sm:$0xff] }
   0x9   :  { %306 = vmatpush.bf16.msra.mxu3 %v502_v10  ;;  %v486_v25 = vld [vmem:[%s658_s0 + $0x48] sm:$0xff]  ;;  %v477_v27 = vld [vmem:[%s658_s0] sm:$0xff]  ;;  %v475_v30 = vld [vmem:[%s659_s1 + $0xc] sm:$0xf0] }
   0xa   :  { %260 = vmatpush.bf16.msra.mxu0 %v482_v7  ;;  %v494_v26 = vld [vmem:[%s658_s0 + $0x88] sm:$0xff]  ;;  %v485_v28 = vld [vmem:[%s658_s0 + $0x40] sm:$0xff]  ;;  %v352_v32 = vld [vmem:[%s659_s1 + $0x10] sm:$0xf0] }
   0xb   :  { %274 = vmatpush.bf16.msra.mxu1 %v490_v8  ;;  %v350_v29 = vld [vmem:[%s659_s1] sm:$0xf]  ;;  %v473_v31 = vld [vmem:[%s659_s1 + $0x4] sm:$0xf]  ;;  %v358_v34 = vld [vmem:[%s659_s1 + $0x8] sm:$0xf] }
   0xc   :  { %288 = vmatpush.bf16.msra.mxu2 %v498_v9  ;;  %v493_v33 = vld [vmem:[%s658_s0 + $0x80] sm:$0xff]  ;;  %v476_v35 = vld [vmem:[%s659_s1 + $0x14] sm:$0xf0]  ;;  %v351_v36 = vor.u32 %v475_v30, %v350_v29  ;;  %v355_v37 = vor.u32 %v473_v31, %v352_v32 }
   0xd   :  { %307 = vmatpush.bf16.msra.mxu3 %v501_v14  ;;  %v359_v38 = vor.u32 %v476_v35, %v358_v34 }
   0xe   :  { %261 = vmatpush.bf16.msra.mxu0 %v481_v11 }
   0xf   :  { %275 = vmatpush.bf16.msra.mxu1 %v489_v12 }
  0x10   :  { %289 = vmatpush.bf16.msra.mxu2 %v497_v13  ;;  %472 = vmatmul.msk.bf16.vlgmr.msra.gmra.mxu3 %vm254_vm0, %v363_v20 }
  0x12   :  { %262 = vmatpush.bf16.msra.mxu0 %v480_v17 }
  0x13   :  { %276 = vmatpush.bf16.msra.mxu1 %v488_v18 }
  0x14   :  { %290 = vmatpush.bf16.msra.mxu2 %v496_v19 }
  0x16   :  { %263 = vmatpush.bf16.msra.mxu0 %v479_v21 }
  0x17   :  { %277 = vmatpush.bf16.msra.mxu1 %v487_v22 }
  0x18   :  { %291 = vmatpush.bf16.msra.mxu2 %v495_v23 }
  0x1a   :  { %264 = vmatpush.bf16.msra.mxu0 %v478_v24 }
  0x1b   :  { %278 = vmatpush.bf16.msra.mxu1 %v486_v25 }
  0x1c   :  { %292 = vmatpush.bf16.msra.mxu2 %v494_v26 }
  0x1e   :  { %265 = vmatpush.bf16.msra.mxu0 %v477_v27 }
  0x1f   :  { %279 = vmatpush.bf16.msra.mxu1 %v485_v28 }
  0x20   :  { %293 = vmatpush.bf16.msra.mxu2 %v493_v33 }
  0x21   :  { %266 = vmatmul.bf16.vlgmr.msra.gmra.mxu0 %v351_v36 }
  0x22   :  { %280 = vmatmul.bf16.vlgmr.msra.gmra.mxu1 %v355_v37 }
  0x23   :  { %294 = vmatmul.bf16.vlgmr.msra.gmra.mxu2 %v359_v38 }
  0x93   :  { %v309_v42 = vpop.f32.mrf.mxu3 }
  0x9b   :  { %v311_v54 = vpop.f32.mrf.mxu3 }
  0x9e   :  { %v267_v39 = vpop.f32.mrf.mxu0 }
  0x9f   :  { %v281_v40 = vpop.f32.mrf.mxu1 }
  0xa0   :  { %v282_v41 = vadd.f32 %v281_v40, %v267_v39 }
  0xa6   :  { %v295_v43 = vpop.f32.mrf.mxu2  ;;  %v269_v46 = vpop.f32.mrf.mxu0 }
  0xa7   :  { %v296_v44 = vadd.f32 %v295_v43, %v282_v41  ;;  %v283_v47 = vpop.f32.mrf.mxu1 }
  0xa8   :  { %v284_v50 = vadd.f32 %v283_v47, %v269_v46 }
  0xa9   :  { %v310_v45 = vadd.f32 %v309_v42, %v296_v44 }
  0xab   :  { %315 = vst.msk [vmem:[%s660_s2] sm:$0xff] %vm314_vm1, %v310_v45  ;;  %v317_v48 = vsel %vm314_vm1, %v310_v45, 0.0  ;;  %v326_v49 = vmul.f32 %v310_v45, %v310_v45 }
  0xac   :  { %318 = vadd.xlane.f32.xlu0 %v317_v48 }
  0xad   :  { %v328_v51 = vsel %vm314_vm1, %v326_v49, 0.0 }
  0xae   :  { %v297_v52 = vpop.f32.mrf.mxu2  ;;  %329 = vadd.xlane.f32.xlu1 %v328_v51 }
  0xaf   :  { %v298_v53 = vadd.f32 %v297_v52, %v284_v50 }
  0xb1   :  { %v312_v55 = vadd.f32 %v311_v54, %v298_v53 }
  0xb3   :  { %316 = vst.msk [vmem:[%s660_s2 + $0x8] sm:$0xff] %vm314_vm1, %v312_v55  ;;  %v320_v56 = vsel %vm314_vm1, %v312_v55, 0.0  ;;  %v327_v57 = vmul.f32 %v312_v55, %v312_v55 }
  0xb4   :  { %321 = vadd.xlane.f32.xlu0 %v320_v56 }
  0xb5   :  { %v331_v58 = vsel %vm314_vm1, %v327_v57, 0.0 }
  0xb6   :  { %332 = vadd.xlane.f32.xlu1 %v331_v58 }
 0x11f   :  { %v319_v59 = vpop.xlane.xlu0 %318 }
 0x120   :  { %324 = vst.msk [vmem:[%s661_s3] sm:$0xff] %vm323_vm2, %v319_v59 }
 0x121   :  { %v330_v60 = vpop.xlane.xlu1 %329 }
 0x122   :  { %334 = vst.msk [vmem:[%s662_s4] sm:$0xff] %vm323_vm2, %v330_v60 }
 0x127   :  { %v322_v61 = vpop.xlane.xlu0 %321 }
 0x128   :  { %325 = vst.msk [vmem:[%s661_s3 + $0x8] sm:$0xff] %vm323_vm2, %v322_v61 }
 0x129   :  { %v333_v62 = vpop.xlane.xlu1 %332 }
 0x12a   :  { %335 = vst.msk [vmem:[%s662_s4 + $0x8] sm:$0xff] %vm323_vm2, %v333_v62 }

// kernel: run.43
= control target key start
LH: loop header
LB: loop body
LE: loop exit
PB: predicated region body
PF: predicated region fallthrough
CT: control target
= control target key end

     0   :  { %vm259_vm0 = vcmask 392192   ;;  %vm319_vm1 = vcmask 523264   ;;  %vm328_vm2 = vcmask 7168   ;;  %s674_s0 = inlined_call_operand.vmem [shape: bf16[432,64], index: 0, kind: input, shape index: {}]   ;;  %s675_s1 = inlined_call_operand.vmem [shape: bf16[16,432], index: 1, kind: input, shape index: {}]   ;;  %s676_s2 = inlined_call_operand.vmem [shape: f32[16,64], index: 2, kind: input, shape index: {}]   ;;  %s677_s3 = inlined_call_operand.vmem [shape: f32[16,64], index: 3, kind: output, shape index: {0}]   ;;  %s678_s4 = inlined_call_operand.vmem [shape: f32[1,16,1], index: 4, kind: output, shape index: {1}]   ;;  %s679_s5 = inlined_call_operand.vmem [shape: f32[1,16,1], index: 5, kind: output, shape index: {2}]  }
   0x1   :  { %v489_v0 = vld [vmem:[%s674_s0 + $0x38] sm:$0xff]  ;;  %v488_v3 = vld [vmem:[%s674_s0 + $0x30] sm:$0xff]  ;;  %v487_v7 = vld [vmem:[%s674_s0 + $0x28] sm:$0xff] }
   0x2   :  { %v497_v1 = vld [vmem:[%s674_s0 + $0x78] sm:$0xff]  ;;  %263 = vmatpush.bf16.msra.mxu0 %v489_v0  ;;  %v496_v4 = vld [vmem:[%s674_s0 + $0x70] sm:$0xff]  ;;  %v495_v8 = vld [vmem:[%s674_s0 + $0x68] sm:$0xff] }
   0x3   :  { %v505_v2 = vld [vmem:[%s674_s0 + $0xb8] sm:$0xff]  ;;  %277 = vmatpush.bf16.msra.mxu1 %v497_v1  ;;  %v504_v5 = vld [vmem:[%s674_s0 + $0xb0] sm:$0xff]  ;;  %v503_v9 = vld [vmem:[%s674_s0 + $0xa8] sm:$0xff] }
   0x4   :  { %291 = vmatpush.bf16.msra.mxu2 %v505_v2  ;;  %v508_v6 = vld [vmem:[%s674_s0 + $0xd0] sm:$0xff]  ;;  %v507_v10 = vld [vmem:[%s674_s0 + $0xc8] sm:$0xff]  ;;  %v486_v11 = vld [vmem:[%s674_s0 + $0x20] sm:$0xff] }
   0x5   :  { %310 = vmatpush.bf16.msra.mxu3 %v508_v6  ;;  %v494_v12 = vld [vmem:[%s674_s0 + $0x60] sm:$0xff]  ;;  %v479_v15 = vld [vmem:[%s675_s1 + $0xc] sm:$0xf]  ;;  %v365_v16 = vld [vmem:[%s675_s1 + $0x18] sm:$0xf0] }
   0x6   :  { %264 = vmatpush.bf16.msra.mxu0 %v488_v3  ;;  %v502_v13 = vld [vmem:[%s674_s0 + $0xa0] sm:$0xff]  ;;  %v485_v17 = vld [vmem:[%s674_s0 + $0x18] sm:$0xff]  ;;  %v368_v20 = vor.u32 %v479_v15, %v365_v16  ;;  %v484_v21 = vld [vmem:[%s674_s0 + $0x10] sm:$0xff] }
   0x7   :  { %278 = vmatpush.bf16.msra.mxu1 %v496_v4  ;;  %v506_v14 = vld [vmem:[%s674_s0 + $0xc0] sm:$0xff]  ;;  %v493_v18 = vld [vmem:[%s674_s0 + $0x58] sm:$0xff]  ;;  %v492_v22 = vld [vmem:[%s674_s0 + $0x50] sm:$0xff] }
   0x8   :  { %292 = vmatpush.bf16.msra.mxu2 %v504_v5  ;;  %v501_v19 = vld [vmem:[%s674_s0 + $0x98] sm:$0xff]  ;;  %v500_v23 = vld [vmem:[%s674_s0 + $0x90] sm:$0xff]  ;;  %v483_v24 = vld [vmem:[%s674_s0 + $0x8] sm:$0xff] }
   0x9   :  { %311 = vmatpush.bf16.msra.mxu3 %v507_v10  ;;  %v491_v25 = vld [vmem:[%s674_s0 + $0x48] sm:$0xff]  ;;  %v482_v27 = vld [vmem:[%s674_s0] sm:$0xff]  ;;  %v480_v30 = vld [vmem:[%s675_s1 + $0xc] sm:$0xf0] }
   0xa   :  { %265 = vmatpush.bf16.msra.mxu0 %v487_v7  ;;  %v499_v26 = vld [vmem:[%s674_s0 + $0x88] sm:$0xff]  ;;  %v490_v28 = vld [vmem:[%s674_s0 + $0x40] sm:$0xff]  ;;  %v357_v32 = vld [vmem:[%s675_s1 + $0x10] sm:$0xf0] }
   0xb   :  { %279 = vmatpush.bf16.msra.mxu1 %v495_v8  ;;  %v355_v29 = vld [vmem:[%s675_s1] sm:$0xf]  ;;  %v478_v31 = vld [vmem:[%s675_s1 + $0x4] sm:$0xf]  ;;  %v363_v34 = vld [vmem:[%s675_s1 + $0x8] sm:$0xf] }
   0xc   :  { %293 = vmatpush.bf16.msra.mxu2 %v503_v9  ;;  %v498_v33 = vld [vmem:[%s674_s0 + $0x80] sm:$0xff]  ;;  %v481_v35 = vld [vmem:[%s675_s1 + $0x14] sm:$0xf0]  ;;  %v356_v36 = vor.u32 %v480_v30, %v355_v29  ;;  %v360_v37 = vor.u32 %v478_v31, %v357_v32  ;;  %v77_v46 = vld [vmem:[%s676_s2 + $0x8] sm:$0xff] }
   0xd   :  { %312 = vmatpush.bf16.msra.mxu3 %v506_v14  ;;  %v364_v38 = vor.u32 %v481_v35, %v363_v34  ;;  %v76_v39 = vld [vmem:[%s676_s2] sm:$0xff] }
   0xe   :  { %266 = vmatpush.bf16.msra.mxu0 %v486_v11 }
   0xf   :  { %280 = vmatpush.bf16.msra.mxu1 %v494_v12 }
  0x10   :  { %294 = vmatpush.bf16.msra.mxu2 %v502_v13  ;;  %477 = vmatmul.msk.bf16.vlgmr.msra.gmra.mxu3 %vm259_vm0, %v368_v20 }
  0x12   :  { %267 = vmatpush.bf16.msra.mxu0 %v485_v17 }
  0x13   :  { %281 = vmatpush.bf16.msra.mxu1 %v493_v18 }
  0x14   :  { %295 = vmatpush.bf16.msra.mxu2 %v501_v19 }
  0x16   :  { %268 = vmatpush.bf16.msra.mxu0 %v484_v21 }
  0x17   :  { %282 = vmatpush.bf16.msra.mxu1 %v492_v22 }
  0x18   :  { %296 = vmatpush.bf16.msra.mxu2 %v500_v23 }
  0x1a   :  { %269 = vmatpush.bf16.msra.mxu0 %v483_v24 }
  0x1b   :  { %283 = vmatpush.bf16.msra.mxu1 %v491_v25 }
  0x1c   :  { %297 = vmatpush.bf16.msra.mxu2 %v499_v26 }
  0x1e   :  { %270 = vmatpush.bf16.msra.mxu0 %v482_v27 }
  0x1f   :  { %284 = vmatpush.bf16.msra.mxu1 %v490_v28 }
  0x20   :  { %298 = vmatpush.bf16.msra.mxu2 %v498_v33 }
  0x21   :  { %271 = vmatmul.bf16.vlgmr.msra.gmra.mxu0 %v356_v36 }
  0x22   :  { %285 = vmatmul.bf16.vlgmr.msra.gmra.mxu1 %v360_v37 }
  0x23   :  { %299 = vmatmul.bf16.vlgmr.msra.gmra.mxu2 %v364_v38 }
  0x93   :  { %v314_v44 = vpop.f32.mrf.mxu3 }
  0x9b   :  { %v316_v58 = vpop.f32.mrf.mxu3 }
  0x9e   :  { %v272_v40 = vpop.f32.mrf.mxu0 }
  0x9f   :  { %v273_v41 = vadd.f32 %v272_v40, %v76_v39  ;;  %v286_v42 = vpop.f32.mrf.mxu1 }
  0xa1   :  { %v287_v43 = vadd.f32 %v286_v42, %v273_v41 }
  0xa6   :  { %v300_v45 = vpop.f32.mrf.mxu2  ;;  %v274_v48 = vpop.f32.mrf.mxu0 }
  0xa7   :  { %v301_v47 = vadd.f32 %v300_v45, %v287_v43  ;;  %v275_v50 = vadd.f32 %v274_v48, %v77_v46  ;;  %v288_v53 = vpop.f32.mrf.mxu1 }
  0xa9   :  { %v315_v49 = vadd.f32 %v314_v44, %v301_v47  ;;  %v289_v54 = vadd.f32 %v288_v53, %v275_v50 }
  0xab   :  { %320 = vst.msk [vmem:[%s677_s3] sm:$0xff] %vm319_vm1, %v315_v49  ;;  %v322_v51 = vsel %vm319_vm1, %v315_v49, 0.0  ;;  %v331_v52 = vmul.f32 %v315_v49, %v315_v49 }
  0xac   :  { %323 = vadd.xlane.f32.xlu0 %v322_v51 }
  0xad   :  { %v333_v55 = vsel %vm319_vm1, %v331_v52, 0.0 }
  0xae   :  { %v302_v56 = vpop.f32.mrf.mxu2  ;;  %334 = vadd.xlane.f32.xlu1 %v333_v55 }
  0xaf   :  { %v303_v57 = vadd.f32 %v302_v56, %v289_v54 }
  0xb1   :  { %v317_v59 = vadd.f32 %v316_v58, %v303_v57 }
  0xb3   :  { %321 = vst.msk [vmem:[%s677_s3 + $0x8] sm:$0xff] %vm319_vm1, %v317_v59  ;;  %v325_v60 = vsel %vm319_vm1, %v317_v59, 0.0  ;;  %v332_v61 = vmul.f32 %v317_v59, %v317_v59 }
  0xb4   :  { %326 = vadd.xlane.f32.xlu0 %v325_v60 }
  0xb5   :  { %v336_v62 = vsel %vm319_vm1, %v332_v61, 0.0 }
  0xb6   :  { %337 = vadd.xlane.f32.xlu1 %v336_v62 }
 0x11f   :  { %v324_v63 = vpop.xlane.xlu0 %323 }
 0x120   :  { %329 = vst.msk [vmem:[%s678_s4] sm:$0xff] %vm328_vm2, %v324_v63 }
 0x121   :  { %v335_v0 = vpop.xlane.xlu1 %334 }
 0x122   :  { %339 = vst.msk [vmem:[%s679_s5] sm:$0xff] %vm328_vm2, %v335_v0 }
 0x127   :  { %v327_v1 = vpop.xlane.xlu0 %326 }
 0x128   :  { %330 = vst.msk [vmem:[%s678_s4 + $0x8] sm:$0xff] %vm328_vm2, %v327_v1 }
 0x129   :  { %v338_v2 = vpop.xlane.xlu1 %337 }
 0x12a   :  { %340 = vst.msk [vmem:[%s679_s5 + $0x8] sm:$0xff] %vm328_vm2, %v338_v2 }

// kernel: run.49
= control target key start
LH: loop header
LB: loop body
LE: loop exit
PB: predicated region body
PF: predicated region fallthrough
CT: control target
= control target key end

     0   :  { %vm51_vm0 = vcmask 130048   ;;  %vm93_vm1 = vcmask 523264   ;;  %vm126_vm2 = vcmask 7168   ;;  %s371_s0 = inlined_call_operand.vmem [shape: bf16[16,64], index: 0, kind: input, shape index: {}]   ;;  %s372_s1 = inlined_call_operand.vmem [shape: bf16[64,16], index: 1, kind: input, shape index: {}]   ;;  %s373_s2 = inlined_call_operand.vmem [shape: f32[64,64], index: 2, kind: output, shape index: {0}]   ;;  %s374_s3 = inlined_call_operand.vmem [shape: f32[1,64,1], index: 3, kind: output, shape index: {1}]   ;;  %s375_s4 = inlined_call_operand.vmem [shape: f32[1,64,1], index: 4, kind: output, shape index: {2}]  }
   0x1   :  { %v215_v0 = vld [vmem:[%s371_s0] sm:$0xff]  ;;  %v212_v2 = vld [vmem:[%s372_s1 + $0x8] sm:$0xff]  ;;  %v214_v3 = vld [vmem:[%s372_s1 + $0x18] sm:$0xff] }
   0x2   :  { %v211_v1 = vld [vmem:[%s372_s1] sm:$0xff]  ;;  %71 = vmatpush.bf16.msra.mxu0 %v215_v0  ;;  %216 = vmatpush.bf16.msra.mxu1 %v215_v0  ;;  %v213_v4 = vld [vmem:[%s372_s1 + $0x10] sm:$0xff] }
   0x3   :  { %218 = vmatpush.bf16.msra.mxu3 %v215_v0  ;;  %217 = vmatpush.bf16.msra.mxu2 %v215_v0 }
   0x5   :  { %207 = vmatmul.msk.bf16.vlgmr.msra.gmra.mxu0 %vm51_vm0, %v211_v1  ;;  %208 = vmatmul.msk.bf16.vlgmr.msra.gmra.mxu1 %vm51_vm0, %v212_v2 }
   0x6   :  { %210 = vmatmul.msk.bf16.vlgmr.msra.gmra.mxu3 %vm51_vm0, %v214_v3  ;;  %209 = vmatmul.msk.bf16.vlgmr.msra.gmra.mxu2 %vm51_vm0, %v213_v4 }
  0x82   :  { %v73_v5 = vpop.f32.mrf.mxu0  ;;  %v78_v6 = vpop.f32.mrf.mxu1 }
  0x83   :  { %94 = vst.msk [vmem:[%s373_s2] sm:$0xff] %vm93_vm1, %v73_v5  ;;  %v108_v7 = vsel %vm93_vm1, %v78_v6, 0.0  ;;  %v102_v8 = vsel %vm93_vm1, %v73_v5, 0.0  ;;  %v135_v9 = vmul.f32 %v73_v5, %v73_v5  ;;  %v137_v11 = vmul.f32 %v78_v6, %v78_v6 }
  0x84   :  { %96 = vst.msk [vmem:[%s373_s2 + $0x10] sm:$0xff] %vm93_vm1, %v78_v6  ;;  %109 = vadd.xlane.f32.xlu1 %v108_v7  ;;  %103 = vadd.xlane.f32.xlu0 %v102_v8 }
  0x85   :  { %v143_v10 = vsel %vm93_vm1, %v135_v9, 0.0  ;;  %v149_v14 = vsel %vm93_vm1, %v137_v11, 0.0 }
  0x86   :  { %144 = vadd.xlane.f32.xlu2 %v143_v10 }
  0x89   :  { %v88_v12 = vpop.f32.mrf.mxu3  ;;  %v83_v13 = vpop.f32.mrf.mxu2 }
  0x8a   :  { %100 = vst.msk [vmem:[%s373_s2 + $0x30] sm:$0xff] %vm93_vm1, %v88_v12  ;;  %v75_v15 = vpop.f32.mrf.mxu0  ;;  %v80_v16 = vpop.f32.mrf.mxu1  ;;  %v120_v17 = vsel %vm93_vm1, %v88_v12, 0.0  ;;  %v114_v18 = vsel %vm93_vm1, %v83_v13, 0.0  ;;  %v139_v25 = vmul.f32 %v83_v13, %v83_v13  ;;  %v141_v31 = vmul.f32 %v88_v12, %v88_v12 }
  0x8b   :  { %95 = vst.msk [vmem:[%s373_s2 + $0x8] sm:$0xff] %vm93_vm1, %v75_v15  ;;  %v138_v19 = vmul.f32 %v80_v16, %v80_v16  ;;  %v111_v22 = vsel %vm93_vm1, %v80_v16, 0.0  ;;  %v105_v23 = vsel %vm93_vm1, %v75_v15, 0.0  ;;  %v136_v29 = vmul.f32 %v75_v15, %v75_v15 }
  0x8c   :  { %97 = vst.msk [vmem:[%s373_s2 + $0x18] sm:$0xff] %vm93_vm1, %v80_v16  ;;  %150 = vadd.xlane.f32.xlu1 %v149_v14  ;;  %121 = vadd.xlane.f32.xlu0 %v120_v17  ;;  %v155_v27 = vsel %vm93_vm1, %v139_v25, 0.0  ;;  %v161_v34 = vsel %vm93_vm1, %v141_v31, 0.0 }
  0x8d   :  { %98 = vst.msk [vmem:[%s373_s2 + $0x20] sm:$0xff] %vm93_vm1, %v83_v13  ;;  %v152_v24 = vsel %vm93_vm1, %v138_v19, 0.0  ;;  %v146_v33 = vsel %vm93_vm1, %v136_v29, 0.0 }
  0x8e   :  { %115 = vadd.xlane.f32.xlu2 %v114_v18 }
  0x91   :  { %v90_v20 = vpop.f32.mrf.mxu3  ;;  %v85_v21 = vpop.f32.mrf.mxu2 }
  0x92   :  { %101 = vst.msk [vmem:[%s373_s2 + $0x38] sm:$0xff] %vm93_vm1, %v90_v20  ;;  %v123_v26 = vsel %vm93_vm1, %v90_v20, 0.0  ;;  %v117_v28 = vsel %vm93_vm1, %v85_v21, 0.0  ;;  %v140_v30 = vmul.f32 %v85_v21, %v85_v21  ;;  %v142_v35 = vmul.f32 %v90_v20, %v90_v20 }
  0x93   :  { %99 = vst.msk [vmem:[%s373_s2 + $0x28] sm:$0xff] %vm93_vm1, %v85_v21 }
  0x94   :  { %112 = vadd.xlane.f32.xlu1 %v111_v22  ;;  %106 = vadd.xlane.f32.xlu0 %v105_v23  ;;  %v158_v32 = vsel %vm93_vm1, %v140_v30, 0.0  ;;  %v164_v36 = vsel %vm93_vm1, %v142_v35, 0.0 }
  0x96   :  { %153 = vadd.xlane.f32.xlu2 %v152_v24 }
  0x9c   :  { %124 = vadd.xlane.f32.xlu1 %v123_v26  ;;  %156 = vadd.xlane.f32.xlu0 %v155_v27 }
  0x9e   :  { %118 = vadd.xlane.f32.xlu2 %v117_v28 }
  0xa4   :  { %159 = vadd.xlane.f32.xlu1 %v158_v32  ;;  %147 = vadd.xlane.f32.xlu0 %v146_v33 }
  0xa6   :  { %162 = vadd.xlane.f32.xlu2 %v161_v34 }
  0xac   :  { %165 = vadd.xlane.f32.xlu0 %v164_v36 }
  0xf7   :  { %v110_v37 = vpop.xlane.xlu1 %109  ;;  %v104_v38 = vpop.xlane.xlu0 %103 }
  0xf8   :  { %129 = vst.msk [vmem:[%s374_s3 + $0x10] sm:$0xff] %vm126_vm2, %v110_v37 }
  0xf9   :  { %127 = vst.msk [vmem:[%s374_s3] sm:$0xff] %vm126_vm2, %v104_v38  ;;  %v145_v39 = vpop.xlane.xlu2 %144 }
  0xfa   :  { %167 = vst.msk [vmem:[%s375_s4] sm:$0xff] %vm126_vm2, %v145_v39 }
  0xff   :  { %v151_v40 = vpop.xlane.xlu1 %150  ;;  %v122_v41 = vpop.xlane.xlu0 %121 }
 0x100   :  { %169 = vst.msk [vmem:[%s375_s4 + $0x10] sm:$0xff] %vm126_vm2, %v151_v40 }
 0x101   :  { %133 = vst.msk [vmem:[%s374_s3 + $0x30] sm:$0xff] %vm126_vm2, %v122_v41  ;;  %v116_v42 = vpop.xlane.xlu2 %115 }
 0x102   :  { %131 = vst.msk [vmem:[%s374_s3 + $0x20] sm:$0xff] %vm126_vm2, %v116_v42 }
 0x107   :  { %v113_v43 = vpop.xlane.xlu1 %112  ;;  %v107_v44 = vpop.xlane.xlu0 %106 }
 0x108   :  { %130 = vst.msk [vmem:[%s374_s3 + $0x18] sm:$0xff] %vm126_vm2, %v113_v43 }
 0x109   :  { %128 = vst.msk [vmem:[%s374_s3 + $0x8] sm:$0xff] %vm126_vm2, %v107_v44  ;;  %v154_v45 = vpop.xlane.xlu2 %153 }
 0x10a   :  { %170 = vst.msk [vmem:[%s375_s4 + $0x18] sm:$0xff] %vm126_vm2, %v154_v45 }
 0x10f   :  { %v125_v46 = vpop.xlane.xlu1 %124  ;;  %v157_v47 = vpop.xlane.xlu0 %156 }
 0x110   :  { %134 = vst.msk [vmem:[%s374_s3 + $0x38] sm:$0xff] %vm126_vm2, %v125_v46 }
 0x111   :  { %171 = vst.msk [vmem:[%s375_s4 + $0x20] sm:$0xff] %vm126_vm2, %v157_v47  ;;  %v119_v48 = vpop.xlane.xlu2 %118 }
 0x112   :  { %132 = vst.msk [vmem:[%s374_s3 + $0x28] sm:$0xff] %vm126_vm2, %v119_v48 }
 0x117   :  { %v160_v49 = vpop.xlane.xlu1 %159  ;;  %v148_v50 = vpop.xlane.xlu0 %147 }
 0x118   :  { %172 = vst.msk [vmem:[%s375_s4 + $0x28] sm:$0xff] %vm126_vm2, %v160_v49 }
 0x119   :  { %168 = vst.msk [vmem:[%s375_s4 + $0x8] sm:$0xff] %vm126_vm2, %v148_v50  ;;  %v163_v51 = vpop.xlane.xlu2 %162 }
 0x11a   :  { %173 = vst.msk [vmem:[%s375_s4 + $0x30] sm:$0xff] %vm126_vm2, %v163_v51 }
 0x11f   :  { %v166_v52 = vpop.xlane.xlu0 %165 }
 0x120   :  { %174 = vst.msk [vmem:[%s375_s4 + $0x38] sm:$0xff] %vm126_vm2, %v166_v52 }

// kernel: run.50
= control target key start
LH: loop header
LB: loop body
LE: loop exit
PB: predicated region body
PF: predicated region fallthrough
CT: control target
= control target key end

     0   :  { %v85_v0 = vmov 0   ;;  %s154_s2 = inlined_call_operand.vmem [shape: f32[16,1], index: 2, kind: input, shape index: {}]   ;;  %s155_s1 = inlined_call_operand.vmem [shape: f32[16,1], index: 1, kind: input, shape index: {}]   ;;  %s156_s0 = inlined_call_operand.vmem [shape: f32[16,512], index: 0, kind: input, shape index: {}]   ;;  %s157_s3 = inlined_call_operand.vmem [shape: bf16[16,512], index: 3, kind: output, shape index: {}]  }
   0x1   :  { %84 = vset.pattern.permute.xlu1 %v85_v0  ;;  %83 = vset.pattern.permute.xlu0 %v85_v0  ;;  %v42_v1 = vld [vmem:[%s154_s2] sm:$0xff]  ;;  %v43_v3 = vld [vmem:[%s154_s2 + $0x8] sm:$0xff]  ;;  %v16_v7 = vld [vmem:[%s156_s0 + $0x10] sm:$0xff] }
   0x2   :  { %v22_v2 = vld [vmem:[%s155_s1] sm:$0xff]  ;;  %46 = vperm.xlu1 %84, %v42_v1   ;;  %v23_v4 = vld [vmem:[%s155_s1 + $0x8] sm:$0xff]  ;;  %v17_v8 = vld [vmem:[%s156_s0 + $0x18] sm:$0xff] }
   0x3   :  { %26 = vperm.xlu0 %83, %v22_v2   ;;  %v14_v5 = vld [vmem:[%s156_s0] sm:$0xff]  ;;  %v15_v6 = vld [vmem:[%s156_s0 + $0x8] sm:$0xff]  ;;  %v20_v25 = vld [vmem:[%s156_s0 + $0x30] sm:$0xff] }
   0x4   :  { %v18_v23 = vld [vmem:[%s156_s0 + $0x20] sm:$0xff]  ;;  %v19_v24 = vld [vmem:[%s156_s0 + $0x28] sm:$0xff]  ;;  %v21_v26 = vld [vmem:[%s156_s0 + $0x38] sm:$0xff] }
   0xa   :  { %51 = vperm.xlu1 %84, %v43_v3  }
   0xb   :  { %31 = vperm.xlu0 %83, %v23_v4  }
  0x74   :  { %v47_v9 = vpop.permute.xlu1 %46 }
  0x75   :  { %v27_v10 = vpop.permute.xlu0 %26 }
  0x76   :  { %v34_v11 = vmul.f32 %v27_v10, %v14_v5  ;;  %v35_v12 = vmul.f32 %v27_v10, %v15_v6  ;;  %v36_v13 = vmul.f32 %v27_v10, %v16_v7  ;;  %v37_v14 = vmul.f32 %v27_v10, %v17_v8 }
  0x78   :  { %v54_v15 = vadd.f32 %v47_v9, %v34_v11  ;;  %v55_v16 = vadd.f32 %v47_v9, %v35_v12  ;;  %v56_v17 = vadd.f32 %v47_v9, %v36_v13  ;;  %v57_v18 = vadd.f32 %v47_v9, %v37_v14 }
  0x7a   :  { %v62_v19 = vmax.f32 %v54_v15, 0.0  ;;  %v63_v20 = vmax.f32 %v55_v16, 0.0  ;;  %v64_v21 = vmax.f32 %v56_v17, 0.0  ;;  %v65_v22 = vmax.f32 %v57_v18, 0.0 }
  0x7c   :  { %v70_v27 = vpack.c.bf16 %v63_v20, %v62_v19  ;;  %v71_v28 = vpack.c.bf16 %v65_v22, %v64_v21  ;;  %v52_v34 = vpop.permute.xlu1 %51 }
  0x7d   :  { %v32_v29 = vpop.permute.xlu0 %31 }
  0x7e   :  { %74 = vst [vmem:[%s157_s3] sm:$0xff] %v70_v27  ;;  %v38_v30 = vmul.f32 %v32_v29, %v18_v23  ;;  %v39_v31 = vmul.f32 %v32_v29, %v19_v24  ;;  %v40_v32 = vmul.f32 %v32_v29, %v20_v25  ;;  %v41_v33 = vmul.f32 %v32_v29, %v21_v26 }
  0x7f   :  { %75 = vst [vmem:[%s157_s3 + $0x8] sm:$0xff] %v71_v28 }
  0x80   :  { %v58_v35 = vadd.f32 %v52_v34, %v38_v30  ;;  %v59_v36 = vadd.f32 %v52_v34, %v39_v31  ;;  %v60_v37 = vadd.f32 %v52_v34, %v40_v32  ;;  %v61_v38 = vadd.f32 %v52_v34, %v41_v33 }
  0x82   :  { %v66_v39 = vmax.f32 %v58_v35, 0.0  ;;  %v67_v40 = vmax.f32 %v59_v36, 0.0  ;;  %v68_v41 = vmax.f32 %v60_v37, 0.0  ;;  %v69_v42 = vmax.f32 %v61_v38, 0.0 }
  0x84   :  { %v72_v43 = vpack.c.bf16 %v67_v40, %v66_v39  ;;  %v73_v44 = vpack.c.bf16 %v69_v42, %v68_v41 }
  0x86   :  { %76 = vst [vmem:[%s157_s3 + $0x10] sm:$0xff] %v72_v43 }
  0x87   :  { %77 = vst [vmem:[%s157_s3 + $0x18] sm:$0xff] %v73_v44 }

// kernel: run.53
= control target key start
LH: loop header
LB: loop body
LE: loop exit
PB: predicated region body
PF: predicated region fallthrough
CT: control target
= control target key end

     0   :  { %vm437_vm0 = vcmask 1043456   ;;  %vm101_vm1 = vcmask 130048   ;;  %vm433_vm2 = vcmask 719872   ;;  %vm563_vm3 = vcmask 7168   ;;  %s1300_s2 = inlined_call_operand.vmem [shape: bf16[16,512], index: 2, kind: input, shape index: {}]   ;;  %s1301_s0 = inlined_call_operand.vmem [shape: bf16[216,512], index: 0, kind: input, shape index: {}]   ;;  %s1302_s3 = inlined_call_operand.vmem [shape: bf16[8,16], index: 3, kind: input, shape index: {}]   ;;  %s1303_s1 = inlined_call_operand.vmem [shape: bf16[8,216], index: 1, kind: input, shape index: {}]   ;;  %s1304_s4 = inlined_call_operand.vmem [shape: f32[8,512], index: 4, kind: output, shape index: {0}]   ;;  %s1305_s5 = inlined_call_operand.vmem [shape: f32[1,8,1], index: 5, kind: output, shape index: {1}]   ;;  %s1306_s6 = inlined_call_operand.vmem [shape: f32[1,8,1], index: 6, kind: output, shape index: {2}]  }
   0x1   :  { %v589_v0 = vld [vmem:[%s1300_s2] sm:$0xf]  ;;  %v873_v1 = vld [vmem:[%s1300_s2 + $0xc] sm:$0xf0]  ;;  %v597_v2 = vld [vmem:[%s1300_s2 + $0x8] sm:$0xf] }
   0x2   :  { %v590_v3 = vor.u32 %v873_v1, %v589_v0  ;;  %v874_v4 = vld [vmem:[%s1300_s2 + $0x14] sm:$0xf0]  ;;  %v721_v5 = vld [vmem:[%s1301_s0 + $0xe0] sm:$0xf]  ;;  %v849_v6 = vld [vmem:[%s1301_s0 + $0xec] sm:$0xf0] }
   0x3   :  { %v598_v7 = vor.u32 %v874_v4, %v597_v2  ;;  %v722_v8 = vor.u32 %v849_v6, %v721_v5  ;;  %v847_v9 = vld [vmem:[%s1301_s0 + $0xe4] sm:$0xf]  ;;  %v723_v10 = vld [vmem:[%s1301_s0 + $0xf0] sm:$0xf0]  ;;  %v872_v14 = vld [vmem:[%s1300_s2 + $0xc] sm:$0xf] }
   0x4   :  { %v871_v11 = vld [vmem:[%s1300_s2 + $0x4] sm:$0xf]  ;;  %112 = vmatpush.bf16.msra.mxu0 %v590_v3  ;;  %v726_v12 = vor.u32 %v847_v9, %v723_v10  ;;  %v591_v13 = vld [vmem:[%s1300_s2 + $0x10] sm:$0xf0]  ;;  %v599_v15 = vld [vmem:[%s1300_s2 + $0x18] sm:$0xf0] }
   0x5   :  { %138 = vmatpush.bf16.msra.mxu2 %v598_v7  ;;  %v594_v16 = vor.u32 %v871_v11, %v591_v13  ;;  %v602_v17 = vor.u32 %v872_v14, %v599_v15  ;;  %v74_v18 = vld [vmem:[%s1301_s0 + $0x1a0] sm:$0xff]  ;;  %v845_v20 = vld [vmem:[%s1301_s0 + $0xcc] sm:$0xf0]  ;;  %v707_v25 = vld [vmem:[%s1301_s0 + $0xd0] sm:$0xf0] }
   0x6   :  { %v705_v19 = vld [vmem:[%s1301_s0 + $0xc0] sm:$0xf]  ;;  %v321_v21 = vunpack.c.l.b16 %v74_v18  ;;  %v322_v22 = vunpack.c.h.b16 %v74_v18  ;;  %v843_v24 = vld [vmem:[%s1301_s0 + $0xc4] sm:$0xf]  ;;  %v869_v28 = vld [vmem:[%s1301_s0 + $0x18c] sm:$0xf0] }
   0x7   :  { %v706_v23 = vor.u32 %v845_v20, %v705_v19  ;;  %v801_v26 = vld [vmem:[%s1301_s0 + $0x180] sm:$0xf]  ;;  %125 = vmatpush.bf16.msra.mxu1 %v594_v16  ;;  %151 = vmatpush.bf16.msra.mxu3 %v602_v17  ;;  %v710_v27 = vor.u32 %v843_v24, %v707_v25  ;;  %v867_v29 = vld [vmem:[%s1301_s0 + $0x184] sm:$0xf]  ;;  %v803_v30 = vld [vmem:[%s1301_s0 + $0x190] sm:$0xf0] }
   0x8   :  { %450 = vmatpush.bf16.msrb.mxu0 %v722_v8  ;;  %v377_v31 = vpack.c.b16 %v321_v21, %v321_v21  ;;  %v378_v32 = vpack.c.b16 %v322_v22, %v322_v22  ;;  %v689_v33 = vld [vmem:[%s1301_s0 + $0xa0] sm:$0xf]  ;;  %v841_v34 = vld [vmem:[%s1301_s0 + $0xac] sm:$0xf0]  ;;  %v839_v35 = vld [vmem:[%s1301_s0 + $0xa4] sm:$0xf]  ;;  %v802_v44 = vor.u32 %v869_v28, %v801_v26  ;;  %v806_v45 = vor.u32 %v867_v29, %v803_v30 }
   0x9   :  { %476 = vmatpush.bf16.msrb.mxu2 %v726_v12  ;;  %v690_v36 = vor.u32 %v841_v34, %v689_v33  ;;  %v691_v37 = vld [vmem:[%s1301_s0 + $0xb0] sm:$0xf0]  ;;  %v785_v41 = vld [vmem:[%s1301_s0 + $0x160] sm:$0xf]  ;;  %v865_v42 = vld [vmem:[%s1301_s0 + $0x16c] sm:$0xf0] }
   0xa   :  { %v439_v38 = vsel %vm437_vm0, %v377_v31, 0  ;;  %v442_v39 = vsel %vm437_vm0, %v378_v32, 0  ;;  %v694_v40 = vor.u32 %v839_v35, %v691_v37  ;;  %v863_v43 = vld [vmem:[%s1301_s0 + $0x164] sm:$0xf]  ;;  %v673_v46 = vld [vmem:[%s1301_s0 + $0x80] sm:$0xf]  ;;  %v786_v56 = vor.u32 %v865_v42, %v785_v41 }
   0xb   :  { %465 = vmatpush.bf16.msrb.mxu1 %v439_v38  ;;  %491 = vmatpush.bf16.msrb.mxu3 %v442_v39  ;;  %v837_v47 = vld [vmem:[%s1301_s0 + $0x8c] sm:$0xf0]  ;;  %v835_v48 = vld [vmem:[%s1301_s0 + $0x84] sm:$0xf]  ;;  %v787_v49 = vld [vmem:[%s1301_s0 + $0x170] sm:$0xf0] }
   0xc   :  { %451 = vmatpush.bf16.msrb.mxu0 %v706_v23  ;;  %v675_v50 = vld [vmem:[%s1301_s0 + $0x90] sm:$0xf0]  ;;  %v76_v51 = vld [vmem:[%s1302_s3] sm:$0xf]  ;;  %v674_v52 = vor.u32 %v837_v47, %v673_v46  ;;  %v833_v55 = vld [vmem:[%s1301_s0 + $0x6c] sm:$0xf0]  ;;  %v790_v57 = vor.u32 %v863_v43, %v787_v49 }
   0xd   :  { %477 = vmatpush.bf16.msrb.mxu2 %v710_v27  ;;  %606 = vmatmul.msk.bf16.vlgmr.msra.gmra.mxu3 %vm101_vm1, %v76_v51  ;;  %v678_v53 = vor.u32 %v835_v48, %v675_v50  ;;  %v657_v54 = vld [vmem:[%s1301_s0 + $0x60] sm:$0xf]  ;;  %v831_v59 = vld [vmem:[%s1301_s0 + $0x64] sm:$0xf]  ;;  %v659_v60 = vld [vmem:[%s1301_s0 + $0x70] sm:$0xf0] }
   0xe   :  { %603 = vmatmul.msk.bf16.vlgmr.msra.gmra.mxu0 %vm101_vm1, %v76_v51  ;;  %v769_v58 = vld [vmem:[%s1301_s0 + $0x140] sm:$0xf]  ;;  %v861_v61 = vld [vmem:[%s1301_s0 + $0x14c] sm:$0xf0]  ;;  %v859_v62 = vld [vmem:[%s1301_s0 + $0x144] sm:$0xf]  ;;  %605 = vmatmul.msk.bf16.vlgmr.msra.gmra.mxu2 %vm101_vm1, %v76_v51  ;;  %v658_v0 = vor.u32 %v833_v55, %v657_v54  ;;  %v662_v1 = vor.u32 %v831_v59, %v659_v60 }
   0xf   :  { %466 = vmatpush.bf16.msrb.mxu1 %v802_v44  ;;  %492 = vmatpush.bf16.msrb.mxu3 %v806_v45  ;;  %v771_v63 = vld [vmem:[%s1301_s0 + $0x150] sm:$0xf0]  ;;  %v753_v2 = vld [vmem:[%s1301_s0 + $0x120] sm:$0xf]  ;;  %v829_v4 = vld [vmem:[%s1301_s0 + $0x4c] sm:$0xf0]  ;;  %v770_v5 = vor.u32 %v861_v61, %v769_v58 }
  0x10   :  { %452 = vmatpush.bf16.msrb.mxu0 %v690_v36  ;;  %604 = vmatmul.msk.bf16.vlgmr.msra.gmra.mxu1 %vm101_vm1, %v76_v51  ;;  %v641_v3 = vld [vmem:[%s1301_s0 + $0x40] sm:$0xf]  ;;  %v774_v6 = vor.u32 %v859_v62, %v771_v63  ;;  %v857_v7 = vld [vmem:[%s1301_s0 + $0x12c] sm:$0xf0]  ;;  %v827_v8 = vld [vmem:[%s1301_s0 + $0x44] sm:$0xf] }
  0x11   :  { %478 = vmatpush.bf16.msrb.mxu2 %v694_v40  ;;  %v643_v9 = vld [vmem:[%s1301_s0 + $0x50] sm:$0xf0]  ;;  %v855_v10 = vld [vmem:[%s1301_s0 + $0x124] sm:$0xf]  ;;  %v75_v12 = vld [vmem:[%s1301_s0 + $0x1a8] sm:$0xff]  ;;  %v642_v13 = vor.u32 %v829_v4, %v641_v3  ;;  %v754_v18 = vor.u32 %v857_v7, %v753_v2 }
  0x12   :  { %v755_v11 = vld [vmem:[%s1301_s0 + $0x130] sm:$0xf0]  ;;  %v323_v14 = vunpack.c.l.b16 %v75_v12  ;;  %v646_v15 = vor.u32 %v827_v8, %v643_v9  ;;  %v625_v16 = vld [vmem:[%s1301_s0 + $0x20] sm:$0xf]  ;;  %v825_v17 = vld [vmem:[%s1301_s0 + $0x2c] sm:$0xf0]  ;;  %v324_v26 = vunpack.c.h.b16 %v75_v12 }
  0x13   :  { %467 = vmatpush.bf16.msrb.mxu1 %v786_v56  ;;  %493 = vmatpush.bf16.msrb.mxu3 %v790_v57  ;;  %v758_v19 = vor.u32 %v855_v10, %v755_v11  ;;  %v737_v20 = vld [vmem:[%s1301_s0 + $0x100] sm:$0xf]  ;;  %v823_v21 = vld [vmem:[%s1301_s0 + $0x24] sm:$0xf]  ;;  %v627_v22 = vld [vmem:[%s1301_s0 + $0x30] sm:$0xf0]  ;;  %v626_v30 = vor.u32 %v825_v17, %v625_v16 }
  0x14   :  { %453 = vmatpush.bf16.msrb.mxu0 %v674_v52  ;;  %v853_v23 = vld [vmem:[%s1301_s0 + $0x10c] sm:$0xf0]  ;;  %v851_v24 = vld [vmem:[%s1301_s0 + $0x104] sm:$0xf]  ;;  %v739_v25 = vld [vmem:[%s1301_s0 + $0x110] sm:$0xf0]  ;;  %v379_v29 = vpack.c.b16 %v323_v14, %v323_v14  ;;  %v630_v32 = vor.u32 %v823_v21, %v627_v22  ;;  %v380_v45 = vpack.c.b16 %v324_v26, %v324_v26 }
  0x15   :  { %479 = vmatpush.bf16.msrb.mxu2 %v678_v53  ;;  %v729_v27 = vld [vmem:[%s1301_s0 + $0xe8] sm:$0xf]  ;;  %v850_v28 = vld [vmem:[%s1301_s0 + $0xf4] sm:$0xf0]  ;;  %v21_v31 = vld [vmem:[%s1303_s1] sm:$0xff]  ;;  %v738_v36 = vor.u32 %v853_v23, %v737_v20  ;;  %v742_v37 = vor.u32 %v851_v24, %v739_v25 }
  0x16   :  { %v609_v33 = vld [vmem:[%s1301_s0] sm:$0xf]  ;;  %v821_v34 = vld [vmem:[%s1301_s0 + $0xc] sm:$0xf0]  ;;  %v819_v35 = vld [vmem:[%s1301_s0 + $0x4] sm:$0xf]  ;;  %v159_v41 = vunpack.c.h.b16 %v21_v31  ;;  %v730_v42 = vor.u32 %v850_v28, %v729_v27  ;;  %v158_v50 = vunpack.c.l.b16 %v21_v31 }
  0x17   :  { %468 = vmatpush.bf16.msrb.mxu1 %v770_v5  ;;  %494 = vmatpush.bf16.msrb.mxu3 %v774_v6  ;;  %v611_v38 = vld [vmem:[%s1301_s0 + $0x10] sm:$0xf0]  ;;  %v848_v39 = vld [vmem:[%s1301_s0 + $0xec] sm:$0xf]  ;;  %v731_v40 = vld [vmem:[%s1301_s0 + $0xf8] sm:$0xf0]  ;;  %v610_v49 = vor.u32 %v821_v34, %v609_v33 }
  0x18   :  { %454 = vmatpush.bf16.msrb.mxu0 %v658_v0  ;;  %v713_v43 = vld [vmem:[%s1301_s0 + $0xc8] sm:$0xf]  ;;  %v846_v44 = vld [vmem:[%s1301_s0 + $0xd4] sm:$0xf0]  ;;  %v445_v46 = vsel %vm437_vm0, %v379_v29, 0  ;;  %v614_v51 = vor.u32 %v819_v35, %v611_v38  ;;  %v734_v52 = vor.u32 %v848_v39, %v731_v40  ;;  %v1133_v53 = vpack.c.b16 %v159_v41, %v159_v41 }
  0x19   :  { %480 = vmatpush.bf16.msrb.mxu2 %v662_v1  ;;  %v809_v47 = vld [vmem:[%s1301_s0 + $0x188] sm:$0xf]  ;;  %v870_v48 = vld [vmem:[%s1301_s0 + $0x194] sm:$0xf0]  ;;  %v844_v55 = vld [vmem:[%s1301_s0 + $0xcc] sm:$0xf]  ;;  %v714_v57 = vor.u32 %v846_v44, %v713_v43  ;;  %v1151_v62 = vpack.c.b16 %v158_v50, %v158_v50 }
  0x1a   :  { %v697_v54 = vld [vmem:[%s1301_s0 + $0xa8] sm:$0xf]  ;;  %v715_v56 = vld [vmem:[%s1301_s0 + $0xd8] sm:$0xf0]  ;;  %v810_v58 = vor.u32 %v870_v48, %v809_v47  ;;  %v448_v59 = vsel %vm437_vm0, %v380_v45, 0 }
  0x1b   :  { %469 = vmatpush.bf16.msrb.mxu1 %v754_v18  ;;  %495 = vmatpush.bf16.msrb.mxu3 %v758_v19  ;;  %v868_v60 = vld [vmem:[%s1301_s0 + $0x18c] sm:$0xf]  ;;  %v811_v61 = vld [vmem:[%s1301_s0 + $0x198] sm:$0xf0]  ;;  %v842_v63 = vld [vmem:[%s1301_s0 + $0xb4] sm:$0xf0]  ;;  %v718_v2 = vor.u32 %v844_v55, %v715_v56 }
  0x1c   :  { %455 = vmatpush.bf16.msrb.mxu0 %v642_v13  ;;  %v793_v0 = vld [vmem:[%s1301_s0 + $0x168] sm:$0xf]  ;;  %v866_v1 = vld [vmem:[%s1301_s0 + $0x174] sm:$0xf0]  ;;  %v814_v3 = vor.u32 %v868_v60, %v811_v61  ;;  %v840_v4 = vld [vmem:[%s1301_s0 + $0xac] sm:$0xf]  ;;  %v698_v6 = vor.u32 %v842_v63, %v697_v54 }
  0x1d   :  { %481 = vmatpush.bf16.msrb.mxu2 %v646_v15  ;;  %v699_v5 = vld [vmem:[%s1301_s0 + $0xb8] sm:$0xf0]  ;;  %v794_v7 = vor.u32 %v866_v1, %v793_v0  ;;  %v681_v8 = vld [vmem:[%s1301_s0 + $0x88] sm:$0xf]  ;;  %v864_v9 = vld [vmem:[%s1301_s0 + $0x16c] sm:$0xf] }
  0x1e   :  { %v795_v10 = vld [vmem:[%s1301_s0 + $0x178] sm:$0xf0]  ;;  %v838_v11 = vld [vmem:[%s1301_s0 + $0x94] sm:$0xf0]  ;;  %v777_v12 = vld [vmem:[%s1301_s0 + $0x148] sm:$0xf]  ;;  %v702_v14 = vor.u32 %v840_v4, %v699_v5 }
  0x1f   :  { %470 = vmatpush.bf16.msrb.mxu1 %v738_v36  ;;  %496 = vmatpush.bf16.msrb.mxu3 %v742_v37  ;;  %v862_v13 = vld [vmem:[%s1301_s0 + $0x154] sm:$0xf0]  ;;  %v798_v15 = vor.u32 %v864_v9, %v795_v10  ;;  %v836_v16 = vld [vmem:[%s1301_s0 + $0x8c] sm:$0xf]  ;;  %v683_v17 = vld [vmem:[%s1301_s0 + $0x98] sm:$0xf0]  ;;  %v682_v18 = vor.u32 %v838_v11, %v681_v8 }
  0x20   :  { %456 = vmatpush.bf16.msrb.mxu0 %v626_v30  ;;  %v778_v19 = vor.u32 %v862_v13, %v777_v12  ;;  %v665_v20 = vld [vmem:[%s1301_s0 + $0x68] sm:$0xf]  ;;  %v860_v21 = vld [vmem:[%s1301_s0 + $0x14c] sm:$0xf]  ;;  %v779_v22 = vld [vmem:[%s1301_s0 + $0x158] sm:$0xf0]  ;;  %v686_v26 = vor.u32 %v836_v16, %v683_v17 }
  0x21   :  { %482 = vmatpush.bf16.msrb.mxu2 %v630_v32  ;;  %v834_v23 = vld [vmem:[%s1301_s0 + $0x74] sm:$0xf0]  ;;  %v761_v24 = vld [vmem:[%s1301_s0 + $0x128] sm:$0xf]  ;;  %v782_v27 = vor.u32 %v860_v21, %v779_v22  ;;  %v832_v28 = vld [vmem:[%s1301_s0 + $0x6c] sm:$0xf] }
  0x22   :  { %816 = vmatmul.msk.bf16.vlgmr.msrb.gmra.mxu3 %vm433_vm2, %v1133_v53  ;;  %815 = vmatmul.msk.bf16.vlgmr.msrb.gmra.mxu1 %vm433_vm2, %v1133_v53  ;;  %v858_v25 = vld [vmem:[%s1301_s0 + $0x134] sm:$0xf0]  ;;  %v667_v29 = vld [vmem:[%s1301_s0 + $0x78] sm:$0xf0]  ;;  %v666_v30 = vor.u32 %v834_v23, %v665_v20  ;;  %v649_v32 = vld [vmem:[%s1301_s0 + $0x48] sm:$0xf] }
  0x23   :  { %502 = vmatpush.bf16.msra.mxu1 %v730_v42  ;;  %517 = vmatpush.bf16.msra.mxu3 %v445_v46  ;;  %v762_v31 = vor.u32 %v858_v25, %v761_v24  ;;  %v856_v33 = vld [vmem:[%s1301_s0 + $0x12c] sm:$0xf]  ;;  %v763_v34 = vld [vmem:[%s1301_s0 + $0x138] sm:$0xf0]  ;;  %v830_v35 = vld [vmem:[%s1301_s0 + $0x54] sm:$0xf0]  ;;  %v670_v38 = vor.u32 %v832_v28, %v667_v29 }
  0x24   :  { %457 = vmatpush.bf16.msrb.mxu0 %v610_v49  ;;  %v745_v36 = vld [vmem:[%s1301_s0 + $0x108] sm:$0xf]  ;;  %v854_v37 = vld [vmem:[%s1301_s0 + $0x114] sm:$0xf0]  ;;  %v766_v39 = vor.u32 %v856_v33, %v763_v34  ;;  %v828_v40 = vld [vmem:[%s1301_s0 + $0x4c] sm:$0xf]  ;;  %v650_v42 = vor.u32 %v830_v35, %v649_v32 }
  0x25   :  { %483 = vmatpush.bf16.msrb.mxu2 %v614_v51  ;;  %v651_v41 = vld [vmem:[%s1301_s0 + $0x58] sm:$0xf0]  ;;  %v746_v43 = vor.u32 %v854_v37, %v745_v36  ;;  %v852_v44 = vld [vmem:[%s1301_s0 + $0x10c] sm:$0xf]  ;;  %v633_v46 = vld [vmem:[%s1301_s0 + $0x28] sm:$0xf] }
  0x26   :  { %v747_v45 = vld [vmem:[%s1301_s0 + $0x118] sm:$0xf0]  ;;  %v826_v47 = vld [vmem:[%s1301_s0 + $0x34] sm:$0xf0]  ;;  %v654_v48 = vor.u32 %v828_v40, %v651_v41  ;;  %v824_v50 = vld [vmem:[%s1301_s0 + $0x2c] sm:$0xf] }
  0x27   :  { %503 = vmatpush.bf16.msra.mxu1 %v714_v57  ;;  %518 = vmatpush.bf16.msra.mxu3 %v810_v58  ;;  %v750_v49 = vor.u32 %v852_v44, %v747_v45  ;;  %v635_v51 = vld [vmem:[%s1301_s0 + $0x38] sm:$0xf0]  ;;  %v617_v54 = vld [vmem:[%s1301_s0 + $0x8] sm:$0xf]  ;;  %v822_v55 = vld [vmem:[%s1301_s0 + $0x14] sm:$0xf0] }
  0x28   :  { %528 = vmatpush.bf16.msra.mxu0 %v734_v52  ;;  %484 = vmatmul.bf16.vlgmr.msrb.gmra.mxu2 %v1151_v62  ;;  %v634_v52 = vor.u32 %v826_v47, %v633_v46  ;;  %v638_v56 = vor.u32 %v824_v50, %v635_v51  ;;  %v820_v57 = vld [vmem:[%s1301_s0 + $0xc] sm:$0xf]  ;;  %v619_v58 = vld [vmem:[%s1301_s0 + $0x18] sm:$0xf0] }
  0x29   :  { %543 = vmatpush.bf16.msra.mxu2 %v448_v59  ;;  %458 = vmatmul.bf16.vlgmr.msrb.gmra.mxu0 %v1151_v62  ;;  %v618_v59 = vor.u32 %v822_v55, %v617_v54  ;;  %v622_v60 = vor.u32 %v820_v57, %v619_v58 }
  0x2b   :  { %504 = vmatpush.bf16.msra.mxu1 %v698_v6  ;;  %519 = vmatpush.bf16.msra.mxu3 %v794_v7 }
  0x2c   :  { %529 = vmatpush.bf16.msra.mxu0 %v718_v2 }
  0x2d   :  { %544 = vmatpush.bf16.msra.mxu2 %v814_v3 }
  0x2f   :  { %505 = vmatpush.bf16.msra.mxu1 %v682_v18  ;;  %520 = vmatpush.bf16.msra.mxu3 %v778_v19 }
  0x30   :  { %530 = vmatpush.bf16.msra.mxu0 %v702_v14 }
  0x31   :  { %545 = vmatpush.bf16.msra.mxu2 %v798_v15 }
  0x33   :  { %506 = vmatpush.bf16.msra.mxu1 %v666_v30  ;;  %521 = vmatpush.bf16.msra.mxu3 %v762_v31 }
  0x34   :  { %531 = vmatpush.bf16.msra.mxu0 %v686_v26 }
  0x35   :  { %546 = vmatpush.bf16.msra.mxu2 %v782_v27 }
  0x37   :  { %507 = vmatpush.bf16.msra.mxu1 %v650_v42  ;;  %522 = vmatpush.bf16.msra.mxu3 %v746_v43 }
  0x38   :  { %532 = vmatpush.bf16.msra.mxu0 %v670_v38 }
  0x39   :  { %547 = vmatpush.bf16.msra.mxu2 %v766_v39 }
  0x3a   :  { %817 = vmatmul.msk.bf16.vlgmr.msra.gmra.mxu3 %vm433_vm2, %v1133_v53 }
  0x3b   :  { %508 = vmatpush.bf16.msra.mxu1 %v634_v52 }
  0x3c   :  { %533 = vmatpush.bf16.msra.mxu0 %v654_v48 }
  0x3d   :  { %548 = vmatpush.bf16.msra.mxu2 %v750_v49 }
  0x3f   :  { %509 = vmatpush.bf16.msra.mxu1 %v618_v59 }
  0x40   :  { %818 = vmatmul.msk.bf16.vlgmr.msra.gmra.mxu2 %vm433_vm2, %v1133_v53  ;;  %534 = vmatpush.bf16.msra.mxu0 %v638_v56 }
  0x42   :  { %510 = vmatmul.bf16.vlgmr.msra.gmra.mxu1 %v1151_v62 }
  0x44   :  { %535 = vmatpush.bf16.msra.mxu0 %v622_v60 }
  0x47   :  { %536 = vmatmul.bf16.vlgmr.msra.gmra.mxu0 %v1151_v62 }
  0x8b   :  { %v114_v61 = vpop.f32.mrf.mxu0 }
  0x8d   :  { %v127_v63 = vpop.f32.mrf.mxu1 }
  0x90   :  { %v153_v0 = vpop.f32.mrf.mxu3 }
  0x91   :  { %v140_v1 = vpop.f32.mrf.mxu2 }
  0x93   :  { %v116_v2 = vpop.f32.mrf.mxu0 }
  0x95   :  { %v129_v3 = vpop.f32.mrf.mxu1 }
  0x98   :  { %v155_v4 = vpop.f32.mrf.mxu3 }
  0x99   :  { %v142_v5 = vpop.f32.mrf.mxu2 }
  0x9f   :  { %v472_v8 = vpop.f32.mrf.mxu1 }
  0xa5   :  { %v498_v9 = vpop.f32.mrf.mxu3 }
  0xa6   :  { %v459_v6 = vpop.f32.mrf.mxu0 }
  0xa7   :  { %v460_v7 = vadd.f32 %v459_v6, %v114_v61  ;;  %v474_v13 = vpop.f32.mrf.mxu1 }
  0xa9   :  { %v473_v53 = vadd.f32 %v472_v8, %v460_v7 }
  0xab   :  { %554 = vst [vmem:[%s1304_s4] sm:$0xff] %v473_v53  ;;  %v485_v10 = vpop.f32.mrf.mxu2  ;;  %v565_v30 = vmul.f32 %v473_v53, %v473_v53 }
  0xac   :  { %v486_v11 = vadd.f32 %v485_v10, %v127_v63 }
  0xad   :  { %v500_v14 = vpop.f32.mrf.mxu3 }
  0xae   :  { %v461_v62 = vpop.f32.mrf.mxu0  ;;  %v499_v12 = vadd.f32 %v498_v9, %v486_v11 }
  0xb0   :  { %555 = vst [vmem:[%s1304_s4 + $0x8] sm:$0xff] %v499_v12  ;;  %v558_v23 = vadd.f32 %v499_v12, %v473_v53  ;;  %v566_v27 = vmul.f32 %v499_v12, %v499_v12 }
  0xb2   :  { %v569_v35 = vadd.f32 %v566_v27, %v565_v30 }
  0xb3   :  { %v487_v15 = vpop.f32.mrf.mxu2 }
  0xbd   :  { %v524_v16 = vpop.f32.mrf.mxu3 }
  0xbf   :  { %v511_v17 = vpop.f32.mrf.mxu1 }
  0xc0   :  { %v512_v18 = vadd.f32 %v511_v17, %v140_v1 }
  0xc2   :  { %v525_v21 = vadd.f32 %v524_v16, %v512_v18 }
  0xc3   :  { %v550_v19 = vpop.f32.mrf.mxu2 }
  0xc4   :  { %v537_v20 = vpop.f32.mrf.mxu0  ;;  %556 = vst [vmem:[%s1304_s4 + $0x10] sm:$0xff] %v525_v21  ;;  %v559_v25 = vadd.f32 %v558_v23, %v525_v21  ;;  %v567_v32 = vmul.f32 %v525_v21, %v525_v21 }
  0xc5   :  { %v538_v22 = vadd.f32 %v537_v20, %v153_v0  ;;  %v526_v26 = vpop.f32.mrf.mxu3 }
  0xc6   :  { %v570_v36 = vadd.f32 %v569_v35, %v567_v32 }
  0xc7   :  { %v551_v24 = vadd.f32 %v550_v19, %v538_v22  ;;  %v513_v29 = vpop.f32.mrf.mxu1 }
  0xc9   :  { %557 = vst [vmem:[%s1304_s4 + $0x18] sm:$0xff] %v551_v24  ;;  %v560_v28 = vadd.f32 %v559_v25, %v551_v24  ;;  %v568_v34 = vmul.f32 %v551_v24, %v551_v24 }
  0xcb   :  { %v552_v31 = vpop.f32.mrf.mxu2  ;;  %561 = vadd.xlane.f32.xlu0 %v560_v28  ;;  %v571_v37 = vadd.f32 %v570_v36, %v568_v34 }
  0xcc   :  { %v539_v33 = vpop.f32.mrf.mxu0 }
  0xd3   :  { %572 = vadd.xlane.f32.xlu0 %v571_v37 }
 0x13e   :  { %v562_v38 = vpop.xlane.xlu0 %561 }
 0x13f   :  { %564 = vst.msk [vmem:[%s1305_s5] sm:$0xff] %vm563_vm3, %v562_v38 }
 0x146   :  { %v573_v39 = vpop.xlane.xlu0 %572 }
 0x147   :  { %574 = vst.msk [vmem:[%s1306_s6] sm:$0xff] %vm563_vm3, %v573_v39 }

// kernel: run.51
= control target key start
LH: loop header
LB: loop body
LE: loop exit
PB: predicated region body
PF: predicated region fallthrough
CT: control target
= control target key end

     0   :  { %vm678_vm0 = vcmask 392192   ;;  %vm899_vm1 = vcmask 7168   ;;  %s2192_s0 = inlined_call_operand.vmem [shape: bf16[432,512], index: 0, kind: input, shape index: {}]   ;;  %s2193_s1 = inlined_call_operand.vmem [shape: bf16[8,432], index: 1, kind: input, shape index: {}]   ;;  %s2194_s2 = inlined_call_operand.vmem [shape: f32[8,512], index: 2, kind: output, shape index: {0}]   ;;  %s2195_s3 = inlined_call_operand.vmem [shape: f32[1,8,1], index: 3, kind: output, shape index: {1}]   ;;  %s2196_s4 = inlined_call_operand.vmem [shape: f32[1,8,1], index: 4, kind: output, shape index: {2}]  }
   0x1   :  { %v1037_v0 = vld [vmem:[%s2192_s0 + $0xe0] sm:$0xf]  ;;  %v1389_v1 = vld [vmem:[%s2192_s0 + $0xec] sm:$0xf0]  ;;  %v1387_v35 = vld [vmem:[%s2192_s0 + $0xe4] sm:$0xf] }
   0x2   :  { %v1165_v2 = vld [vmem:[%s2192_s0 + $0x1e0] sm:$0xf]  ;;  %v1038_v3 = vor.u32 %v1389_v1, %v1037_v0  ;;  %v1421_v4 = vld [vmem:[%s2192_s0 + $0x1ec] sm:$0xf0]  ;;  %v1039_v36 = vld [vmem:[%s2192_s0 + $0xf0] sm:$0xf0] }
   0x3   :  { %v1293_v5 = vld [vmem:[%s2192_s0 + $0x2e0] sm:$0xf]  ;;  %v1453_v6 = vld [vmem:[%s2192_s0 + $0x2ec] sm:$0xf0]  ;;  %v1166_v7 = vor.u32 %v1421_v4, %v1165_v2  ;;  %v1042_v42 = vor.u32 %v1387_v35, %v1039_v36  ;;  %v1383_v46 = vld [vmem:[%s2192_s0 + $0xc4] sm:$0xf] }
   0x4   :  { %v1294_v8 = vor.u32 %v1453_v6, %v1293_v5  ;;  %v1341_v9 = vld [vmem:[%s2192_s0 + $0x340] sm:$0xf]  ;;  %v1465_v10 = vld [vmem:[%s2192_s0 + $0x34c] sm:$0xf0]  ;;  %682 = vmatpush.bf16.msra.mxu0 %v1038_v3  ;;  %v1023_v47 = vld [vmem:[%s2192_s0 + $0xd0] sm:$0xf0] }
   0x5   :  { %v1021_v11 = vld [vmem:[%s2192_s0 + $0xc0] sm:$0xf]  ;;  %v1342_v12 = vor.u32 %v1465_v10, %v1341_v9  ;;  %v1385_v13 = vld [vmem:[%s2192_s0 + $0xcc] sm:$0xf0]  ;;  %695 = vmatpush.bf16.msra.mxu1 %v1166_v7  ;;  %v1026_v56 = vor.u32 %v1383_v46, %v1023_v47  ;;  %v1379_v58 = vld [vmem:[%s2192_s0 + $0xa4] sm:$0xf] }
   0x6   :  { %v1149_v14 = vld [vmem:[%s2192_s0 + $0x1c0] sm:$0xf]  ;;  %v1417_v15 = vld [vmem:[%s2192_s0 + $0x1cc] sm:$0xf0]  ;;  %708 = vmatpush.bf16.msra.mxu2 %v1294_v8  ;;  %v1022_v16 = vor.u32 %v1385_v13, %v1021_v11  ;;  %v1007_v59 = vld [vmem:[%s2192_s0 + $0xb0] sm:$0xf0] }
   0x7   :  { %v1150_v17 = vor.u32 %v1417_v15, %v1149_v14  ;;  %v1277_v18 = vld [vmem:[%s2192_s0 + $0x2c0] sm:$0xf]  ;;  %v1449_v19 = vld [vmem:[%s2192_s0 + $0x2cc] sm:$0xf0]  ;;  %726 = vmatpush.bf16.msra.mxu3 %v1342_v12  ;;  %v1010_v4 = vor.u32 %v1379_v58, %v1007_v59  ;;  %v1375_v6 = vld [vmem:[%s2192_s0 + $0x84] sm:$0xf] }
   0x8   :  { %v1325_v20 = vld [vmem:[%s2192_s0 + $0x320] sm:$0xf]  ;;  %v1278_v21 = vor.u32 %v1449_v19, %v1277_v18  ;;  %v1461_v22 = vld [vmem:[%s2192_s0 + $0x32c] sm:$0xf0]  ;;  %683 = vmatpush.bf16.msra.mxu0 %v1022_v16  ;;  %v991_v7 = vld [vmem:[%s2192_s0 + $0x90] sm:$0xf0] }
   0x9   :  { %v1005_v23 = vld [vmem:[%s2192_s0 + $0xa0] sm:$0xf]  ;;  %v1381_v24 = vld [vmem:[%s2192_s0 + $0xac] sm:$0xf0]  ;;  %v1326_v25 = vor.u32 %v1461_v22, %v1325_v20  ;;  %696 = vmatpush.bf16.msra.mxu1 %v1150_v17  ;;  %v994_v16 = vor.u32 %v1375_v6, %v991_v7  ;;  %v1371_v17 = vld [vmem:[%s2192_s0 + $0x64] sm:$0xf] }
   0xa   :  { %v1133_v26 = vld [vmem:[%s2192_s0 + $0x1a0] sm:$0xf]  ;;  %v1413_v27 = vld [vmem:[%s2192_s0 + $0x1ac] sm:$0xf0]  ;;  %v1006_v29 = vor.u32 %v1381_v24, %v1005_v23  ;;  %709 = vmatpush.bf16.msra.mxu2 %v1278_v21  ;;  %v975_v18 = vld [vmem:[%s2192_s0 + $0x70] sm:$0xf0] }
   0xb   :  { %v1261_v28 = vld [vmem:[%s2192_s0 + $0x2a0] sm:$0xf]  ;;  %v1445_v30 = vld [vmem:[%s2192_s0 + $0x2ac] sm:$0xf0]  ;;  %v1134_v33 = vor.u32 %v1413_v27, %v1133_v26  ;;  %727 = vmatpush.bf16.msra.mxu3 %v1326_v25  ;;  %v1295_v35 = vld [vmem:[%s2192_s0 + $0x2f0] sm:$0xf0] }
   0xc   :  { %v1309_v31 = vld [vmem:[%s2192_s0 + $0x300] sm:$0xf]  ;;  %v1457_v32 = vld [vmem:[%s2192_s0 + $0x30c] sm:$0xf0]  ;;  %v1262_v34 = vor.u32 %v1445_v30, %v1261_v28  ;;  %684 = vmatpush.bf16.msra.mxu0 %v1006_v29  ;;  %v16_v28 = vld [vmem:[%s2193_s1 + $0x8] sm:$0xff] }
   0xd   :  { %v989_v37 = vld [vmem:[%s2192_s0 + $0x80] sm:$0xf]  ;;  %v1310_v38 = vor.u32 %v1457_v32, %v1309_v31  ;;  %v1377_v39 = vld [vmem:[%s2192_s0 + $0x8c] sm:$0xf0]  ;;  %697 = vmatpush.bf16.msra.mxu1 %v1134_v33  ;;  %v1367_v29 = vld [vmem:[%s2192_s0 + $0x44] sm:$0xf]  ;;  %v130_v32 = vunpack.c.h.b16 %v16_v28  ;;  %v978_v33 = vor.u32 %v1371_v17, %v975_v18 }
   0xe   :  { %v1117_v40 = vld [vmem:[%s2192_s0 + $0x180] sm:$0xf]  ;;  %v1409_v41 = vld [vmem:[%s2192_s0 + $0x18c] sm:$0xf0]  ;;  %v990_v45 = vor.u32 %v1377_v39, %v989_v37  ;;  %710 = vmatpush.bf16.msra.mxu2 %v1262_v34  ;;  %v1419_v30 = vld [vmem:[%s2192_s0 + $0x1e4] sm:$0xf] }
   0xf   :  { %v1245_v43 = vld [vmem:[%s2192_s0 + $0x280] sm:$0xf]  ;;  %v1441_v44 = vld [vmem:[%s2192_s0 + $0x28c] sm:$0xf0]  ;;  %v1118_v48 = vor.u32 %v1409_v41, %v1117_v40  ;;  %728 = vmatpush.bf16.msra.mxu3 %v1310_v38  ;;  %v1167_v31 = vld [vmem:[%s2192_s0 + $0x1f0] sm:$0xf0]  ;;  %v1711_v40 = vpack.c.b16 %v130_v32, %v130_v32  ;;  %v129_v41 = vunpack.c.l.b16 %v16_v28 }
  0x10   :  { %v1246_v49 = vor.u32 %v1441_v44, %v1245_v43  ;;  %v973_v50 = vld [vmem:[%s2192_s0 + $0x60] sm:$0xf]  ;;  %v1373_v51 = vld [vmem:[%s2192_s0 + $0x6c] sm:$0xf0]  ;;  %685 = vmatpush.bf16.msra.mxu0 %v990_v45  ;;  %v1451_v34 = vld [vmem:[%s2192_s0 + $0x2e4] sm:$0xf]  ;;  %v1170_v44 = vor.u32 %v1419_v30, %v1167_v31 }
  0x11   :  { %v1101_v52 = vld [vmem:[%s2192_s0 + $0x160] sm:$0xf]  ;;  %v1405_v53 = vld [vmem:[%s2192_s0 + $0x16c] sm:$0xf0]  ;;  %v974_v57 = vor.u32 %v1373_v51, %v973_v50  ;;  %698 = vmatpush.bf16.msra.mxu1 %v1118_v48  ;;  %v959_v37 = vld [vmem:[%s2192_s0 + $0x50] sm:$0xf0]  ;;  %v1298_v45 = vor.u32 %v1451_v34, %v1295_v35 }
  0x12   :  { %v1229_v54 = vld [vmem:[%s2192_s0 + $0x260] sm:$0xf]  ;;  %v1437_v55 = vld [vmem:[%s2192_s0 + $0x26c] sm:$0xf0]  ;;  %711 = vmatpush.bf16.msra.mxu2 %v1246_v49  ;;  %v1102_v60 = vor.u32 %v1405_v53, %v1101_v52  ;;  %v1463_v38 = vld [vmem:[%s2192_s0 + $0x344] sm:$0xf]  ;;  %1355 = vmatmul.msk.bf16.vlgmr.msra.gmra.mxu3 %vm678_vm0, %v1711_v40  ;;  %v962_v49 = vor.u32 %v1367_v29, %v959_v37 }
  0x13   :  { %734 = vmatpush.bf16.msrb.mxu3 %v1042_v42  ;;  %v1230_v61 = vor.u32 %v1437_v55, %v1229_v54  ;;  %v957_v62 = vld [vmem:[%s2192_s0 + $0x40] sm:$0xf]  ;;  %v1369_v63 = vld [vmem:[%s2192_s0 + $0x4c] sm:$0xf0]  ;;  %v1343_v39 = vld [vmem:[%s2192_s0 + $0x350] sm:$0xf0]  ;;  %v1733_v54 = vpack.c.b16 %v129_v41, %v129_v41 }
  0x14   :  { %v1085_v0 = vld [vmem:[%s2192_s0 + $0x140] sm:$0xf]  ;;  %v1401_v1 = vld [vmem:[%s2192_s0 + $0x14c] sm:$0xf0]  ;;  %686 = vmatpush.bf16.msra.mxu0 %v974_v57  ;;  %v958_v5 = vor.u32 %v1369_v63, %v957_v62  ;;  %v1363_v46 = vld [vmem:[%s2192_s0 + $0x24] sm:$0xf]  ;;  %v1346_v50 = vor.u32 %v1463_v38, %v1343_v39 }
  0x15   :  { %v1213_v2 = vld [vmem:[%s2192_s0 + $0x240] sm:$0xf]  ;;  %v1433_v3 = vld [vmem:[%s2192_s0 + $0x24c] sm:$0xf0]  ;;  %699 = vmatpush.bf16.msra.mxu1 %v1102_v60  ;;  %v1086_v8 = vor.u32 %v1401_v1, %v1085_v0  ;;  %v943_v47 = vld [vmem:[%s2192_s0 + $0x30] sm:$0xf0] }
  0x16   :  { %712 = vmatpush.bf16.msra.mxu2 %v1230_v61  ;;  %v1214_v9 = vor.u32 %v1433_v3, %v1213_v2  ;;  %v941_v10 = vld [vmem:[%s2192_s0 + $0x20] sm:$0xf]  ;;  %v1365_v11 = vld [vmem:[%s2192_s0 + $0x2c] sm:$0xf0]  ;;  %v1415_v48 = vld [vmem:[%s2192_s0 + $0x1c4] sm:$0xf]  ;;  %v946_v60 = vor.u32 %v1363_v46, %v943_v47 }
  0x17   :  { %735 = vmatpush.bf16.msrb.mxu3 %v1026_v56  ;;  %v1069_v12 = vld [vmem:[%s2192_s0 + $0x120] sm:$0xf]  ;;  %v1397_v13 = vld [vmem:[%s2192_s0 + $0x12c] sm:$0xf0]  ;;  %v942_v20 = vor.u32 %v1365_v11, %v941_v10  ;;  %v1151_v51 = vld [vmem:[%s2192_s0 + $0x1d0] sm:$0xf0] }
  0x18   :  { %v1197_v14 = vld [vmem:[%s2192_s0 + $0x220] sm:$0xf]  ;;  %v1429_v15 = vld [vmem:[%s2192_s0 + $0x22c] sm:$0xf0]  ;;  %687 = vmatpush.bf16.msra.mxu0 %v958_v5  ;;  %v1070_v24 = vor.u32 %v1397_v13, %v1069_v12  ;;  %v1447_v52 = vld [vmem:[%s2192_s0 + $0x2c4] sm:$0xf]  ;;  %v1154_v61 = vor.u32 %v1415_v48, %v1151_v51 }
  0x19   :  { %v925_v19 = vld [vmem:[%s2192_s0] sm:$0xf]  ;;  %v1361_v21 = vld [vmem:[%s2192_s0 + $0xc] sm:$0xf0]  ;;  %700 = vmatpush.bf16.msra.mxu1 %v1086_v8  ;;  %v1198_v25 = vor.u32 %v1429_v15, %v1197_v14  ;;  %v1279_v53 = vld [vmem:[%s2192_s0 + $0x2d0] sm:$0xf0] }
  0x1a   :  { %v1053_v22 = vld [vmem:[%s2192_s0 + $0x100] sm:$0xf]  ;;  %v1393_v23 = vld [vmem:[%s2192_s0 + $0x10c] sm:$0xf0]  ;;  %713 = vmatpush.bf16.msra.mxu2 %v1214_v9  ;;  %v926_v36 = vor.u32 %v1361_v21, %v925_v19  ;;  %v1459_v55 = vld [vmem:[%s2192_s0 + $0x324] sm:$0xf]  ;;  %v1282_v62 = vor.u32 %v1447_v52, %v1279_v53 }
  0x1b   :  { %736 = vmatpush.bf16.msrb.mxu3 %v1010_v4  ;;  %v1181_v26 = vld [vmem:[%s2192_s0 + $0x200] sm:$0xf]  ;;  %v1425_v27 = vld [vmem:[%s2192_s0 + $0x20c] sm:$0xf0]  ;;  %v1054_v42 = vor.u32 %v1393_v23, %v1053_v22  ;;  %v1327_v56 = vld [vmem:[%s2192_s0 + $0x330] sm:$0xf0] }
  0x1c   :  { %688 = vmatpush.bf16.msra.mxu0 %v942_v20  ;;  %v1182_v43 = vor.u32 %v1425_v27, %v1181_v26  ;;  %v15_v57 = vld [vmem:[%s2193_s1] sm:$0xff]  ;;  %v927_v0 = vld [vmem:[%s2192_s0 + $0x10] sm:$0xf0]  ;;  %v1330_v2 = vor.u32 %v1459_v55, %v1327_v56  ;;  %v1045_v10 = vld [vmem:[%s2192_s0 + $0xe8] sm:$0xf] }
  0x1d   :  { %701 = vmatpush.bf16.msra.mxu1 %v1070_v24  ;;  %v127_v58 = vunpack.c.l.b16 %v15_v57  ;;  %v128_v59 = vunpack.c.h.b16 %v15_v57  ;;  %v1359_v63 = vld [vmem:[%s2192_s0 + $0x4] sm:$0xf]  ;;  %v1135_v3 = vld [vmem:[%s2192_s0 + $0x1b0] sm:$0xf0]  ;;  %v1390_v11 = vld [vmem:[%s2192_s0 + $0xf4] sm:$0xf0] }
  0x1e   :  { %714 = vmatpush.bf16.msra.mxu2 %v1198_v25  ;;  %v1411_v1 = vld [vmem:[%s2192_s0 + $0x1a4] sm:$0xf]  ;;  %v1263_v5 = vld [vmem:[%s2192_s0 + $0x2b0] sm:$0xf0]  ;;  %v1173_v12 = vld [vmem:[%s2192_s0 + $0x1e8] sm:$0xf]  ;;  %v930_v17 = vor.u32 %v1359_v63, %v927_v0  ;;  %v1046_v22 = vor.u32 %v1390_v11, %v1045_v10 }
  0x1f   :  { %737 = vmatpush.bf16.msrb.mxu3 %v994_v16  ;;  %v1443_v4 = vld [vmem:[%s2192_s0 + $0x2a4] sm:$0xf]  ;;  %v1762_v6 = vpack.c.b16 %v127_v58, %v127_v58  ;;  %v1764_v7 = vpack.c.b16 %v128_v59, %v128_v59  ;;  %v1311_v9 = vld [vmem:[%s2192_s0 + $0x310] sm:$0xf0]  ;;  %v1422_v13 = vld [vmem:[%s2192_s0 + $0x1f4] sm:$0xf0]  ;;  %v1138_v14 = vor.u32 %v1411_v1, %v1135_v3 }
  0x20   :  { %689 = vmatpush.bf16.msra.mxu0 %v926_v36  ;;  %v1455_v8 = vld [vmem:[%s2192_s0 + $0x304] sm:$0xf]  ;;  %v1266_v15 = vor.u32 %v1443_v4, %v1263_v5  ;;  %v1119_v19 = vld [vmem:[%s2192_s0 + $0x190] sm:$0xf0]  ;;  %v1174_v23 = vor.u32 %v1422_v13, %v1173_v12  ;;  %v1029_v24 = vld [vmem:[%s2192_s0 + $0xc8] sm:$0xf] }
  0x21   :  { %702 = vmatpush.bf16.msra.mxu1 %v1054_v42  ;;  %v1407_v16 = vld [vmem:[%s2192_s0 + $0x184] sm:$0xf]  ;;  %v1314_v18 = vor.u32 %v1455_v8, %v1311_v9  ;;  %v1247_v21 = vld [vmem:[%s2192_s0 + $0x290] sm:$0xf0]  ;;  %v1386_v25 = vld [vmem:[%s2192_s0 + $0xd4] sm:$0xf0] }
  0x22   :  { %715 = vmatpush.bf16.msra.mxu2 %v1182_v43  ;;  %v1439_v20 = vld [vmem:[%s2192_s0 + $0x284] sm:$0xf]  ;;  %v1157_v26 = vld [vmem:[%s2192_s0 + $0x1c8] sm:$0xf]  ;;  %v1418_v27 = vld [vmem:[%s2192_s0 + $0x1d4] sm:$0xf0]  ;;  %v1122_v28 = vor.u32 %v1407_v16, %v1119_v19  ;;  %v1030_v34 = vor.u32 %v1386_v25, %v1029_v24 }
  0x23   :  { %738 = vmatpush.bf16.msrb.mxu3 %v978_v33  ;;  %690 = vmatmul.bf16.vlgmr.msra.gmra.mxu0 %v1762_v6  ;;  %v1250_v29 = vor.u32 %v1439_v20, %v1247_v21  ;;  %v1403_v30 = vld [vmem:[%s2192_s0 + $0x164] sm:$0xf]  ;;  %v1103_v31 = vld [vmem:[%s2192_s0 + $0x170] sm:$0xf0]  ;;  %v1158_v35 = vor.u32 %v1418_v27, %v1157_v26  ;;  %v1013_v36 = vld [vmem:[%s2192_s0 + $0xa8] sm:$0xf] }
  0x24   :  { %747 = vmatpush.bf16.msrb.mxu0 %v1170_v44  ;;  %703 = vmatmul.bf16.vlgmr.msra.gmra.mxu1 %v1764_v7  ;;  %v1435_v32 = vld [vmem:[%s2192_s0 + $0x264] sm:$0xf]  ;;  %v1231_v33 = vld [vmem:[%s2192_s0 + $0x270] sm:$0xf0]  ;;  %v1382_v37 = vld [vmem:[%s2192_s0 + $0xb4] sm:$0xf0]  ;;  %v1106_v41 = vor.u32 %v1403_v30, %v1103_v31 }
  0x25   :  { %760 = vmatpush.bf16.msrb.mxu1 %v1298_v45  ;;  %716 = vmatmul.bf16.vlgmr.msra.gmra.mxu2 %v1733_v54  ;;  %v1141_v38 = vld [vmem:[%s2192_s0 + $0x1a8] sm:$0xf]  ;;  %v1414_v39 = vld [vmem:[%s2192_s0 + $0x1b4] sm:$0xf0]  ;;  %v1234_v42 = vor.u32 %v1435_v32, %v1231_v33  ;;  %v1399_v43 = vld [vmem:[%s2192_s0 + $0x144] sm:$0xf]  ;;  %v1014_v47 = vor.u32 %v1382_v37, %v1013_v36 }
  0x26   :  { %778 = vmatpush.bf16.msrb.mxu2 %v1346_v50  ;;  %v1087_v44 = vld [vmem:[%s2192_s0 + $0x150] sm:$0xf0]  ;;  %v1431_v45 = vld [vmem:[%s2192_s0 + $0x244] sm:$0xf]  ;;  %v1142_v48 = vor.u32 %v1414_v39, %v1141_v38  ;;  %v1378_v50 = vld [vmem:[%s2192_s0 + $0x94] sm:$0xf0] }
  0x27   :  { %739 = vmatpush.bf16.msrb.mxu3 %v962_v49  ;;  %v1215_v46 = vld [vmem:[%s2192_s0 + $0x250] sm:$0xf0]  ;;  %v997_v49 = vld [vmem:[%s2192_s0 + $0x88] sm:$0xf]  ;;  %v1410_v52 = vld [vmem:[%s2192_s0 + $0x194] sm:$0xf0]  ;;  %v1090_v53 = vor.u32 %v1399_v43, %v1087_v44 }
  0x28   :  { %748 = vmatpush.bf16.msrb.mxu0 %v1154_v61  ;;  %v1125_v51 = vld [vmem:[%s2192_s0 + $0x188] sm:$0xf]  ;;  %v1218_v55 = vor.u32 %v1431_v45, %v1215_v46  ;;  %v1395_v56 = vld [vmem:[%s2192_s0 + $0x124] sm:$0xf]  ;;  %v1071_v57 = vld [vmem:[%s2192_s0 + $0x130] sm:$0xf0] }
  0x29   :  { %761 = vmatpush.bf16.msrb.mxu1 %v1282_v62  ;;  %v1427_v58 = vld [vmem:[%s2192_s0 + $0x224] sm:$0xf]  ;;  %v1199_v59 = vld [vmem:[%s2192_s0 + $0x230] sm:$0xf0]  ;;  %v1126_v61 = vor.u32 %v1410_v52, %v1125_v51  ;;  %v981_v62 = vld [vmem:[%s2192_s0 + $0x68] sm:$0xf] }
  0x2a   :  { %779 = vmatpush.bf16.msrb.mxu2 %v1330_v2  ;;  %v1374_v63 = vld [vmem:[%s2192_s0 + $0x74] sm:$0xf0]  ;;  %v1109_v0 = vld [vmem:[%s2192_s0 + $0x168] sm:$0xf]  ;;  %v1074_v2 = vor.u32 %v1395_v56, %v1071_v57  ;;  %v1202_v3 = vor.u32 %v1427_v58, %v1199_v59  ;;  %v1391_v4 = vld [vmem:[%s2192_s0 + $0x104] sm:$0xf] }
  0x2b   :  { %740 = vmatpush.bf16.msrb.mxu3 %v946_v60  ;;  %v998_v60 = vor.u32 %v1378_v50, %v997_v49  ;;  %v1406_v1 = vld [vmem:[%s2192_s0 + $0x174] sm:$0xf0]  ;;  %v1055_v5 = vld [vmem:[%s2192_s0 + $0x110] sm:$0xf0]  ;;  %v1423_v8 = vld [vmem:[%s2192_s0 + $0x204] sm:$0xf]  ;;  %v982_v12 = vor.u32 %v1374_v63, %v981_v62 }
  0x2c   :  { %749 = vmatpush.bf16.msrb.mxu0 %v1138_v14  ;;  %v1183_v9 = vld [vmem:[%s2192_s0 + $0x210] sm:$0xf0]  ;;  %v965_v10 = vld [vmem:[%s2192_s0 + $0x48] sm:$0xf]  ;;  %v1110_v13 = vor.u32 %v1406_v1, %v1109_v0  ;;  %v1454_v14 = vld [vmem:[%s2192_s0 + $0x2f4] sm:$0xf0]  ;;  %v1058_v20 = vor.u32 %v1391_v4, %v1055_v5 }
  0x2d   :  { %762 = vmatpush.bf16.msrb.mxu1 %v1266_v15  ;;  %v1301_v11 = vld [vmem:[%s2192_s0 + $0x2e8] sm:$0xf]  ;;  %v1466_v16 = vld [vmem:[%s2192_s0 + $0x354] sm:$0xf0]  ;;  %v1186_v21 = vor.u32 %v1423_v8, %v1183_v9  ;;  %v1420_v49 = vld [vmem:[%s2192_s0 + $0x1ec] sm:$0xf] }
  0x2e   :  { %780 = vmatpush.bf16.msrb.mxu2 %v1314_v18  ;;  %v1349_v15 = vld [vmem:[%s2192_s0 + $0x348] sm:$0xf]  ;;  %v1402_v19 = vld [vmem:[%s2192_s0 + $0x154] sm:$0xf0]  ;;  %v1175_v50 = vld [vmem:[%s2192_s0 + $0x1f8] sm:$0xf0] }
  0x2f   :  { %741 = vmatpush.bf16.msrb.mxu3 %v930_v17  ;;  %v1370_v17 = vld [vmem:[%s2192_s0 + $0x54] sm:$0xf0]  ;;  %v1093_v18 = vld [vmem:[%s2192_s0 + $0x148] sm:$0xf]  ;;  %v1384_v62 = vld [vmem:[%s2192_s0 + $0xcc] sm:$0xf] }
  0x30   :  { %750 = vmatpush.bf16.msrb.mxu0 %v1122_v28  ;;  %v949_v24 = vld [vmem:[%s2192_s0 + $0x28] sm:$0xf]  ;;  %v966_v26 = vor.u32 %v1370_v17, %v965_v10  ;;  %v1094_v27 = vor.u32 %v1402_v19, %v1093_v18  ;;  %v1450_v28 = vld [vmem:[%s2192_s0 + $0x2d4] sm:$0xf0]  ;;  %v1031_v0 = vld [vmem:[%s2192_s0 + $0xd8] sm:$0xf0] }
  0x31   :  { %763 = vmatpush.bf16.msrb.mxu1 %v1250_v29  ;;  %v1285_v25 = vld [vmem:[%s2192_s0 + $0x2c8] sm:$0xf]  ;;  %v1462_v30 = vld [vmem:[%s2192_s0 + $0x334] sm:$0xf0]  ;;  %v1416_v1 = vld [vmem:[%s2192_s0 + $0x1cc] sm:$0xf]  ;;  %v1034_v10 = vor.u32 %v1384_v62, %v1031_v0 }
  0x32   :  { %799 = vmatpush.bf16.msra.mxu2 %v1174_v23  ;;  %742 = vmatmul.bf16.vlgmr.msrb.gmra.mxu3 %v1762_v6  ;;  %v1350_v23 = vor.u32 %v1466_v16, %v1349_v15  ;;  %v1333_v29 = vld [vmem:[%s2192_s0 + $0x328] sm:$0xf]  ;;  %v1366_v31 = vld [vmem:[%s2192_s0 + $0x34] sm:$0xf0]  ;;  %v1448_v4 = vld [vmem:[%s2192_s0 + $0x2cc] sm:$0xf] }
  0x33   :  { %786 = vmatpush.bf16.msra.mxu3 %v1046_v22  ;;  %v1302_v22 = vor.u32 %v1454_v14, %v1301_v11  ;;  %v1077_v32 = vld [vmem:[%s2192_s0 + $0x128] sm:$0xf]  ;;  %v1398_v33 = vld [vmem:[%s2192_s0 + $0x134] sm:$0xf0]  ;;  %v950_v39 = vor.u32 %v1366_v31, %v949_v24  ;;  %v1287_v5 = vld [vmem:[%s2192_s0 + $0x2d8] sm:$0xf0] }
  0x34   :  { %751 = vmatpush.bf16.msrb.mxu0 %v1106_v41  ;;  %v933_v36 = vld [vmem:[%s2192_s0 + $0x8] sm:$0xf]  ;;  %v1362_v37 = vld [vmem:[%s2192_s0 + $0x14] sm:$0xf0]  ;;  %v1078_v41 = vor.u32 %v1398_v33, %v1077_v32  ;;  %v1015_v14 = vld [vmem:[%s2192_s0 + $0xb8] sm:$0xf0] }
  0x35   :  { %764 = vmatpush.bf16.msrb.mxu1 %v1234_v42  ;;  %1356 = vmatmul.msk.bf16.vlgmr.msrb.gmra.mxu2 %vm678_vm0, %v1711_v40  ;;  %v1269_v38 = vld [vmem:[%s2192_s0 + $0x2a8] sm:$0xf]  ;;  %v1446_v42 = vld [vmem:[%s2192_s0 + $0x2b4] sm:$0xf0]  ;;  %v934_v56 = vor.u32 %v1362_v37, %v933_v36  ;;  %v1412_v15 = vld [vmem:[%s2192_s0 + $0x1ac] sm:$0xf] }
  0x36   :  { %800 = vmatpush.bf16.msra.mxu2 %v1158_v35  ;;  %v1334_v35 = vor.u32 %v1462_v30, %v1333_v29  ;;  %v1317_v43 = vld [vmem:[%s2192_s0 + $0x308] sm:$0xf]  ;;  %v1458_v44 = vld [vmem:[%s2192_s0 + $0x314] sm:$0xf0]  ;;  %v1270_v51 = vor.u32 %v1446_v42, %v1269_v38  ;;  %v1143_v16 = vld [vmem:[%s2192_s0 + $0x1b8] sm:$0xf0] }
  0x37   :  { %787 = vmatpush.bf16.msra.mxu3 %v1030_v34  ;;  %v1286_v34 = vor.u32 %v1450_v28, %v1285_v25  ;;  %v1061_v45 = vld [vmem:[%s2192_s0 + $0x108] sm:$0xf]  ;;  %v1394_v46 = vld [vmem:[%s2192_s0 + $0x114] sm:$0xf0]  ;;  %v1318_v52 = vor.u32 %v1458_v44, %v1317_v43  ;;  %v1444_v18 = vld [vmem:[%s2192_s0 + $0x2ac] sm:$0xf] }
  0x38   :  { %752 = vmatpush.bf16.msrb.mxu0 %v1090_v53  ;;  %v1452_v53 = vld [vmem:[%s2192_s0 + $0x2ec] sm:$0xf]  ;;  %v1062_v57 = vor.u32 %v1394_v46, %v1061_v45  ;;  %v1253_v58 = vld [vmem:[%s2192_s0 + $0x288] sm:$0xf]  ;;  %v1442_v59 = vld [vmem:[%s2192_s0 + $0x294] sm:$0xf0] }
  0x39   :  { %765 = vmatpush.bf16.msrb.mxu1 %v1218_v55  ;;  %v1303_v55 = vld [vmem:[%s2192_s0 + $0x2f8] sm:$0xf0]  ;;  %v1237_v8 = vld [vmem:[%s2192_s0 + $0x268] sm:$0xf]  ;;  %v1438_v9 = vld [vmem:[%s2192_s0 + $0x274] sm:$0xf0] }
  0x3a   :  { %801 = vmatpush.bf16.msra.mxu2 %v1142_v48  ;;  %v1047_v48 = vld [vmem:[%s2192_s0 + $0xf8] sm:$0xf0]  ;;  %v1306_v63 = vor.u32 %v1452_v53, %v1303_v55  ;;  %v1238_v17 = vor.u32 %v1438_v9, %v1237_v8  ;;  %v1376_v24 = vld [vmem:[%s2192_s0 + $0x8c] sm:$0xf]  ;;  %v1205_v32 = vld [vmem:[%s2192_s0 + $0x228] sm:$0xf] }
  0x3b   :  { %788 = vmatpush.bf16.msra.mxu3 %v1014_v47  ;;  %v1388_v47 = vld [vmem:[%s2192_s0 + $0xec] sm:$0xf]  ;;  %v1271_v19 = vld [vmem:[%s2192_s0 + $0x2b8] sm:$0xf0]  ;;  %v1430_v33 = vld [vmem:[%s2192_s0 + $0x234] sm:$0xf0] }
  0x3c   :  { %753 = vmatpush.bf16.msrb.mxu0 %v1074_v2  ;;  %v1159_v2 = vld [vmem:[%s2192_s0 + $0x1d8] sm:$0xf0]  ;;  %v1274_v25 = vor.u32 %v1444_v18, %v1271_v19  ;;  %v1440_v30 = vld [vmem:[%s2192_s0 + $0x28c] sm:$0xf]  ;;  %v1206_v42 = vor.u32 %v1430_v33, %v1205_v32  ;;  %v1189_v45 = vld [vmem:[%s2192_s0 + $0x208] sm:$0xf] }
  0x3d   :  { %766 = vmatpush.bf16.msrb.mxu1 %v1202_v3  ;;  %v1254_v3 = vor.u32 %v1442_v59, %v1253_v58  ;;  %v1162_v11 = vor.u32 %v1416_v1, %v1159_v2  ;;  %v1127_v28 = vld [vmem:[%s2192_s0 + $0x198] sm:$0xf0]  ;;  %v1372_v36 = vld [vmem:[%s2192_s0 + $0x6c] sm:$0xf]  ;;  %v1426_v46 = vld [vmem:[%s2192_s0 + $0x214] sm:$0xf0] }
  0x3e   :  { %802 = vmatpush.bf16.msra.mxu2 %v1126_v61  ;;  %v1178_v61 = vor.u32 %v1420_v49, %v1175_v50  ;;  %v1255_v31 = vld [vmem:[%s2192_s0 + $0x298] sm:$0xf0]  ;;  %v1436_v43 = vld [vmem:[%s2192_s0 + $0x26c] sm:$0xf] }
  0x3f   :  { %789 = vmatpush.bf16.msra.mxu3 %v998_v60  ;;  %v1050_v60 = vor.u32 %v1388_v47, %v1047_v48  ;;  %v1258_v37 = vor.u32 %v1440_v30, %v1255_v31  ;;  %v983_v38 = vld [vmem:[%s2192_s0 + $0x78] sm:$0xf0]  ;;  %v1368_v49 = vld [vmem:[%s2192_s0 + $0x4c] sm:$0xf] }
  0x40   :  { %754 = vmatpush.bf16.msrb.mxu0 %v1058_v20  ;;  %v1221_v20 = vld [vmem:[%s2192_s0 + $0x248] sm:$0xf]  ;;  %v1239_v44 = vld [vmem:[%s2192_s0 + $0x278] sm:$0xf0]  ;;  %v986_v47 = vor.u32 %v1372_v36, %v983_v38  ;;  %v1464_v50 = vld [vmem:[%s2192_s0 + $0x34c] sm:$0xf] }
  0x41   :  { %767 = vmatpush.bf16.msrb.mxu1 %v1186_v21  ;;  %v1434_v21 = vld [vmem:[%s2192_s0 + $0x254] sm:$0xf0]  ;;  %v967_v53 = vld [vmem:[%s2192_s0 + $0x58] sm:$0xf0]  ;;  %v1400_v55 = vld [vmem:[%s2192_s0 + $0x14c] sm:$0xf] }
  0x42   :  { %803 = vmatpush.bf16.msra.mxu2 %v1110_v13  ;;  %v1290_v13 = vor.u32 %v1448_v4, %v1287_v5  ;;  %v1222_v29 = vor.u32 %v1434_v21, %v1221_v20  ;;  %v1432_v58 = vld [vmem:[%s2192_s0 + $0x24c] sm:$0xf]  ;;  %v1223_v59 = vld [vmem:[%s2192_s0 + $0x258] sm:$0xf0] }
  0x43   :  { %790 = vmatpush.bf16.msra.mxu3 %v982_v12  ;;  %755 = vmatmul.bf16.vlgmr.msrb.gmra.mxu0 %v1764_v7  ;;  %v1380_v12 = vld [vmem:[%s2192_s0 + $0xac] sm:$0xf]  ;;  %v1335_v1 = vld [vmem:[%s2192_s0 + $0x338] sm:$0xf0]  ;;  %v1226_v2 = vor.u32 %v1432_v58, %v1223_v59 }
  0x44   :  { %812 = vmatpush.bf16.msra.mxu0 %v1302_v22  ;;  %768 = vmatmul.bf16.vlgmr.msrb.gmra.mxu1 %v1733_v54  ;;  %v1018_v22 = vor.u32 %v1380_v12, %v1015_v14  ;;  %v1460_v0 = vld [vmem:[%s2192_s0 + $0x32c] sm:$0xf]  ;;  %v1079_v5 = vld [vmem:[%s2192_s0 + $0x138] sm:$0xf0] }
  0x45   :  { %830 = vmatpush.bf16.msra.mxu1 %v1350_v23  ;;  %v1146_v23 = vor.u32 %v1412_v15, %v1143_v16  ;;  %v1396_v4 = vld [vmem:[%s2192_s0 + $0x12c] sm:$0xf]  ;;  %v1207_v9 = vld [vmem:[%s2192_s0 + $0x238] sm:$0xf0] }
  0x46   :  { %804 = vmatpush.bf16.msra.mxu2 %v1094_v27  ;;  %v1408_v27 = vld [vmem:[%s2192_s0 + $0x18c] sm:$0xf]  ;;  %v1082_v12 = vor.u32 %v1396_v4, %v1079_v5  ;;  %v1319_v15 = vld [vmem:[%s2192_s0 + $0x318] sm:$0xf0] }
  0x47   :  { %791 = vmatpush.bf16.msra.mxu3 %v966_v26  ;;  %v999_v26 = vld [vmem:[%s2192_s0 + $0x98] sm:$0xf0]  ;;  %v1428_v8 = vld [vmem:[%s2192_s0 + $0x22c] sm:$0xf] }
  0x48   :  { %813 = vmatpush.bf16.msra.mxu0 %v1286_v34  ;;  %v1002_v34 = vor.u32 %v1376_v24, %v999_v26  ;;  %v1456_v14 = vld [vmem:[%s2192_s0 + $0x30c] sm:$0xf]  ;;  %v1210_v16 = vor.u32 %v1428_v8, %v1207_v9  ;;  %v1063_v19 = vld [vmem:[%s2192_s0 + $0x118] sm:$0xf0] }
  0x49   :  { %831 = vmatpush.bf16.msra.mxu1 %v1334_v35  ;;  %v1130_v35 = vor.u32 %v1408_v27, %v1127_v28  ;;  %v1392_v18 = vld [vmem:[%s2192_s0 + $0x10c] sm:$0xf]  ;;  %v1191_v21 = vld [vmem:[%s2192_s0 + $0x218] sm:$0xf0] }
  0x4a   :  { %805 = vmatpush.bf16.msra.mxu2 %v1078_v41  ;;  %v1111_v41 = vld [vmem:[%s2192_s0 + $0x178] sm:$0xf0]  ;;  %v1424_v20 = vld [vmem:[%s2192_s0 + $0x20c] sm:$0xf]  ;;  %v1066_v24 = vor.u32 %v1392_v18, %v1063_v19 }
  0x4b   :  { %792 = vmatpush.bf16.msra.mxu3 %v950_v39  ;;  %v1404_v39 = vld [vmem:[%s2192_s0 + $0x16c] sm:$0xf] }
  0x4c   :  { %814 = vmatpush.bf16.msra.mxu0 %v1270_v51  ;;  %v1114_v48 = vor.u32 %v1404_v39, %v1111_v41  ;;  %v1351_v51 = vld [vmem:[%s2192_s0 + $0x358] sm:$0xf0] }
  0x4d   :  { %832 = vmatpush.bf16.msra.mxu1 %v1318_v52  ;;  %v1242_v52 = vor.u32 %v1436_v43, %v1239_v44 }
  0x4e   :  { %806 = vmatpush.bf16.msra.mxu2 %v1062_v57  ;;  %v1190_v57 = vor.u32 %v1426_v46, %v1189_v45 }
  0x4f   :  { %793 = vmatpush.bf16.msra.mxu3 %v934_v56  ;;  %v1095_v56 = vld [vmem:[%s2192_s0 + $0x158] sm:$0xf0] }
  0x50   :  { %815 = vmatpush.bf16.msra.mxu0 %v1254_v3  ;;  %v1098_v62 = vor.u32 %v1400_v55, %v1095_v56  ;;  %v951_v3 = vld [vmem:[%s2192_s0 + $0x38] sm:$0xf0] }
  0x51   :  { %851 = vmatpush.bf16.msrb.mxu1 %v1178_v61  ;;  %807 = vmatmul.bf16.vlgmr.msra.gmra.mxu2 %v1764_v7  ;;  %v970_v61 = vor.u32 %v1368_v49, %v967_v53 }
  0x52   :  { %864 = vmatpush.bf16.msrb.mxu2 %v1306_v63  ;;  %794 = vmatmul.bf16.vlgmr.msra.gmra.mxu3 %v1762_v6  ;;  %v1364_v63 = vld [vmem:[%s2192_s0 + $0x2c] sm:$0xf] }
  0x53   :  { %838 = vmatpush.bf16.msrb.mxu3 %v1050_v60  ;;  %v1354_v60 = vor.u32 %v1464_v50, %v1351_v51 }
  0x54   :  { %816 = vmatpush.bf16.msra.mxu0 %v1238_v17  ;;  %1357 = vmatmul.msk.bf16.vlgmr.msra.gmra.mxu1 %vm678_vm0, %v1711_v40  ;;  %v935_v17 = vld [vmem:[%s2192_s0 + $0x18] sm:$0xf0] }
  0x55   :  { %852 = vmatpush.bf16.msrb.mxu1 %v1162_v11  ;;  %v954_v11 = vor.u32 %v1364_v63, %v951_v3 }
  0x56   :  { %865 = vmatpush.bf16.msrb.mxu2 %v1290_v13  ;;  %v1360_v13 = vld [vmem:[%s2192_s0 + $0xc] sm:$0xf] }
  0x57   :  { %839 = vmatpush.bf16.msrb.mxu3 %v1034_v10  ;;  %v1338_v10 = vor.u32 %v1460_v0, %v1335_v1 }
  0x58   :  { %817 = vmatpush.bf16.msra.mxu0 %v1222_v29 }
  0x59   :  { %853 = vmatpush.bf16.msrb.mxu1 %v1146_v23  ;;  %v938_v23 = vor.u32 %v1360_v13, %v935_v17 }
  0x5a   :  { %866 = vmatpush.bf16.msrb.mxu2 %v1274_v25  ;;  %v1194_v25 = vor.u32 %v1424_v20, %v1191_v21 }
  0x5b   :  { %840 = vmatpush.bf16.msrb.mxu3 %v1018_v22  ;;  %v1322_v22 = vor.u32 %v1456_v14, %v1319_v15 }
  0x5c   :  { %818 = vmatpush.bf16.msra.mxu0 %v1206_v42 }
  0x5d   :  { %854 = vmatpush.bf16.msrb.mxu1 %v1130_v35 }
  0x5e   :  { %867 = vmatpush.bf16.msrb.mxu2 %v1258_v37 }
  0x5f   :  { %841 = vmatpush.bf16.msrb.mxu3 %v1002_v34 }
  0x60   :  { %819 = vmatpush.bf16.msra.mxu0 %v1190_v57 }
  0x61   :  { %855 = vmatpush.bf16.msrb.mxu1 %v1114_v48 }
  0x62   :  { %868 = vmatpush.bf16.msrb.mxu2 %v1242_v52 }
  0x63   :  { %842 = vmatpush.bf16.msrb.mxu3 %v986_v47  ;;  %820 = vmatmul.bf16.vlgmr.msra.gmra.mxu0 %v1733_v54 }
  0x64   :  { %882 = vmatpush.bf16.msrb.mxu0 %v1354_v60 }
  0x65   :  { %856 = vmatpush.bf16.msrb.mxu1 %v1098_v62 }
  0x66   :  { %869 = vmatpush.bf16.msrb.mxu2 %v1226_v2 }
  0x67   :  { %843 = vmatpush.bf16.msrb.mxu3 %v970_v61 }
  0x68   :  { %883 = vmatpush.bf16.msrb.mxu0 %v1338_v10 }
  0x69   :  { %857 = vmatpush.bf16.msrb.mxu1 %v1082_v12 }
  0x6a   :  { %870 = vmatpush.bf16.msrb.mxu2 %v1210_v16 }
  0x6b   :  { %844 = vmatpush.bf16.msrb.mxu3 %v954_v11 }
  0x6c   :  { %884 = vmatpush.bf16.msrb.mxu0 %v1322_v22 }
  0x6d   :  { %858 = vmatpush.bf16.msrb.mxu1 %v1066_v24 }
  0x6e   :  { %871 = vmatpush.bf16.msrb.mxu2 %v1194_v25 }
  0x6f   :  { %845 = vmatpush.bf16.msrb.mxu3 %v938_v23 }
  0x70   :  { %859 = vmatmul.bf16.vlgmr.msrb.gmra.mxu1 %v1764_v7 }
  0x71   :  { %872 = vmatmul.bf16.vlgmr.msrb.gmra.mxu2 %v1733_v54 }
  0x72   :  { %846 = vmatmul.bf16.vlgmr.msrb.gmra.mxu3 %v1762_v6 }
  0x73   :  { %1358 = vmatmul.msk.bf16.vlgmr.msrb.gmra.mxu0 %vm678_vm0, %v1711_v40 }
  0x95   :  { %v730_v26 = vpop.f32.mrf.mxu3 }
  0x9d   :  { %v732_v32 = vpop.f32.mrf.mxu3 }
  0xa0   :  { %v691_v27 = vpop.f32.mrf.mxu0 }
  0xa1   :  { %v704_v28 = vpop.f32.mrf.mxu1 }
  0xa2   :  { %v705_v29 = vadd.f32 %v704_v28, %v691_v27 }
  0xa8   :  { %v717_v30 = vpop.f32.mrf.mxu2  ;;  %v693_v34 = vpop.f32.mrf.mxu0 }
  0xa9   :  { %v718_v31 = vadd.f32 %v717_v30, %v705_v29  ;;  %v706_v35 = vpop.f32.mrf.mxu1 }
  0xab   :  { %v731_v33 = vadd.f32 %v730_v26, %v718_v31 }
  0xad   :  { %890 = vst [vmem:[%s2194_s2] sm:$0xff] %v731_v33  ;;  %v901_v10 = vmul.f32 %v731_v33, %v731_v33 }
  0xb0   :  { %v719_v6 = vpop.f32.mrf.mxu2 }
  0xb5   :  { %v743_v7 = vpop.f32.mrf.mxu3 }
  0xb8   :  { %v782_v54 = vpop.f32.mrf.mxu2 }
  0xbd   :  { %v745_v36 = vpop.f32.mrf.mxu3 }
  0xc0   :  { %v756_v37 = vpop.f32.mrf.mxu0  ;;  %v784_v39 = vpop.f32.mrf.mxu2 }
  0xc1   :  { %v769_v40 = vpop.f32.mrf.mxu1  ;;  %v757_v38 = vadd.f32 %v756_v37, %v743_v7 }
  0xc3   :  { %v770_v41 = vadd.f32 %v769_v40, %v757_v38 }
  0xc5   :  { %v783_v42 = vadd.f32 %v782_v54, %v770_v41 }
  0xc7   :  { %891 = vst [vmem:[%s2194_s2 + $0x8] sm:$0xff] %v783_v42  ;;  %v894_v0 = vadd.f32 %v783_v42, %v731_v33  ;;  %v902_v3 = vmul.f32 %v783_v42, %v783_v42 }
  0xc8   :  { %v758_v44 = vpop.f32.mrf.mxu0 }
  0xc9   :  { %v771_v43 = vpop.f32.mrf.mxu1  ;;  %v905_v13 = vadd.f32 %v902_v3, %v901_v10 }
  0xd1   :  { %v834_v46 = vpop.f32.mrf.mxu1 }
  0xd4   :  { %v808_v47 = vpop.f32.mrf.mxu2 }
  0xd5   :  { %v795_v45 = vpop.f32.mrf.mxu3 }
  0xd6   :  { %v809_v51 = vadd.f32 %v808_v47, %v795_v45 }
  0xd9   :  { %v836_v49 = vpop.f32.mrf.mxu1 }
  0xdc   :  { %v810_v50 = vpop.f32.mrf.mxu2 }
  0xdd   :  { %v797_v48 = vpop.f32.mrf.mxu3 }
  0xe0   :  { %v821_v52 = vpop.f32.mrf.mxu0 }
  0xe1   :  { %v822_v53 = vadd.f32 %v821_v52, %v809_v51 }
  0xe3   :  { %v835_v55 = vadd.f32 %v834_v46, %v822_v53 }
  0xe5   :  { %892 = vst [vmem:[%s2194_s2 + $0x10] sm:$0xff] %v835_v55  ;;  %v895_v2 = vadd.f32 %v894_v0, %v835_v55  ;;  %v903_v11 = vmul.f32 %v835_v55, %v835_v55 }
  0xe7   :  { %v906_v14 = vadd.f32 %v905_v13, %v903_v11 }
  0xe8   :  { %v823_v56 = vpop.f32.mrf.mxu0 }
  0xed   :  { %v860_v57 = vpop.f32.mrf.mxu1 }
  0xf0   :  { %v886_v59 = vpop.f32.mrf.mxu0 }
  0xf4   :  { %v873_v61 = vpop.f32.mrf.mxu2 }
  0xf5   :  { %v847_v58 = vpop.f32.mrf.mxu3  ;;  %v862_v62 = vpop.f32.mrf.mxu1 }
  0xf6   :  { %v861_v60 = vadd.f32 %v860_v57, %v847_v58 }
  0xf8   :  { %v874_v63 = vadd.f32 %v873_v61, %v861_v60  ;;  %v888_v8 = vpop.f32.mrf.mxu0 }
  0xfa   :  { %v887_v1 = vadd.f32 %v886_v59, %v874_v63 }
  0xfc   :  { %893 = vst [vmem:[%s2194_s2 + $0x18] sm:$0xff] %v887_v1  ;;  %v896_v4 = vadd.f32 %v895_v2, %v887_v1  ;;  %v875_v9 = vpop.f32.mrf.mxu2  ;;  %v904_v12 = vmul.f32 %v887_v1, %v887_v1 }
  0xfd   :  { %v849_v5 = vpop.f32.mrf.mxu3 }
  0xfe   :  { %897 = vadd.xlane.f32.xlu0 %v896_v4  ;;  %v907_v15 = vadd.f32 %v906_v14, %v904_v12 }
 0x106   :  { %908 = vadd.xlane.f32.xlu0 %v907_v15 }
 0x171   :  { %v898_v16 = vpop.xlane.xlu0 %897 }
 0x172   :  { %900 = vst.msk [vmem:[%s2195_s3] sm:$0xff] %vm899_vm1, %v898_v16 }
 0x179   :  { %v909_v17 = vpop.xlane.xlu0 %908 }
 0x17a   :  { %910 = vst.msk [vmem:[%s2196_s4] sm:$0xff] %vm899_vm1, %v909_v17 }

// kernel: run.57
= control target key start
LH: loop header
LB: loop body
LE: loop exit
PB: predicated region body
PF: predicated region fallthrough
CT: control target
= control target key end

     0   :  { %11 = vsyncpa [#allocation3], 0  ;;  %vm359_vm0 = vcmask 1043456   ;;  %vm355_vm1 = vcmask 719872   ;;  %s1282_s0 = inlined_call_operand.vmem [shape: bf16[216,512], index: 0, kind: input, shape index: {}]   ;;  %s1283_s1 = inlined_call_operand.vmem [shape: bf16[8,216], index: 1, kind: input, shape index: {}]   ;;  %s1284_s2 = inlined_call_operand.vmem [shape: f32[8,512], index: 2, kind: input, shape index: {}]   ;;  %s1285_s3 = inlined_call_operand.hbm [shape: f32[8,512], index: 3, kind: output, shape index: {0}]   ;;  %s1286_s4 = inlined_call_operand.hbm [shape: f32[1,8,1], index: 4, kind: output, shape index: {1}]   ;;  %s1287_s5 = inlined_call_operand.hbm [shape: f32[1,8,1], index: 5, kind: output, shape index: {2}]  }
   0x1   :  { %v658_v0 = vld [vmem:[%s1282_s0 + $0xe0] sm:$0xf]  ;;  %v786_v1 = vld [vmem:[%s1282_s0 + $0xec] sm:$0xf0]  ;;  %v784_v2 = vld [vmem:[%s1282_s0 + $0xe4] sm:$0xf] }
   0x2   :  { %v659_v3 = vor.u32 %v786_v1, %v658_v0  ;;  %v660_v4 = vld [vmem:[%s1282_s0 + $0xf0] sm:$0xf0]  ;;  %v73_v5 = vld [vmem:[%s1282_s0 + $0x1a0] sm:$0xff]  ;;  %v782_v10 = vld [vmem:[%s1282_s0 + $0xcc] sm:$0xf0] }
   0x3   :  { %v642_v6 = vld [vmem:[%s1282_s0 + $0xc0] sm:$0xf]  ;;  %v663_v7 = vor.u32 %v784_v2, %v660_v4  ;;  %v243_v8 = vunpack.c.l.b16 %v73_v5  ;;  %v244_v9 = vunpack.c.h.b16 %v73_v5  ;;  %v780_v11 = vld [vmem:[%s1282_s0 + $0xc4] sm:$0xf]  ;;  %v644_v12 = vld [vmem:[%s1282_s0 + $0xd0] sm:$0xf0] }
   0x4   :  { %372 = vmatpush.bf16.msra.mxu0 %v659_v3  ;;  %v738_v13 = vld [vmem:[%s1282_s0 + $0x180] sm:$0xf]  ;;  %v806_v14 = vld [vmem:[%s1282_s0 + $0x18c] sm:$0xf0]  ;;  %v643_v17 = vor.u32 %v782_v10, %v642_v6  ;;  %v647_v18 = vor.u32 %v780_v11, %v644_v12  ;;  %v804_v19 = vld [vmem:[%s1282_s0 + $0x184] sm:$0xf] }
   0x5   :  { %398 = vmatpush.bf16.msra.mxu2 %v663_v7  ;;  %v299_v15 = vpack.c.b16 %v243_v8, %v243_v8  ;;  %v300_v16 = vpack.c.b16 %v244_v9, %v244_v9  ;;  %v740_v20 = vld [vmem:[%s1282_s0 + $0x190] sm:$0xf0]  ;;  %v626_v21 = vld [vmem:[%s1282_s0 + $0xa0] sm:$0xf]  ;;  %v778_v22 = vld [vmem:[%s1282_s0 + $0xac] sm:$0xf0]  ;;  %v739_v27 = vor.u32 %v806_v14, %v738_v13 }
   0x6   :  { %v776_v23 = vld [vmem:[%s1282_s0 + $0xa4] sm:$0xf]  ;;  %v628_v24 = vld [vmem:[%s1282_s0 + $0xb0] sm:$0xf0]  ;;  %v743_v28 = vor.u32 %v804_v19, %v740_v20  ;;  %v722_v29 = vld [vmem:[%s1282_s0 + $0x160] sm:$0xf]  ;;  %v627_v31 = vor.u32 %v778_v22, %v626_v21 }
   0x7   :  { %v361_v25 = vsel %vm359_vm0, %v299_v15, 0  ;;  %v364_v26 = vsel %vm359_vm0, %v300_v16, 0  ;;  %v802_v30 = vld [vmem:[%s1282_s0 + $0x16c] sm:$0xf0]  ;;  %v631_v32 = vor.u32 %v776_v23, %v628_v24  ;;  %v800_v33 = vld [vmem:[%s1282_s0 + $0x164] sm:$0xf] }
   0x8   :  { %387 = vmatpush.bf16.msra.mxu1 %v361_v25  ;;  %413 = vmatpush.bf16.msra.mxu3 %v364_v26  ;;  %v724_v34 = vld [vmem:[%s1282_s0 + $0x170] sm:$0xf0]  ;;  %v610_v35 = vld [vmem:[%s1282_s0 + $0x80] sm:$0xf]  ;;  %v774_v36 = vld [vmem:[%s1282_s0 + $0x8c] sm:$0xf0]  ;;  %v723_v39 = vor.u32 %v802_v30, %v722_v29 }
   0x9   :  { %373 = vmatpush.bf16.msra.mxu0 %v643_v17  ;;  %399 = vmatpush.bf16.msra.mxu2 %v647_v18  ;;  %v772_v37 = vld [vmem:[%s1282_s0 + $0x84] sm:$0xf]  ;;  %v612_v38 = vld [vmem:[%s1282_s0 + $0x90] sm:$0xf0]  ;;  %v727_v40 = vor.u32 %v800_v33, %v724_v34  ;;  %v706_v41 = vld [vmem:[%s1282_s0 + $0x140] sm:$0xf]  ;;  %v611_v43 = vor.u32 %v774_v36, %v610_v35 }
   0xa   :  { %v798_v42 = vld [vmem:[%s1282_s0 + $0x14c] sm:$0xf0]  ;;  %v615_v44 = vor.u32 %v772_v37, %v612_v38  ;;  %v796_v45 = vld [vmem:[%s1282_s0 + $0x144] sm:$0xf]  ;;  %v708_v46 = vld [vmem:[%s1282_s0 + $0x150] sm:$0xf0] }
   0xb   :  { %v594_v47 = vld [vmem:[%s1282_s0 + $0x60] sm:$0xf]  ;;  %v770_v48 = vld [vmem:[%s1282_s0 + $0x6c] sm:$0xf0]  ;;  %v768_v49 = vld [vmem:[%s1282_s0 + $0x64] sm:$0xf]  ;;  %v707_v51 = vor.u32 %v798_v42, %v706_v41  ;;  %v711_v52 = vor.u32 %v796_v45, %v708_v46 }
   0xc   :  { %388 = vmatpush.bf16.msra.mxu1 %v739_v27  ;;  %414 = vmatpush.bf16.msra.mxu3 %v743_v28  ;;  %v596_v50 = vld [vmem:[%s1282_s0 + $0x70] sm:$0xf0]  ;;  %v690_v53 = vld [vmem:[%s1282_s0 + $0x120] sm:$0xf]  ;;  %v794_v54 = vld [vmem:[%s1282_s0 + $0x12c] sm:$0xf0]  ;;  %v595_v56 = vor.u32 %v770_v48, %v594_v47 }
   0xd   :  { %374 = vmatpush.bf16.msra.mxu0 %v627_v31  ;;  %400 = vmatpush.bf16.msra.mxu2 %v631_v32  ;;  %v792_v55 = vld [vmem:[%s1282_s0 + $0x124] sm:$0xf]  ;;  %v599_v57 = vor.u32 %v768_v49, %v596_v50  ;;  %v692_v58 = vld [vmem:[%s1282_s0 + $0x130] sm:$0xf0]  ;;  %v578_v59 = vld [vmem:[%s1282_s0 + $0x40] sm:$0xf]  ;;  %v691_v1 = vor.u32 %v794_v54, %v690_v53 }
   0xe   :  { %v766_v60 = vld [vmem:[%s1282_s0 + $0x4c] sm:$0xf0]  ;;  %v764_v61 = vld [vmem:[%s1282_s0 + $0x44] sm:$0xf]  ;;  %v580_v62 = vld [vmem:[%s1282_s0 + $0x50] sm:$0xf0]  ;;  %v695_v2 = vor.u32 %v792_v55, %v692_v58 }
   0xf   :  { %v74_v63 = vld [vmem:[%s1282_s0 + $0x1a8] sm:$0xff]  ;;  %v674_v3 = vld [vmem:[%s1282_s0 + $0x100] sm:$0xf]  ;;  %v790_v4 = vld [vmem:[%s1282_s0 + $0x10c] sm:$0xf0]  ;;  %v579_v6 = vor.u32 %v766_v60, %v578_v59  ;;  %v583_v7 = vor.u32 %v764_v61, %v580_v62 }
  0x10   :  { %389 = vmatpush.bf16.msra.mxu1 %v723_v39  ;;  %415 = vmatpush.bf16.msra.mxu3 %v727_v40  ;;  %v245_v0 = vunpack.c.l.b16 %v74_v63  ;;  %v788_v5 = vld [vmem:[%s1282_s0 + $0x104] sm:$0xf]  ;;  %v676_v8 = vld [vmem:[%s1282_s0 + $0x110] sm:$0xf0]  ;;  %v562_v9 = vld [vmem:[%s1282_s0 + $0x20] sm:$0xf]  ;;  %v246_v13 = vunpack.c.h.b16 %v74_v63  ;;  %v675_v19 = vor.u32 %v790_v4, %v674_v3 }
  0x11   :  { %375 = vmatpush.bf16.msra.mxu0 %v611_v43  ;;  %401 = vmatpush.bf16.msra.mxu2 %v615_v44  ;;  %v762_v10 = vld [vmem:[%s1282_s0 + $0x2c] sm:$0xf0]  ;;  %v760_v11 = vld [vmem:[%s1282_s0 + $0x24] sm:$0xf]  ;;  %v564_v12 = vld [vmem:[%s1282_s0 + $0x30] sm:$0xf0]  ;;  %v679_v20 = vor.u32 %v788_v5, %v676_v8 }
  0x12   :  { %v20_v14 = vld [vmem:[%s1283_s1] sm:$0xff]  ;;  %v666_v15 = vld [vmem:[%s1282_s0 + $0xe8] sm:$0xf]  ;;  %v787_v16 = vld [vmem:[%s1282_s0 + $0xf4] sm:$0xf0]  ;;  %v301_v17 = vpack.c.b16 %v245_v0, %v245_v0  ;;  %v563_v21 = vor.u32 %v762_v10, %v562_v9  ;;  %v567_v22 = vor.u32 %v760_v11, %v564_v12  ;;  %v302_v30 = vpack.c.b16 %v246_v13, %v246_v13 }
  0x13   :  { %v81_v18 = vunpack.c.h.b16 %v20_v14  ;;  %v546_v23 = vld [vmem:[%s1282_s0] sm:$0xf]  ;;  %v758_v24 = vld [vmem:[%s1282_s0 + $0xc] sm:$0xf0]  ;;  %v756_v25 = vld [vmem:[%s1282_s0 + $0x4] sm:$0xf]  ;;  %v667_v26 = vor.u32 %v787_v16, %v666_v15  ;;  %v80_v37 = vunpack.c.l.b16 %v20_v14 }
  0x14   :  { %390 = vmatpush.bf16.msra.mxu1 %v707_v51  ;;  %416 = vmatpush.bf16.msra.mxu3 %v711_v52  ;;  %v548_v27 = vld [vmem:[%s1282_s0 + $0x10] sm:$0xf0]  ;;  %v650_v28 = vld [vmem:[%s1282_s0 + $0xc8] sm:$0xf]  ;;  %v783_v29 = vld [vmem:[%s1282_s0 + $0xd4] sm:$0xf0]  ;;  %v547_v38 = vor.u32 %v758_v24, %v546_v23 }
  0x15   :  { %376 = vmatpush.bf16.msra.mxu0 %v595_v56  ;;  %402 = vmatpush.bf16.msra.mxu2 %v599_v57  ;;  %v367_v31 = vsel %vm359_vm0, %v301_v17, 0  ;;  %v746_v32 = vld [vmem:[%s1282_s0 + $0x188] sm:$0xf]  ;;  %v807_v33 = vld [vmem:[%s1282_s0 + $0x194] sm:$0xf0]  ;;  %v1106_v34 = vpack.c.b16 %v81_v18, %v81_v18  ;;  %v551_v39 = vor.u32 %v756_v25, %v548_v27  ;;  %v651_v40 = vor.u32 %v783_v29, %v650_v28 }
  0x16   :  { %v785_v35 = vld [vmem:[%s1282_s0 + $0xec] sm:$0xf]  ;;  %v668_v36 = vld [vmem:[%s1282_s0 + $0xf8] sm:$0xf0]  ;;  %v747_v41 = vor.u32 %v807_v33, %v746_v32  ;;  %v370_v42 = vsel %vm359_vm0, %v302_v30, 0  ;;  %v1134_v49 = vpack.c.b16 %v80_v37, %v80_v37 }
  0x17   :  { %v634_v43 = vld [vmem:[%s1282_s0 + $0xa8] sm:$0xf]  ;;  %v779_v44 = vld [vmem:[%s1282_s0 + $0xb4] sm:$0xf0]  ;;  %v671_v45 = vor.u32 %v785_v35, %v668_v36  ;;  %v781_v48 = vld [vmem:[%s1282_s0 + $0xcc] sm:$0xf] }
  0x18   :  { %391 = vmatpush.bf16.msra.mxu1 %v691_v1  ;;  %417 = vmatpush.bf16.msra.mxu3 %v695_v2  ;;  %v730_v46 = vld [vmem:[%s1282_s0 + $0x168] sm:$0xf]  ;;  %v803_v47 = vld [vmem:[%s1282_s0 + $0x174] sm:$0xf0]  ;;  %v652_v50 = vld [vmem:[%s1282_s0 + $0xd8] sm:$0xf0]  ;;  %v635_v53 = vor.u32 %v779_v44, %v634_v43 }
  0x19   :  { %377 = vmatpush.bf16.msra.mxu0 %v579_v6  ;;  %403 = vmatpush.bf16.msra.mxu2 %v583_v7  ;;  %v805_v51 = vld [vmem:[%s1282_s0 + $0x18c] sm:$0xf]  ;;  %v748_v52 = vld [vmem:[%s1282_s0 + $0x198] sm:$0xf0]  ;;  %v731_v54 = vor.u32 %v803_v47, %v730_v46  ;;  %v618_v55 = vld [vmem:[%s1282_s0 + $0x88] sm:$0xf]  ;;  %v655_v57 = vor.u32 %v781_v48, %v652_v50 }
  0x1a   :  { %v775_v56 = vld [vmem:[%s1282_s0 + $0x94] sm:$0xf0]  ;;  %v751_v58 = vor.u32 %v805_v51, %v748_v52  ;;  %v714_v59 = vld [vmem:[%s1282_s0 + $0x148] sm:$0xf]  ;;  %v777_v61 = vld [vmem:[%s1282_s0 + $0xac] sm:$0xf] }
  0x1b   :  { %v799_v60 = vld [vmem:[%s1282_s0 + $0x154] sm:$0xf0]  ;;  %v636_v62 = vld [vmem:[%s1282_s0 + $0xb8] sm:$0xf0]  ;;  %v801_v63 = vld [vmem:[%s1282_s0 + $0x16c] sm:$0xf] }
  0x1c   :  { %392 = vmatpush.bf16.msra.mxu1 %v675_v19  ;;  %418 = vmatpush.bf16.msra.mxu3 %v679_v20  ;;  %v732_v0 = vld [vmem:[%s1282_s0 + $0x178] sm:$0xf0] }
  0x1d   :  { %378 = vmatpush.bf16.msra.mxu0 %v563_v21  ;;  %404 = vmatpush.bf16.msra.mxu2 %v567_v22 }
  0x1f   :  { %753 = vmatmul.msk.bf16.vlgmr.msra.gmra.mxu3 %vm355_vm1, %v1106_v34  ;;  %752 = vmatmul.msk.bf16.vlgmr.msra.gmra.mxu1 %vm355_vm1, %v1106_v34 }
  0x20   :  { %424 = vmatpush.bf16.msrb.mxu1 %v667_v26  ;;  %439 = vmatpush.bf16.msrb.mxu3 %v367_v31 }
  0x21   :  { %379 = vmatpush.bf16.msra.mxu0 %v547_v38  ;;  %405 = vmatpush.bf16.msra.mxu2 %v551_v39 }
  0x24   :  { %425 = vmatpush.bf16.msrb.mxu1 %v651_v40  ;;  %440 = vmatpush.bf16.msrb.mxu3 %v747_v41 }
  0x25   :  { %450 = vmatpush.bf16.msrb.mxu0 %v671_v45  ;;  %465 = vmatpush.bf16.msrb.mxu2 %v370_v42 }
  0x26   :  { %406 = vmatmul.bf16.vlgmr.msra.gmra.mxu2 %v1134_v49  ;;  %380 = vmatmul.bf16.vlgmr.msra.gmra.mxu0 %v1134_v49 }
  0x27   :  { %12 = vsyncpa [#allocation5], 0  ;;  %v619_v1 = vor.u32 %v775_v56, %v618_v55  ;;  %v715_v2 = vor.u32 %v799_v60, %v714_v59  ;;  %v602_v3 = vld [vmem:[%s1282_s0 + $0x68] sm:$0xf]  ;;  %v771_v4 = vld [vmem:[%s1282_s0 + $0x74] sm:$0xf0]  ;;  %v639_v5 = vor.u32 %v777_v61, %v636_v62  ;;  %v735_v6 = vor.u32 %v801_v63, %v732_v0 }
  0x28   :  { %426 = vmatpush.bf16.msrb.mxu1 %v635_v53  ;;  %441 = vmatpush.bf16.msrb.mxu3 %v731_v54  ;;  %v698_v7 = vld [vmem:[%s1282_s0 + $0x128] sm:$0xf]  ;;  %v795_v8 = vld [vmem:[%s1282_s0 + $0x134] sm:$0xf0]  ;;  %v773_v9 = vld [vmem:[%s1282_s0 + $0x8c] sm:$0xf]  ;;  %v603_v13 = vor.u32 %v771_v4, %v602_v3 }
  0x29   :  { %451 = vmatpush.bf16.msrb.mxu0 %v655_v57  ;;  %466 = vmatpush.bf16.msrb.mxu2 %v751_v58  ;;  %v620_v10 = vld [vmem:[%s1282_s0 + $0x98] sm:$0xf0]  ;;  %v797_v11 = vld [vmem:[%s1282_s0 + $0x14c] sm:$0xf]  ;;  %v699_v14 = vor.u32 %v795_v8, %v698_v7  ;;  %v586_v15 = vld [vmem:[%s1282_s0 + $0x48] sm:$0xf] }
  0x2a   :  { %v716_v12 = vld [vmem:[%s1282_s0 + $0x158] sm:$0xf0]  ;;  %v767_v16 = vld [vmem:[%s1282_s0 + $0x54] sm:$0xf0]  ;;  %v623_v17 = vor.u32 %v773_v9, %v620_v10  ;;  %v682_v19 = vld [vmem:[%s1282_s0 + $0x108] sm:$0xf] }
  0x2b   :  { %v719_v18 = vor.u32 %v797_v11, %v716_v12  ;;  %v791_v20 = vld [vmem:[%s1282_s0 + $0x114] sm:$0xf0]  ;;  %v769_v21 = vld [vmem:[%s1282_s0 + $0x6c] sm:$0xf]  ;;  %v604_v22 = vld [vmem:[%s1282_s0 + $0x78] sm:$0xf0]  ;;  %v587_v25 = vor.u32 %v767_v16, %v586_v15 }
  0x2c   :  { %427 = vmatpush.bf16.msrb.mxu1 %v619_v1  ;;  %442 = vmatpush.bf16.msrb.mxu3 %v715_v2  ;;  %v793_v23 = vld [vmem:[%s1282_s0 + $0x12c] sm:$0xf]  ;;  %v700_v24 = vld [vmem:[%s1282_s0 + $0x138] sm:$0xf0]  ;;  %v683_v26 = vor.u32 %v791_v20, %v682_v19  ;;  %v607_v27 = vor.u32 %v769_v21, %v604_v22  ;;  %v570_v29 = vld [vmem:[%s1282_s0 + $0x28] sm:$0xf] }
  0x2d   :  { %452 = vmatpush.bf16.msrb.mxu0 %v639_v5  ;;  %467 = vmatpush.bf16.msrb.mxu2 %v735_v6  ;;  %v703_v28 = vor.u32 %v793_v23, %v700_v24  ;;  %v763_v30 = vld [vmem:[%s1282_s0 + $0x34] sm:$0xf0]  ;;  %v765_v31 = vld [vmem:[%s1282_s0 + $0x4c] sm:$0xf]  ;;  %v588_v32 = vld [vmem:[%s1282_s0 + $0x58] sm:$0xf0] }
  0x2e   :  { %v789_v33 = vld [vmem:[%s1282_s0 + $0x10c] sm:$0xf]  ;;  %v684_v35 = vld [vmem:[%s1282_s0 + $0x118] sm:$0xf0]  ;;  %v571_v36 = vor.u32 %v763_v30, %v570_v29  ;;  %v591_v37 = vor.u32 %v765_v31, %v588_v32  ;;  %v554_v39 = vld [vmem:[%s1282_s0 + $0x8] sm:$0xf] }
  0x2f   :  { %v687_v38 = vor.u32 %v789_v33, %v684_v35  ;;  %v759_v40 = vld [vmem:[%s1282_s0 + $0x14] sm:$0xf0]  ;;  %v761_v41 = vld [vmem:[%s1282_s0 + $0x2c] sm:$0xf]  ;;  %v572_v42 = vld [vmem:[%s1282_s0 + $0x38] sm:$0xf0] }
  0x30   :  { %428 = vmatpush.bf16.msrb.mxu1 %v603_v13  ;;  %443 = vmatpush.bf16.msrb.mxu3 %v699_v14  ;;  %v555_v43 = vor.u32 %v759_v40, %v554_v39  ;;  %v575_v44 = vor.u32 %v761_v41, %v572_v42  ;;  %v757_v45 = vld [vmem:[%s1282_s0 + $0xc] sm:$0xf]  ;;  %v556_v46 = vld [vmem:[%s1282_s0 + $0x18] sm:$0xf0]  ;;  %v75_v50 = vld [vmem:[%s1284_s2] sm:$0xff]  ;;  %s504_s11 = sshll.u32 %s1285_s3, 4  ;;  %s505_s11 = int_to_ptr.hbm [resolvable:$true] %s504_s11 }
  0x31   :  { %453 = vmatpush.bf16.msrb.mxu0 %v623_v17  ;;  %468 = vmatpush.bf16.msrb.mxu2 %v719_v18  ;;  %v559_v47 = vor.u32 %v757_v45, %v556_v46  ;;  %v77_v62 = vld [vmem:[%s1284_s2 + $0x10] sm:$0xff]  ;;  %v78_v3 = vld [vmem:[%s1284_s2 + $0x18] sm:$0xff]  ;;  %s887_s12 = smov [#allocation2]   ;;  %s515_s16 = sshll.u32 %s1286_s4, 4  ;;  %vm485_vm2 = vcmask 7168   ;;  %s516_s16 = int_to_ptr.hbm [resolvable:$true] %s515_s16 }
  0x32   :  { %s502_s13 = sshll.u32 %s887_s12, 4  ;;  %s889_s17 = smov [#allocation6]   ;;  %s503_s13 = int_to_ptr.vmem [resolvable:$true] %s502_s13 }
  0x33   :  { %s524_s18 = sshll.u32 %s889_s17, 4  ;;  %s526_s21 = sshll.u32 %s1287_s5, 4  ;;  %s525_s18 = int_to_ptr.vmem [resolvable:$true] %s524_s18  ;;  %s527_s21 = int_to_ptr.hbm [resolvable:$true] %s526_s21 }
  0x34   :  { %429 = vmatpush.bf16.msrb.mxu1 %v587_v25  ;;  %444 = vmatpush.bf16.msrb.mxu3 %v683_v26 }
  0x35   :  { %454 = vmatpush.bf16.msrb.mxu0 %v607_v27  ;;  %469 = vmatpush.bf16.msrb.mxu2 %v703_v28 }
  0x37   :  { %754 = vmatmul.msk.bf16.vlgmr.msrb.gmra.mxu3 %vm355_vm1, %v1106_v34 }
  0x38   :  { %430 = vmatpush.bf16.msrb.mxu1 %v571_v36 }
  0x39   :  { %455 = vmatpush.bf16.msrb.mxu0 %v591_v37  ;;  %470 = vmatpush.bf16.msrb.mxu2 %v687_v38 }
  0x3c   :  { %431 = vmatpush.bf16.msrb.mxu1 %v555_v43  ;;  %755 = vmatmul.msk.bf16.vlgmr.msrb.gmra.mxu2 %vm355_vm1, %v1106_v34  ;;  %v76_v34 = vld [vmem:[%s1284_s2 + $0x8] sm:$0xff]  ;;  %s888_s2 = smov [#allocation4]  }
  0x3d   :  { %456 = vmatpush.bf16.msrb.mxu0 %v575_v44  ;;  %s513_s3 = sshll.u32 %s888_s2, 4  ;;  %s514_s3 = int_to_ptr.vmem [resolvable:$true] %s513_s3 }
  0x3f   :  { %432 = vmatmul.bf16.vlgmr.msrb.gmra.mxu1 %v1134_v49 }
  0x41   :  { %457 = vmatpush.bf16.msrb.mxu0 %v559_v47 }
  0x44   :  { %458 = vmatmul.bf16.vlgmr.msrb.gmra.mxu0 %v1134_v49 }
  0x9c   :  { %v394_v48 = vpop.f32.mrf.mxu1 }
  0xa2   :  { %v420_v53 = vpop.f32.mrf.mxu3 }
  0xa3   :  { %v381_v51 = vpop.f32.mrf.mxu0 }
  0xa4   :  { %v382_v52 = vadd.f32 %v381_v51, %v75_v50  ;;  %v396_v55 = vpop.f32.mrf.mxu1 }
  0xa6   :  { %v395_v54 = vadd.f32 %v394_v48, %v382_v52 }
  0xa8   :  { %476 = vst [vmem:[#allocation2] sm:$0xff] %v395_v54  ;;  %v487_v11 = vmul.f32 %v395_v54, %v395_v54 }
  0xa9   :  { %v407_v56 = vpop.f32.mrf.mxu2 }
  0xaa   :  { %v408_v57 = vadd.f32 %v407_v56, %v76_v34  ;;  %v422_v49 = vpop.f32.mrf.mxu3 }
  0xab   :  { %v383_v58 = vpop.f32.mrf.mxu0 }
  0xac   :  { %v421_v59 = vadd.f32 %v420_v53, %v408_v57 }
  0xae   :  { %477 = vst [vmem:[#allocation2 + $0x8] sm:$0xff] %v421_v59  ;;  %v480_v7 = vadd.f32 %v421_v59, %v395_v54  ;;  %v488_v12 = vmul.f32 %v421_v59, %v421_v59 }
  0xb0   :  { %v491_v18 = vadd.f32 %v488_v12, %v487_v11 }
  0xb1   :  { %v409_v60 = vpop.f32.mrf.mxu2 }
  0xba   :  { %v446_v61 = vpop.f32.mrf.mxu3 }
  0xbc   :  { %v433_v63 = vpop.f32.mrf.mxu1 }
  0xbd   :  { %v434_v0 = vadd.f32 %v433_v63, %v77_v62 }
  0xbf   :  { %v447_v1 = vadd.f32 %v446_v61, %v434_v0  ;;  %v472_v2 = vpop.f32.mrf.mxu2 }
  0xc1   :  { %478 = vst [vmem:[#allocation2 + $0x10] sm:$0xff] %v447_v1  ;;  %v459_v4 = vpop.f32.mrf.mxu0  ;;  %v481_v10 = vadd.f32 %v480_v7, %v447_v1  ;;  %v489_v15 = vmul.f32 %v447_v1, %v447_v1 }
  0xc2   :  { %v460_v5 = vadd.f32 %v459_v4, %v78_v3  ;;  %v448_v6 = vpop.f32.mrf.mxu3 }
  0xc3   :  { %v492_v19 = vadd.f32 %v491_v18, %v489_v15 }
  0xc4   :  { %v473_v8 = vadd.f32 %v472_v2, %v460_v5  ;;  %v435_v9 = vpop.f32.mrf.mxu1 }
  0xc6   :  { %479 = vst [vmem:[#allocation2 + $0x18] sm:$0xff] %v473_v8  ;;  %v482_v13 = vadd.f32 %v481_v10, %v473_v8  ;;  %v490_v17 = vmul.f32 %v473_v8, %v473_v8 }
  0xc7   :  { %v474_v14 = vpop.f32.mrf.mxu2  ;;  %507 = dma.vmem_to_hbm [thread:$0]  %s503_s13, 512, %s505_s11, [#allocation3]  }
  0xc8   :  { %483 = vadd.xlane.f32.xlu0 %v482_v13  ;;  %v493_v20 = vadd.f32 %v492_v19, %v490_v17 }
  0xc9   :  { %v461_v16 = vpop.f32.mrf.mxu0 }
  0xd0   :  { %494 = vadd.xlane.f32.xlu0 %v493_v20 }
 0x13b   :  { %v484_v21 = vpop.xlane.xlu0 %483 }
 0x13c   :  { %486 = vst.msk [vmem:[#allocation4] sm:$0xff] %vm485_vm2, %v484_v21 }
 0x13d   :  { %518 = dma.vmem_to_hbm [thread:$0]  %s514_s3, 128, %s516_s16, [#allocation5]  }
 0x143   :  { %v495_v22 = vpop.xlane.xlu0 %494 }
 0x144   :  { %496 = vst.msk [vmem:[#allocation6] sm:$0xff] %vm485_vm2, %v495_v22 }
 0x145   :  { %529 = dma.vmem_to_hbm [thread:$0]  %s525_s18, 128, %s527_s21, [#allocation5]  }
 0x146   :  { %883 = dma.done.wait [#allocation3], 512  }
 0x147   :  { %884 = vsyncadd [#allocation3], 4294966784 }
 0x148   :  { %885 = dma.done.wait [#allocation5], 256  }
 0x149   :  { %886 = vsyncadd [#allocation5], 4294967040 }
 0x14a   :  { %542 = vsyncpa [#allocation3], 1 }
 0x14b   :  { %543 = vsyncpa [#allocation5], 1 }

</bundles_post_ra>
